<compile_context>
chip_gen: v7x
topology: tpu7x:2x2x1
jax: 0.10.0
libtpu: 0.0.40
codegen_flags: <defaults>
</compile_context>

<pallas_src>
import functools

import jax
import jax.numpy as jnp
from jax import lax
from jax.experimental import pallas as pl
from jax.experimental.pallas import tpu as pltpu


# ---------------------------------------------------------------------------
# Kernels
# ---------------------------------------------------------------------------
def _input_proj_kernel(x_ref, w_ref, b_ref, o_ref):
    """gates_in = x @ W_ih^T + (b_ih + b_hh), one big MXU matmul.

    x_ref: (tm, E) bf16   w_ref: (E, 4H) bf16   b_ref: (1, 4H) f32
    o_ref: (tm, 4H) f32
    """
    o_ref[...] = (jnp.dot(x_ref[...], w_ref[...],
                          preferred_element_type=jnp.float32)
                  + b_ref[...])


def _lstm_step(z, h_sc, c_sc):
    """Shared gate math.  z: (TB, 4H) f32 pre-activation (input proj + h@Whh)."""
    H = h_sc.shape[-1]
    i_g = jax.nn.sigmoid(z[:, 0 * H:1 * H])
    f_g = jax.nn.sigmoid(z[:, 1 * H:2 * H])
    g_g = jnp.tanh(z[:, 2 * H:3 * H])
    o_g = jax.nn.sigmoid(z[:, 3 * H:4 * H])
    c_new = f_g * c_sc[...] + i_g * g_g
    h_new = o_g * jnp.tanh(c_new)
    c_sc[...] = c_new
    h_sc[...] = h_new
    return h_new


def _lstm_mid_kernel(gates_ref, whh_ref, hout_ref, h_sc, c_sc):
    """Intermediate LSTM layer: recurrence only (input proj already done).

    grid = (batch_tiles, time_chunks); time axis is 'arbitrary' (sequential).
    gates_ref: (chunk, TB, 4H) f32   whh_ref: (H, 4H) bf16
    hout_ref : (chunk, TB, H) bf16   h_sc/c_sc: (TB, H) f32 scratch.
    """
    tc = pl.program_id(1)

    @pl.when(tc == 0)
    def _():
        h_sc[...] = jnp.zeros_like(h_sc)
        c_sc[...] = jnp.zeros_like(c_sc)

    chunk = gates_ref.shape[0]

    def step(t, carry):
        z = gates_ref[t] + jnp.dot(h_sc[...].astype(whh_ref.dtype),
                                   whh_ref[...],
                                   preferred_element_type=jnp.float32)
        h_new = _lstm_step(z, h_sc, c_sc)
        hout_ref[t] = h_new.astype(hout_ref.dtype)
        return carry

    lax.fori_loop(0, chunk, step, 0, unroll=True)


def _lstm_last_kernel(gates_ref, whh_ref, fcw_ref, fcb_ref, out_ref,
                      h_sc, c_sc):
    """Last LSTM layer with the classifier fused at the final timestep.

    No per-timestep HBM writeback; only the (TB, 1) sigmoid(logit) is stored
    once, via a VPU multiply + lane reduction (avoids an N=1 MXU matmul).
    """
    tc = pl.program_id(1)

    @pl.when(tc == 0)
    def _():
        h_sc[...] = jnp.zeros_like(h_sc)
        c_sc[...] = jnp.zeros_like(c_sc)

    chunk = gates_ref.shape[0]

    def step(t, carry):
        z = gates_ref[t] + jnp.dot(h_sc[...].astype(whh_ref.dtype),
                                   whh_ref[...],
                                   preferred_element_type=jnp.float32)
        _lstm_step(z, h_sc, c_sc)
        return carry

    lax.fori_loop(0, chunk, step, 0, unroll=True)

    @pl.when(tc == pl.num_programs(1) - 1)
    def _():
        # TODO(synk): nn.Dropout is identity in eval/inference mode; not applied.
        h = h_sc[...]                                           # (TB, H) f32
        logit = jnp.sum(h * fcw_ref[...], axis=-1, keepdims=True) + fcb_ref[...]
        out_ref[...] = jax.nn.sigmoid(logit)


# ---------------------------------------------------------------------------
# Wrappers
# ---------------------------------------------------------------------------
def _pick_time_chunk(T):
    for c in (16, 8, 4, 2, 1):
        if T % c == 0:
            return c
    return 1


def _pick_batch_tile(B):
    # Two batch tiles (each a multiple of 8 sublanes) -> megacore 'parallel'
    # axis can shard the recurrence across v7x's 2 TensorCores.
    if B % 16 == 0:
        return B // 2
    return B


_COMPILER_PARAMS_SEQ = pltpu.CompilerParams(
    dimension_semantics=("parallel", "arbitrary"),
    vmem_limit_bytes=64 * 1024 * 1024,
)


def input_projection(x2d, wih_t, b):
    """(T*B, E) bf16 @ (E, 4H) bf16 + (1, 4H) f32 -> (T*B, 4H) f32."""
    M, E = x2d.shape
    G = wih_t.shape[1]
    tm = 256 if M % 256 == 0 else M          # row-tile big matmuls; tiny M = 1 block
    return pl.pallas_call(
        _input_proj_kernel,
        out_shape=jax.ShapeDtypeStruct((M, G), jnp.float32),
        grid=(M // tm,),
        in_specs=[
            pl.BlockSpec((tm, E), lambda i: (i, 0)),
            pl.BlockSpec((E, G), lambda i: (0, 0)),
            pl.BlockSpec((1, G), lambda i: (0, 0)),
        ],
        out_specs=pl.BlockSpec((tm, G), lambda i: (i, 0)),
        compiler_params=pltpu.CompilerParams(
            dimension_semantics=("parallel",),
            vmem_limit_bytes=64 * 1024 * 1024),
    )(x2d, wih_t, b)


def lstm_mid_layer(gates, whh_t):
    """gates: (T, B, 4H) f32 pre-projected -> hidden states (T, B, H) bf16."""
    T, B, G = gates.shape
    H = whh_t.shape[0]
    TB = _pick_batch_tile(B)
    chunk = _pick_time_chunk(T)
    return pl.pallas_call(
        _lstm_mid_kernel,
        out_shape=jax.ShapeDtypeStruct((T, B, H), jnp.bfloat16),
        grid=(B // TB, T // chunk),
        in_specs=[
            pl.BlockSpec((chunk, TB, G), lambda b, tc: (tc, b, 0)),
            pl.BlockSpec((H, G), lambda b, tc: (0, 0)),
        ],
        out_specs=pl.BlockSpec((chunk, TB, H), lambda b, tc: (tc, b, 0)),
        scratch_shapes=[pltpu.VMEM((TB, H), jnp.float32),
                        pltpu.VMEM((TB, H), jnp.float32)],
        compiler_params=_COMPILER_PARAMS_SEQ,
    )(gates, whh_t)


def lstm_last_layer(gates, whh_t, fc_w_row, fc_b):
    """Last layer recurrence + fused Linear(H,1)+Sigmoid -> (B, 1) f32."""
    T, B, G = gates.shape
    H = whh_t.shape[0]
    TB = _pick_batch_tile(B)
    chunk = _pick_time_chunk(T)
    return pl.pallas_call(
        _lstm_last_kernel,
        out_shape=jax.ShapeDtypeStruct((B, 1), jnp.float32),
        grid=(B // TB, T // chunk),
        in_specs=[
            pl.BlockSpec((chunk, TB, G), lambda b, tc: (tc, b, 0)),
            pl.BlockSpec((H, G), lambda b, tc: (0, 0)),
            pl.BlockSpec((1, H), lambda b, tc: (0, 0)),
            pl.BlockSpec((1, 1), lambda b, tc: (0, 0)),
        ],
        out_specs=pl.BlockSpec((TB, 1), lambda b, tc: (b, 0)),
        scratch_shapes=[pltpu.VMEM((TB, H), jnp.float32),
                        pltpu.VMEM((TB, H), jnp.float32)],
        compiler_params=_COMPILER_PARAMS_SEQ,
    )(gates, whh_t, fc_w_row, fc_b)


def lstm_net_forward(params, token_ids):
    """Full LSTM_Net forward.  token_ids: (B, T) int32 -> (B, 1) f32."""
    # Embedding lookup (gather) stays in plain JAX (glue).
    emb = jnp.take(params["embedding"], token_ids, axis=0)      # (B, T, E) f32
    x = jnp.transpose(emb, (1, 0, 2)).astype(jnp.bfloat16)      # time-major (T, B, E)
    T, B, _ = x.shape

    n_layers = len(params["lstm"])
    out = None
    for li, layer in enumerate(params["lstm"]):
        # Hoisted input projection: one big (T*B, 4H) MXU matmul per layer.
        gates = input_projection(x.reshape(T * B, x.shape[-1]),
                                 layer["wih_t"], layer["b"])
        gates = gates.reshape(T, B, -1)                         # (T, B, 4H) f32
        if li < n_layers - 1:
            x = lstm_mid_layer(gates, layer["whh_t"])           # (T, B, H) bf16
        else:
            out = lstm_last_layer(gates, layer["whh_t"],
                                  params["fc_w_row"], params["fc_b"])
    return out


# ---------------------------------------------------------------------------
# Deterministic parameter construction (matches nn.LSTM / nn.Linear shapes)
# ---------------------------------------------------------------------------
def make_params(key, vocab_size, embedding_dim, hidden_dim, num_layers):
    keys = jax.random.split(key, 2 + 6 * num_layers)
    k_iter = iter(keys)

    embedding = jax.random.normal(next(k_iter), (vocab_size, embedding_dim),
                                  dtype=jnp.float32) * 0.1

    bound = 1.0 / jnp.sqrt(hidden_dim)
    lstm_layers = []
    for layer in range(num_layers):
        in_dim = embedding_dim if layer == 0 else hidden_dim
        w_ih = jax.random.uniform(next(k_iter), (4 * hidden_dim, in_dim),
                                  minval=-bound, maxval=bound, dtype=jnp.float32)
        w_hh = jax.random.uniform(next(k_iter), (4 * hidden_dim, hidden_dim),
                                  minval=-bound, maxval=bound, dtype=jnp.float32)
        b_ih = jax.random.uniform(next(k_iter), (4 * hidden_dim,),
                                  minval=-bound, maxval=bound, dtype=jnp.float32)
        b_hh = jax.random.uniform(next(k_iter), (4 * hidden_dim,),
                                  minval=-bound, maxval=bound, dtype=jnp.float32)
        lstm_layers.append({
            # Pre-transposed, bf16 for the MXU; gate order i, f, g, o (PyTorch).
            "wih_t": w_ih.T.astype(jnp.bfloat16),                 # (in_dim, 4H)
            "whh_t": w_hh.T.astype(jnp.bfloat16),                 # (H, 4H)
            "b": (b_ih + b_hh).reshape(1, 4 * hidden_dim),        # f32
        })

    fc_w = jax.random.uniform(next(k_iter), (1, hidden_dim),
                              minval=-bound, maxval=bound, dtype=jnp.float32)
    fc_b = jax.random.uniform(next(k_iter), (1,),
                              minval=-bound, maxval=bound, dtype=jnp.float32)

    return {
        "embedding": embedding,
        "lstm": lstm_layers,
        "fc_w_row": fc_w,                    # (1, H) f32, used as VPU row
        "fc_b": fc_b.reshape(1, 1),
    }


# ---------------------------------------------------------------------------
if __name__ == "__main__":
    VOCAB = 32
    EMB_DIM = 16
    HIDDEN = 32
    NUM_LAYERS = 2
    BATCH = 2
    SEQ = 8

    key = jax.random.PRNGKey(0)
    k_params, k_tokens = jax.random.split(key)

    params = make_params(k_params, VOCAB, EMB_DIM, HIDDEN, NUM_LAYERS)
    token_ids = jax.random.randint(k_tokens, (BATCH, SEQ), 0, VOCAB,
                                   dtype=jnp.int32)

    fwd = jax.jit(functools.partial(lstm_net_forward, params))
    out = fwd(token_ids)
    jax.block_until_ready(out)

    assert out.shape == (BATCH, 1)
    assert bool(jnp.all((out >= 0.0) & (out <= 1.0)))
    print("KERNEL_OK")
</pallas_src>

<mosaic_0001>
module attributes {stable_mosaic.version = 11 : i64} {
  func.func @_input_proj_kernel(%arg0: i32, %arg1: memref<16x16xbf16, #tpu.memory_space<vmem>>, %arg2: memref<16x128xbf16, #tpu.memory_space<vmem>>, %arg3: memref<1x128xf32, #tpu.memory_space<vmem>>, %arg4: memref<16x128xf32, #tpu.memory_space<vmem>>) attributes {dimension_semantics = [#tpu.dimension_semantics<parallel>], iteration_bounds = array<i64: 1>, scalar_prefetch = 0 : i64, scratch_operands = 0 : i64, tpu.core_type = #tpu.core_type<tc>, window_params = [{transform_indices = @transform_0, window_bounds = array<i64: 16, 16>}, {pipeline_mode = #tpu.pipeline_mode<synchronous>, transform_indices = @transform_1, window_bounds = array<i64: 16, 128>}, {pipeline_mode = #tpu.pipeline_mode<synchronous>, transform_indices = @transform_2, window_bounds = array<i64: 1, 128>}, {transform_indices = @transform_3, window_bounds = array<i64: 16, 128>}]} {
    %c0 = arith.constant 0 : index
    %c0_0 = arith.constant 0 : index
    %0 = vector.load %arg1[%c0, %c0_0] : memref<16x16xbf16, #tpu.memory_space<vmem>>, vector<16x16xbf16>
    %c0_1 = arith.constant 0 : index
    %c0_2 = arith.constant 0 : index
    %1 = vector.load %arg2[%c0_1, %c0_2] : memref<16x128xbf16, #tpu.memory_space<vmem>>, vector<16x128xbf16>
    %cst = arith.constant dense<0.000000e+00> : vector<16x128xf32>
    %2 = tpu.matmul %0, %1, %cst {dimension_numbers = #tpu.dot_dimension_numbers<[1], [0], [0], [1], [0, 0, 1, 1], [], []>} : vector<16x16xbf16>, vector<16x128xbf16>, vector<16x128xf32> -> vector<16x128xf32>
    %c0_3 = arith.constant 0 : index
    %c0_4 = arith.constant 0 : index
    %3 = vector.load %arg3[%c0_3, %c0_4] : memref<1x128xf32, #tpu.memory_space<vmem>>, vector<1x128xf32>
    %4 = vector.broadcast %3 : vector<1x128xf32> to vector<16x128xf32>
    %5 = arith.addf %2, %4 : vector<16x128xf32>
    %c0_5 = arith.constant 0 : index
    %c0_6 = arith.constant 0 : index
    %6 = vector.load %arg4[%c0_5, %c0_6] : memref<16x128xf32, #tpu.memory_space<vmem>>, vector<16x128xf32>
    tpu.vector_store %arg4[%c0_5, %c0_6], %5 {strides = array<i32>} : memref<16x128xf32, #tpu.memory_space<vmem>>, vector<16x128xf32>,
    return
  }
  func.func @transform_0(%arg0: i32) -> (i32, i32) {
    %c0_i32 = arith.constant 0 : i32
    %c0_i32_0 = arith.constant 0 : i32
    return %arg0, %c0_i32 : i32, i32
  }
  func.func @transform_1(%arg0: i32) -> (i32, i32) {
    %c0_i32 = arith.constant 0 : i32
    %c0_i32_0 = arith.constant 0 : i32
    %c0_i32_1 = arith.constant 0 : i32
    return %c0_i32, %c0_i32_0 : i32, i32
  }
  func.func @transform_2(%arg0: i32) -> (i32, i32) {
    %c0_i32 = arith.constant 0 : i32
    %c0_i32_0 = arith.constant 0 : i32
    %c0_i32_1 = arith.constant 0 : i32
    return %c0_i32, %c0_i32_0 : i32, i32
  }
  func.func @transform_3(%arg0: i32) -> (i32, i32) {
    %c0_i32 = arith.constant 0 : i32
    %c0_i32_0 = arith.constant 0 : i32
    return %arg0, %c0_i32 : i32, i32
  }
}

module attributes {stable_mosaic.version = 11 : i64} {
  func.func @_input_proj_kernel(%arg0: i32, %arg1: memref<16x32xbf16, #tpu.memory_space<vmem>>, %arg2: memref<32x128xbf16, #tpu.memory_space<vmem>>, %arg3: memref<1x128xf32, #tpu.memory_space<vmem>>, %arg4: memref<16x128xf32, #tpu.memory_space<vmem>>) attributes {dimension_semantics = [#tpu.dimension_semantics<parallel>], iteration_bounds = array<i64: 1>, scalar_prefetch = 0 : i64, scratch_operands = 0 : i64, tpu.core_type = #tpu.core_type<tc>, window_params = [{transform_indices = @transform_0, window_bounds = array<i64: 16, 32>}, {pipeline_mode = #tpu.pipeline_mode<synchronous>, transform_indices = @transform_1, window_bounds = array<i64: 32, 128>}, {pipeline_mode = #tpu.pipeline_mode<synchronous>, transform_indices = @transform_2, window_bounds = array<i64: 1, 128>}, {transform_indices = @transform_3, window_bounds = array<i64: 16, 128>}]} {
    %c0 = arith.constant 0 : index
    %c0_0 = arith.constant 0 : index
    %0 = vector.load %arg1[%c0, %c0_0] : memref<16x32xbf16, #tpu.memory_space<vmem>>, vector<16x32xbf16>
    %c0_1 = arith.constant 0 : index
    %c0_2 = arith.constant 0 : index
    %1 = vector.load %arg2[%c0_1, %c0_2] : memref<32x128xbf16, #tpu.memory_space<vmem>>, vector<32x128xbf16>
    %cst = arith.constant dense<0.000000e+00> : vector<16x128xf32>
    %2 = tpu.matmul %0, %1, %cst {dimension_numbers = #tpu.dot_dimension_numbers<[1], [0], [0], [1], [0, 0, 1, 1], [], []>} : vector<16x32xbf16>, vector<32x128xbf16>, vector<16x128xf32> -> vector<16x128xf32>
    %c0_3 = arith.constant 0 : index
    %c0_4 = arith.constant 0 : index
    %3 = vector.load %arg3[%c0_3, %c0_4] : memref<1x128xf32, #tpu.memory_space<vmem>>, vector<1x128xf32>
    %4 = vector.broadcast %3 : vector<1x128xf32> to vector<16x128xf32>
    %5 = arith.addf %2, %4 : vector<16x128xf32>
    %c0_5 = arith.constant 0 : index
    %c0_6 = arith.constant 0 : index
    %6 = vector.load %arg4[%c0_5, %c0_6] : memref<16x128xf32, #tpu.memory_space<vmem>>, vector<16x128xf32>
    tpu.vector_store %arg4[%c0_5, %c0_6], %5 {strides = array<i32>} : memref<16x128xf32, #tpu.memory_space<vmem>>, vector<16x128xf32>,
    return
  }
  func.func @transform_0(%arg0: i32) -> (i32, i32) {
    %c0_i32 = arith.constant 0 : i32
    %c0_i32_0 = arith.constant 0 : i32
    return %arg0, %c0_i32 : i32, i32
  }
  func.func @transform_1(%arg0: i32) -> (i32, i32) {
    %c0_i32 = arith.constant 0 : i32
    %c0_i32_0 = arith.constant 0 : i32
    %c0_i32_1 = arith.constant 0 : i32
    return %c0_i32, %c0_i32_0 : i32, i32
  }
  func.func @transform_2(%arg0: i32) -> (i32, i32) {
    %c0_i32 = arith.constant 0 : i32
    %c0_i32_0 = arith.constant 0 : i32
    %c0_i32_1 = arith.constant 0 : i32
    return %c0_i32, %c0_i32_0 : i32, i32
  }
  func.func @transform_3(%arg0: i32) -> (i32, i32) {
    %c0_i32 = arith.constant 0 : i32
    %c0_i32_0 = arith.constant 0 : i32
    return %arg0, %c0_i32 : i32, i32
  }
}

module attributes {stable_mosaic.version = 11 : i64} {
  func.func @_lstm_last_kernel(%arg0: i32, %arg1: i32, %arg2: memref<8x2x128xf32, #tpu.memory_space<vmem>>, %arg3: memref<32x128xbf16, #tpu.memory_space<vmem>>, %arg4: memref<1x32xf32, #tpu.memory_space<vmem>>, %arg5: memref<1x1xf32, #tpu.memory_space<vmem>>, %arg6: memref<2x1xf32, #tpu.memory_space<vmem>>, %arg7: memref<2x32xf32, #tpu.memory_space<vmem>>, %arg8: memref<2x32xf32, #tpu.memory_space<vmem>>) attributes {dimension_semantics = [#tpu.dimension_semantics<parallel>, #tpu.dimension_semantics<arbitrary>], iteration_bounds = array<i64: 1, 1>, scalar_prefetch = 0 : i64, scratch_operands = 2 : i64, tpu.core_type = #tpu.core_type<tc>, window_params = [{transform_indices = @transform_0, window_bounds = array<i64: 8, 2, 128>}, {pipeline_mode = #tpu.pipeline_mode<synchronous>, transform_indices = @transform_1, window_bounds = array<i64: 32, 128>}, {pipeline_mode = #tpu.pipeline_mode<synchronous>, transform_indices = @transform_2, window_bounds = array<i64: 1, 32>}, {pipeline_mode = #tpu.pipeline_mode<synchronous>, transform_indices = @transform_3, window_bounds = array<i64: 1, 1>}, {transform_indices = @transform_4, window_bounds = array<i64: 2, 1>}]} {
    %c0_i32 = arith.constant 0 : i32
    %0 = arith.cmpi eq, %arg1, %c0_i32 : i32
    %1 = arith.extui %0 : i1 to i32
    %c0_i32_0 = arith.constant 0 : i32
    %2 = arith.cmpi ne, %1, %c0_i32_0 : i32
    scf.if %2 {
      %cst_130 = arith.constant 0.000000e+00 : f32
      %294 = vector.broadcast %cst_130 : f32 to vector<2x32xf32>
      %c0_131 = arith.constant 0 : index
      %c0_132 = arith.constant 0 : index
      %295 = vector.load %arg7[%c0_131, %c0_132] : memref<2x32xf32, #tpu.memory_space<vmem>>, vector<2x32xf32>
      tpu.vector_store %arg7[%c0_131, %c0_132], %294 {strides = array<i32>} : memref<2x32xf32, #tpu.memory_space<vmem>>, vector<2x32xf32>,
      %cst_133 = arith.constant 0.000000e+00 : f32
      %296 = vector.broadcast %cst_133 : f32 to vector<2x32xf32>
      %c0_134 = arith.constant 0 : index
      %c0_135 = arith.constant 0 : index
      %297 = vector.load %arg8[%c0_134, %c0_135] : memref<2x32xf32, #tpu.memory_space<vmem>>, vector<2x32xf32>
      tpu.vector_store %arg8[%c0_134, %c0_135], %296 {strides = array<i32>} : memref<2x32xf32, #tpu.memory_space<vmem>>, vector<2x32xf32>,
    } else {
    }
    %c0_i32_1 = arith.constant 0 : i32
    %3 = arith.index_cast %c0_i32_1 : i32 to index
    %c0 = arith.constant 0 : index
    %c0_2 = arith.constant 0 : index
    %4 = vector.load %arg2[%3, %c0, %c0_2] : memref<8x2x128xf32, #tpu.memory_space<vmem>>, vector<1x2x128xf32>
    %5 = vector.shape_cast %4 : vector<1x2x128xf32> to vector<2x128xf32>
    %c0_3 = arith.constant 0 : index
    %c0_4 = arith.constant 0 : index
    %6 = vector.load %arg7[%c0_3, %c0_4] : memref<2x32xf32, #tpu.memory_space<vmem>>, vector<2x32xf32>
    %7 = arith.truncf %6 : vector<2x32xf32> to vector<2x32xbf16>
    %c0_5 = arith.constant 0 : index
    %c0_6 = arith.constant 0 : index
    %8 = vector.load %arg3[%c0_5, %c0_6] : memref<32x128xbf16, #tpu.memory_space<vmem>>, vector<32x128xbf16>
    %cst = arith.constant dense<0.000000e+00> : vector<2x128xf32>
    %9 = tpu.matmul %7, %8, %cst {dimension_numbers = #tpu.dot_dimension_numbers<[1], [0], [0], [1], [0, 0, 1, 1], [], []>} : vector<2x32xbf16>, vector<32x128xbf16>, vector<2x128xf32> -> vector<2x128xf32>
    %10 = arith.addf %5, %9 : vector<2x128xf32>
    %11 = vector.extract_strided_slice %10 {offsets = [0, 0], sizes = [2, 32], strides = [1, 1]} : vector<2x128xf32> to vector<2x32xf32>
    %12 = arith.negf %11 : vector<2x32xf32>
    %13 = math.exp %12 : vector<2x32xf32>
    %cst_7 = arith.constant 1.000000e+00 : f32
    %14 = vector.broadcast %cst_7 : f32 to vector<2x32xf32>
    %15 = arith.addf %14, %13 : vector<2x32xf32>
    %16 = arith.divf %14, %15 : vector<2x32xf32>
    %17 = vector.extract_strided_slice %10 {offsets = [0, 32], sizes = [2, 32], strides = [1, 1]} : vector<2x128xf32> to vector<2x32xf32>
    %18 = arith.negf %17 : vector<2x32xf32>
    %19 = math.exp %18 : vector<2x32xf32>
    %cst_8 = arith.constant 1.000000e+00 : f32
    %20 = vector.broadcast %cst_8 : f32 to vector<2x32xf32>
    %21 = arith.addf %20, %19 : vector<2x32xf32>
    %22 = arith.divf %20, %21 : vector<2x32xf32>
    %23 = vector.extract_strided_slice %10 {offsets = [0, 64], sizes = [2, 32], strides = [1, 1]} : vector<2x128xf32> to vector<2x32xf32>
    %24 = math.tanh %23 : vector<2x32xf32>
    %25 = vector.extract_strided_slice %10 {offsets = [0, 96], sizes = [2, 32], strides = [1, 1]} : vector<2x128xf32> to vector<2x32xf32>
    %26 = arith.negf %25 : vector<2x32xf32>
    %27 = math.exp %26 : vector<2x32xf32>
    %cst_9 = arith.constant 1.000000e+00 : f32
    %28 = vector.broadcast %cst_9 : f32 to vector<2x32xf32>
    %29 = arith.addf %28, %27 : vector<2x32xf32>
    %30 = arith.divf %28, %29 : vector<2x32xf32>
    %c0_10 = arith.constant 0 : index
    %c0_11 = arith.constant 0 : index
    %31 = vector.load %arg8[%c0_10, %c0_11] : memref<2x32xf32, #tpu.memory_space<vmem>>, vector<2x32xf32>
    %32 = arith.mulf %22, %31 : vector<2x32xf32>
    %33 = arith.mulf %16, %24 : vector<2x32xf32>
    %34 = arith.addf %32, %33 : vector<2x32xf32>
    %35 = math.tanh %34 : vector<2x32xf32>
    %36 = arith.mulf %30, %35 : vector<2x32xf32>
    %c0_12 = arith.constant 0 : index
    %c0_13 = arith.constant 0 : index
    %37 = vector.load %arg8[%c0_12, %c0_13] : memref<2x32xf32, #tpu.memory_space<vmem>>, vector<2x32xf32>
    tpu.vector_store %arg8[%c0_12, %c0_13], %34 {strides = array<i32>} : memref<2x32xf32, #tpu.memory_space<vmem>>, vector<2x32xf32>,
    %c0_14 = arith.constant 0 : index
    %c0_15 = arith.constant 0 : index
    %38 = vector.load %arg7[%c0_14, %c0_15] : memref<2x32xf32, #tpu.memory_space<vmem>>, vector<2x32xf32>
    tpu.vector_store %arg7[%c0_14, %c0_15], %36 {strides = array<i32>} : memref<2x32xf32, #tpu.memory_space<vmem>>, vector<2x32xf32>,
    %c1_i32 = arith.constant 1 : i32
    %39 = arith.index_cast %c1_i32 : i32 to index
    %c0_16 = arith.constant 0 : index
    %c0_17 = arith.constant 0 : index
    %40 = vector.load %arg2[%39, %c0_16, %c0_17] : memref<8x2x128xf32, #tpu.memory_space<vmem>>, vector<1x2x128xf32>
    %41 = vector.shape_cast %40 : vector<1x2x128xf32> to vector<2x128xf32>
    %c0_18 = arith.constant 0 : index
    %c0_19 = arith.constant 0 : index
    %42 = vector.load %arg7[%c0_18, %c0_19] : memref<2x32xf32, #tpu.memory_space<vmem>>, vector<2x32xf32>
    %43 = arith.truncf %42 : vector<2x32xf32> to vector<2x32xbf16>
    %c0_20 = arith.constant 0 : index
    %c0_21 = arith.constant 0 : index
    %44 = vector.load %arg3[%c0_20, %c0_21] : memref<32x128xbf16, #tpu.memory_space<vmem>>, vector<32x128xbf16>
    %cst_22 = arith.constant dense<0.000000e+00> : vector<2x128xf32>
    %45 = tpu.matmul %43, %44, %cst_22 {dimension_numbers = #tpu.dot_dimension_numbers<[1], [0], [0], [1], [0, 0, 1, 1], [], []>} : vector<2x32xbf16>, vector<32x128xbf16>, vector<2x128xf32> -> vector<2x128xf32>
    %46 = arith.addf %41, %45 : vector<2x128xf32>
    %47 = vector.extract_strided_slice %46 {offsets = [0, 0], sizes = [2, 32], strides = [1, 1]} : vector<2x128xf32> to vector<2x32xf32>
    %48 = arith.negf %47 : vector<2x32xf32>
    %49 = math.exp %48 : vector<2x32xf32>
    %cst_23 = arith.constant 1.000000e+00 : f32
    %50 = vector.broadcast %cst_23 : f32 to vector<2x32xf32>
    %51 = arith.addf %50, %49 : vector<2x32xf32>
    %52 = arith.divf %50, %51 : vector<2x32xf32>
    %53 = vector.extract_strided_slice %46 {offsets = [0, 32], sizes = [2, 32], strides = [1, 1]} : vector<2x128xf32> to vector<2x32xf32>
    %54 = arith.negf %53 : vector<2x32xf32>
    %55 = math.exp %54 : vector<2x32xf32>
    %cst_24 = arith.constant 1.000000e+00 : f32
    %56 = vector.broadcast %cst_24 : f32 to vector<2x32xf32>
    %57 = arith.addf %56, %55 : vector<2x32xf32>
    %58 = arith.divf %56, %57 : vector<2x32xf32>
    %59 = vector.extract_strided_slice %46 {offsets = [0, 64], sizes = [2, 32], strides = [1, 1]} : vector<2x128xf32> to vector<2x32xf32>
    %60 = math.tanh %59 : vector<2x32xf32>
    %61 = vector.extract_strided_slice %46 {offsets = [0, 96], sizes = [2, 32], strides = [1, 1]} : vector<2x128xf32> to vector<2x32xf32>
    %62 = arith.negf %61 : vector<2x32xf32>
    %63 = math.exp %62 : vector<2x32xf32>
    %cst_25 = arith.constant 1.000000e+00 : f32
    %64 = vector.broadcast %cst_25 : f32 to vector<2x32xf32>
    %65 = arith.addf %64, %63 : vector<2x32xf32>
    %66 = arith.divf %64, %65 : vector<2x32xf32>
    %c0_26 = arith.constant 0 : index
    %c0_27 = arith.constant 0 : index
    %67 = vector.load %arg8[%c0_26, %c0_27] : memref<2x32xf32, #tpu.memory_space<vmem>>, vector<2x32xf32>
    %68 = arith.mulf %58, %67 : vector<2x32xf32>
    %69 = arith.mulf %52, %60 : vector<2x32xf32>
    %70 = arith.addf %68, %69 : vector<2x32xf32>
    %71 = math.tanh %70 : vector<2x32xf32>
    %72 = arith.mulf %66, %71 : vector<2x32xf32>
    %c0_28 = arith.constant 0 : index
    %c0_29 = arith.constant 0 : index
    %73 = vector.load %arg8[%c0_28, %c0_29] : memref<2x32xf32, #tpu.memory_space<vmem>>, vector<2x32xf32>
    tpu.vector_store %arg8[%c0_28, %c0_29], %70 {strides = array<i32>} : memref<2x32xf32, #tpu.memory_space<vmem>>, vector<2x32xf32>,
    %c0_30 = arith.constant 0 : index
    %c0_31 = arith.constant 0 : index
    %74 = vector.load %arg7[%c0_30, %c0_31] : memref<2x32xf32, #tpu.memory_space<vmem>>, vector<2x32xf32>
    tpu.vector_store %arg7[%c0_30, %c0_31], %72 {strides = array<i32>} : memref<2x32xf32, #tpu.memory_space<vmem>>, vector<2x32xf32>,
    %c2_i32 = arith.constant 2 : i32
    %75 = arith.index_cast %c2_i32 : i32 to index
    %c0_32 = arith.constant 0 : index
    %c0_33 = arith.constant 0 : index
    %76 = vector.load %arg2[%75, %c0_32, %c0_33] : memref<8x2x128xf32, #tpu.memory_space<vmem>>, vector<1x2x128xf32>
    %77 = vector.shape_cast %76 : vector<1x2x128xf32> to vector<2x128xf32>
    %c0_34 = arith.constant 0 : index
    %c0_35 = arith.constant 0 : index
    %78 = vector.load %arg7[%c0_34, %c0_35] : memref<2x32xf32, #tpu.memory_space<vmem>>, vector<2x32xf32>
    %79 = arith.truncf %78 : vector<2x32xf32> to vector<2x32xbf16>
    %c0_36 = arith.constant 0 : index
    %c0_37 = arith.constant 0 : index
    %80 = vector.load %arg3[%c0_36, %c0_37] : memref<32x128xbf16, #tpu.memory_space<vmem>>, vector<32x128xbf16>
    %cst_38 = arith.constant dense<0.000000e+00> : vector<2x128xf32>
    %81 = tpu.matmul %79, %80, %cst_38 {dimension_numbers = #tpu.dot_dimension_numbers<[1], [0], [0], [1], [0, 0, 1, 1], [], []>} : vector<2x32xbf16>, vector<32x128xbf16>, vector<2x128xf32> -> vector<2x128xf32>
    %82 = arith.addf %77, %81 : vector<2x128xf32>
    %83 = vector.extract_strided_slice %82 {offsets = [0, 0], sizes = [2, 32], strides = [1, 1]} : vector<2x128xf32> to vector<2x32xf32>
    %84 = arith.negf %83 : vector<2x32xf32>
    %85 = math.exp %84 : vector<2x32xf32>
    %cst_39 = arith.constant 1.000000e+00 : f32
    %86 = vector.broadcast %cst_39 : f32 to vector<2x32xf32>
    %87 = arith.addf %86, %85 : vector<2x32xf32>
    %88 = arith.divf %86, %87 : vector<2x32xf32>
    %89 = vector.extract_strided_slice %82 {offsets = [0, 32], sizes = [2, 32], strides = [1, 1]} : vector<2x128xf32> to vector<2x32xf32>
    %90 = arith.negf %89 : vector<2x32xf32>
    %91 = math.exp %90 : vector<2x32xf32>
    %cst_40 = arith.constant 1.000000e+00 : f32
    %92 = vector.broadcast %cst_40 : f32 to vector<2x32xf32>
    %93 = arith.addf %92, %91 : vector<2x32xf32>
    %94 = arith.divf %92, %93 : vector<2x32xf32>
    %95 = vector.extract_strided_slice %82 {offsets = [0, 64], sizes = [2, 32], strides = [1, 1]} : vector<2x128xf32> to vector<2x32xf32>
    %96 = math.tanh %95 : vector<2x32xf32>
    %97 = vector.extract_strided_slice %82 {offsets = [0, 96], sizes = [2, 32], strides = [1, 1]} : vector<2x128xf32> to vector<2x32xf32>
    %98 = arith.negf %97 : vector<2x32xf32>
    %99 = math.exp %98 : vector<2x32xf32>
    %cst_41 = arith.constant 1.000000e+00 : f32
    %100 = vector.broadcast %cst_41 : f32 to vector<2x32xf32>
    %101 = arith.addf %100, %99 : vector<2x32xf32>
    %102 = arith.divf %100, %101 : vector<2x32xf32>
    %c0_42 = arith.constant 0 : index
    %c0_43 = arith.constant 0 : index
    %103 = vector.load %arg8[%c0_42, %c0_43] : memref<2x32xf32, #tpu.memory_space<vmem>>, vector<2x32xf32>
    %104 = arith.mulf %94, %103 : vector<2x32xf32>
    %105 = arith.mulf %88, %96 : vector<2x32xf32>
    %106 = arith.addf %104, %105 : vector<2x32xf32>
    %107 = math.tanh %106 : vector<2x32xf32>
    %108 = arith.mulf %102, %107 : vector<2x32xf32>
    %c0_44 = arith.constant 0 : index
    %c0_45 = arith.constant 0 : index
    %109 = vector.load %arg8[%c0_44, %c0_45] : memref<2x32xf32, #tpu.memory_space<vmem>>, vector<2x32xf32>
    tpu.vector_store %arg8[%c0_44, %c0_45], %106 {strides = array<i32>} : memref<2x32xf32, #tpu.memory_space<vmem>>, vector<2x32xf32>,
    %c0_46 = arith.constant 0 : index
    %c0_47 = arith.constant 0 : index
    %110 = vector.load %arg7[%c0_46, %c0_47] : memref<2x32xf32, #tpu.memory_space<vmem>>, vector<2x32xf32>
    tpu.vector_store %arg7[%c0_46, %c0_47], %108 {strides = array<i32>} : memref<2x32xf32, #tpu.memory_space<vmem>>, vector<2x32xf32>,
    %c3_i32 = arith.constant 3 : i32
    %111 = arith.index_cast %c3_i32 : i32 to index
    %c0_48 = arith.constant 0 : index
    %c0_49 = arith.constant 0 : index
    %112 = vector.load %arg2[%111, %c0_48, %c0_49] : memref<8x2x128xf32, #tpu.memory_space<vmem>>, vector<1x2x128xf32>
    %113 = vector.shape_cast %112 : vector<1x2x128xf32> to vector<2x128xf32>
    %c0_50 = arith.constant 0 : index
    %c0_51 = arith.constant 0 : index
    %114 = vector.load %arg7[%c0_50, %c0_51] : memref<2x32xf32, #tpu.memory_space<vmem>>, vector<2x32xf32>
    %115 = arith.truncf %114 : vector<2x32xf32> to vector<2x32xbf16>
    %c0_52 = arith.constant 0 : index
    %c0_53 = arith.constant 0 : index
    %116 = vector.load %arg3[%c0_52, %c0_53] : memref<32x128xbf16, #tpu.memory_space<vmem>>, vector<32x128xbf16>
    %cst_54 = arith.constant dense<0.000000e+00> : vector<2x128xf32>
    %117 = tpu.matmul %115, %116, %cst_54 {dimension_numbers = #tpu.dot_dimension_numbers<[1], [0], [0], [1], [0, 0, 1, 1], [], []>} : vector<2x32xbf16>, vector<32x128xbf16>, vector<2x128xf32> -> vector<2x128xf32>
    %118 = arith.addf %113, %117 : vector<2x128xf32>
    %119 = vector.extract_strided_slice %118 {offsets = [0, 0], sizes = [2, 32], strides = [1, 1]} : vector<2x128xf32> to vector<2x32xf32>
    %120 = arith.negf %119 : vector<2x32xf32>
    %121 = math.exp %120 : vector<2x32xf32>
    %cst_55 = arith.constant 1.000000e+00 : f32
    %122 = vector.broadcast %cst_55 : f32 to vector<2x32xf32>
    %123 = arith.addf %122, %121 : vector<2x32xf32>
    %124 = arith.divf %122, %123 : vector<2x32xf32>
    %125 = vector.extract_strided_slice %118 {offsets = [0, 32], sizes = [2, 32], strides = [1, 1]} : vector<2x128xf32> to vector<2x32xf32>
    %126 = arith.negf %125 : vector<2x32xf32>
    %127 = math.exp %126 : vector<2x32xf32>
    %cst_56 = arith.constant 1.000000e+00 : f32
    %128 = vector.broadcast %cst_56 : f32 to vector<2x32xf32>
    %129 = arith.addf %128, %127 : vector<2x32xf32>
    %130 = arith.divf %128, %129 : vector<2x32xf32>
    %131 = vector.extract_strided_slice %118 {offsets = [0, 64], sizes = [2, 32], strides = [1, 1]} : vector<2x128xf32> to vector<2x32xf32>
    %132 = math.tanh %131 : vector<2x32xf32>
    %133 = vector.extract_strided_slice %118 {offsets = [0, 96], sizes = [2, 32], strides = [1, 1]} : vector<2x128xf32> to vector<2x32xf32>
    %134 = arith.negf %133 : vector<2x32xf32>
    %135 = math.exp %134 : vector<2x32xf32>
    %cst_57 = arith.constant 1.000000e+00 : f32
    %136 = vector.broadcast %cst_57 : f32 to vector<2x32xf32>
    %137 = arith.addf %136, %135 : vector<2x32xf32>
    %138 = arith.divf %136, %137 : vector<2x32xf32>
    %c0_58 = arith.constant 0 : index
    %c0_59 = arith.constant 0 : index
    %139 = vector.load %arg8[%c0_58, %c0_59] : memref<2x32xf32, #tpu.memory_space<vmem>>, vector<2x32xf32>
    %140 = arith.mulf %130, %139 : vector<2x32xf32>
    %141 = arith.mulf %124, %132 : vector<2x32xf32>
    %142 = arith.addf %140, %141 : vector<2x32xf32>
    %143 = math.tanh %142 : vector<2x32xf32>
    %144 = arith.mulf %138, %143 : vector<2x32xf32>
    %c0_60 = arith.constant 0 : index
    %c0_61 = arith.constant 0 : index
    %145 = vector.load %arg8[%c0_60, %c0_61] : memref<2x32xf32, #tpu.memory_space<vmem>>, vector<2x32xf32>
    tpu.vector_store %arg8[%c0_60, %c0_61], %142 {strides = array<i32>} : memref<2x32xf32, #tpu.memory_space<vmem>>, vector<2x32xf32>,
    %c0_62 = arith.constant 0 : index
    %c0_63 = arith.constant 0 : index
    %146 = vector.load %arg7[%c0_62, %c0_63] : memref<2x32xf32, #tpu.memory_space<vmem>>, vector<2x32xf32>
    tpu.vector_store %arg7[%c0_62, %c0_63], %144 {strides = array<i32>} : memref<2x32xf32, #tpu.memory_space<vmem>>, vector<2x32xf32>,
    %c4_i32 = arith.constant 4 : i32
    %147 = arith.index_cast %c4_i32 : i32 to index
    %c0_64 = arith.constant 0 : index
    %c0_65 = arith.constant 0 : index
    %148 = vector.load %arg2[%147, %c0_64, %c0_65] : memref<8x2x128xf32, #tpu.memory_space<vmem>>, vector<1x2x128xf32>
    %149 = vector.shape_cast %148 : vector<1x2x128xf32> to vector<2x128xf32>
    %c0_66 = arith.constant 0 : index
    %c0_67 = arith.constant 0 : index
    %150 = vector.load %arg7[%c0_66, %c0_67] : memref<2x32xf32, #tpu.memory_space<vmem>>, vector<2x32xf32>
    %151 = arith.truncf %150 : vector<2x32xf32> to vector<2x32xbf16>
    %c0_68 = arith.constant 0 : index
    %c0_69 = arith.constant 0 : index
    %152 = vector.load %arg3[%c0_68, %c0_69] : memref<32x128xbf16, #tpu.memory_space<vmem>>, vector<32x128xbf16>
    %cst_70 = arith.constant dense<0.000000e+00> : vector<2x128xf32>
    %153 = tpu.matmul %151, %152, %cst_70 {dimension_numbers = #tpu.dot_dimension_numbers<[1], [0], [0], [1], [0, 0, 1, 1], [], []>} : vector<2x32xbf16>, vector<32x128xbf16>, vector<2x128xf32> -> vector<2x128xf32>
    %154 = arith.addf %149, %153 : vector<2x128xf32>
    %155 = vector.extract_strided_slice %154 {offsets = [0, 0], sizes = [2, 32], strides = [1, 1]} : vector<2x128xf32> to vector<2x32xf32>
    %156 = arith.negf %155 : vector<2x32xf32>
    %157 = math.exp %156 : vector<2x32xf32>
    %cst_71 = arith.constant 1.000000e+00 : f32
    %158 = vector.broadcast %cst_71 : f32 to vector<2x32xf32>
    %159 = arith.addf %158, %157 : vector<2x32xf32>
    %160 = arith.divf %158, %159 : vector<2x32xf32>
    %161 = vector.extract_strided_slice %154 {offsets = [0, 32], sizes = [2, 32], strides = [1, 1]} : vector<2x128xf32> to vector<2x32xf32>
    %162 = arith.negf %161 : vector<2x32xf32>
    %163 = math.exp %162 : vector<2x32xf32>
    %cst_72 = arith.constant 1.000000e+00 : f32
    %164 = vector.broadcast %cst_72 : f32 to vector<2x32xf32>
    %165 = arith.addf %164, %163 : vector<2x32xf32>
    %166 = arith.divf %164, %165 : vector<2x32xf32>
    %167 = vector.extract_strided_slice %154 {offsets = [0, 64], sizes = [2, 32], strides = [1, 1]} : vector<2x128xf32> to vector<2x32xf32>
    %168 = math.tanh %167 : vector<2x32xf32>
    %169 = vector.extract_strided_slice %154 {offsets = [0, 96], sizes = [2, 32], strides = [1, 1]} : vector<2x128xf32> to vector<2x32xf32>
    %170 = arith.negf %169 : vector<2x32xf32>
    %171 = math.exp %170 : vector<2x32xf32>
    %cst_73 = arith.constant 1.000000e+00 : f32
    %172 = vector.broadcast %cst_73 : f32 to vector<2x32xf32>
    %173 = arith.addf %172, %171 : vector<2x32xf32>
    %174 = arith.divf %172, %173 : vector<2x32xf32>
    %c0_74 = arith.constant 0 : index
    %c0_75 = arith.constant 0 : index
    %175 = vector.load %arg8[%c0_74, %c0_75] : memref<2x32xf32, #tpu.memory_space<vmem>>, vector<2x32xf32>
    %176 = arith.mulf %166, %175 : vector<2x32xf32>
    %177 = arith.mulf %160, %168 : vector<2x32xf32>
    %178 = arith.addf %176, %177 : vector<2x32xf32>
    %179 = math.tanh %178 : vector<2x32xf32>
    %180 = arith.mulf %174, %179 : vector<2x32xf32>
    %c0_76 = arith.constant 0 : index
    %c0_77 = arith.constant 0 : index
    %181 = vector.load %arg8[%c0_76, %c0_77] : memref<2x32xf32, #tpu.memory_space<vmem>>, vector<2x32xf32>
    tpu.vector_store %arg8[%c0_76, %c0_77], %178 {strides = array<i32>} : memref<2x32xf32, #tpu.memory_space<vmem>>, vector<2x32xf32>,
    %c0_78 = arith.constant 0 : index
    %c0_79 = arith.constant 0 : index
    %182 = vector.load %arg7[%c0_78, %c0_79] : memref<2x32xf32, #tpu.memory_space<vmem>>, vector<2x32xf32>
    tpu.vector_store %arg7[%c0_78, %c0_79], %180 {strides = array<i32>} : memref<2x32xf32, #tpu.memory_space<vmem>>, vector<2x32xf32>,
    %c5_i32 = arith.constant 5 : i32
    %183 = arith.index_cast %c5_i32 : i32 to index
    %c0_80 = arith.constant 0 : index
    %c0_81 = arith.constant 0 : index
    %184 = vector.load %arg2[%183, %c0_80, %c0_81] : memref<8x2x128xf32, #tpu.memory_space<vmem>>, vector<1x2x128xf32>
    %185 = vector.shape_cast %184 : vector<1x2x128xf32> to vector<2x128xf32>
    %c0_82 = arith.constant 0 : index
    %c0_83 = arith.constant 0 : index
    %186 = vector.load %arg7[%c0_82, %c0_83] : memref<2x32xf32, #tpu.memory_space<vmem>>, vector<2x32xf32>
    %187 = arith.truncf %186 : vector<2x32xf32> to vector<2x32xbf16>
    %c0_84 = arith.constant 0 : index
    %c0_85 = arith.constant 0 : index
    %188 = vector.load %arg3[%c0_84, %c0_85] : memref<32x128xbf16, #tpu.memory_space<vmem>>, vector<32x128xbf16>
    %cst_86 = arith.constant dense<0.000000e+00> : vector<2x128xf32>
    %189 = tpu.matmul %187, %188, %cst_86 {dimension_numbers = #tpu.dot_dimension_numbers<[1], [0], [0], [1], [0, 0, 1, 1], [], []>} : vector<2x32xbf16>, vector<32x128xbf16>, vector<2x128xf32> -> vector<2x128xf32>
    %190 = arith.addf %185, %189 : vector<2x128xf32>
    %191 = vector.extract_strided_slice %190 {offsets = [0, 0], sizes = [2, 32], strides = [1, 1]} : vector<2x128xf32> to vector<2x32xf32>
    %192 = arith.negf %191 : vector<2x32xf32>
    %193 = math.exp %192 : vector<2x32xf32>
    %cst_87 = arith.constant 1.000000e+00 : f32
    %194 = vector.broadcast %cst_87 : f32 to vector<2x32xf32>
    %195 = arith.addf %194, %193 : vector<2x32xf32>
    %196 = arith.divf %194, %195 : vector<2x32xf32>
    %197 = vector.extract_strided_slice %190 {offsets = [0, 32], sizes = [2, 32], strides = [1, 1]} : vector<2x128xf32> to vector<2x32xf32>
    %198 = arith.negf %197 : vector<2x32xf32>
    %199 = math.exp %198 : vector<2x32xf32>
    %cst_88 = arith.constant 1.000000e+00 : f32
    %200 = vector.broadcast %cst_88 : f32 to vector<2x32xf32>
    %201 = arith.addf %200, %199 : vector<2x32xf32>
    %202 = arith.divf %200, %201 : vector<2x32xf32>
    %203 = vector.extract_strided_slice %190 {offsets = [0, 64], sizes = [2, 32], strides = [1, 1]} : vector<2x128xf32> to vector<2x32xf32>
    %204 = math.tanh %203 : vector<2x32xf32>
    %205 = vector.extract_strided_slice %190 {offsets = [0, 96], sizes = [2, 32], strides = [1, 1]} : vector<2x128xf32> to vector<2x32xf32>
    %206 = arith.negf %205 : vector<2x32xf32>
    %207 = math.exp %206 : vector<2x32xf32>
    %cst_89 = arith.constant 1.000000e+00 : f32
    %208 = vector.broadcast %cst_89 : f32 to vector<2x32xf32>
    %209 = arith.addf %208, %207 : vector<2x32xf32>
    %210 = arith.divf %208, %209 : vector<2x32xf32>
    %c0_90 = arith.constant 0 : index
    %c0_91 = arith.constant 0 : index
    %211 = vector.load %arg8[%c0_90, %c0_91] : memref<2x32xf32, #tpu.memory_space<vmem>>, vector<2x32xf32>
    %212 = arith.mulf %202, %211 : vector<2x32xf32>
    %213 = arith.mulf %196, %204 : vector<2x32xf32>
    %214 = arith.addf %212, %213 : vector<2x32xf32>
    %215 = math.tanh %214 : vector<2x32xf32>
    %216 = arith.mulf %210, %215 : vector<2x32xf32>
    %c0_92 = arith.constant 0 : index
    %c0_93 = arith.constant 0 : index
    %217 = vector.load %arg8[%c0_92, %c0_93] : memref<2x32xf32, #tpu.memory_space<vmem>>, vector<2x32xf32>
    tpu.vector_store %arg8[%c0_92, %c0_93], %214 {strides = array<i32>} : memref<2x32xf32, #tpu.memory_space<vmem>>, vector<2x32xf32>,
    %c0_94 = arith.constant 0 : index
    %c0_95 = arith.constant 0 : index
    %218 = vector.load %arg7[%c0_94, %c0_95] : memref<2x32xf32, #tpu.memory_space<vmem>>, vector<2x32xf32>
    tpu.vector_store %arg7[%c0_94, %c0_95], %216 {strides = array<i32>} : memref<2x32xf32, #tpu.memory_space<vmem>>, vector<2x32xf32>,
    %c6_i32 = arith.constant 6 : i32
    %219 = arith.index_cast %c6_i32 : i32 to index
    %c0_96 = arith.constant 0 : index
    %c0_97 = arith.constant 0 : index
    %220 = vector.load %arg2[%219, %c0_96, %c0_97] : memref<8x2x128xf32, #tpu.memory_space<vmem>>, vector<1x2x128xf32>
    %221 = vector.shape_cast %220 : vector<1x2x128xf32> to vector<2x128xf32>
    %c0_98 = arith.constant 0 : index
    %c0_99 = arith.constant 0 : index
    %222 = vector.load %arg7[%c0_98, %c0_99] : memref<2x32xf32, #tpu.memory_space<vmem>>, vector<2x32xf32>
    %223 = arith.truncf %222 : vector<2x32xf32> to vector<2x32xbf16>
    %c0_100 = arith.constant 0 : index
    %c0_101 = arith.constant 0 : index
    %224 = vector.load %arg3[%c0_100, %c0_101] : memref<32x128xbf16, #tpu.memory_space<vmem>>, vector<32x128xbf16>
    %cst_102 = arith.constant dense<0.000000e+00> : vector<2x128xf32>
    %225 = tpu.matmul %223, %224, %cst_102 {dimension_numbers = #tpu.dot_dimension_numbers<[1], [0], [0], [1], [0, 0, 1, 1], [], []>} : vector<2x32xbf16>, vector<32x128xbf16>, vector<2x128xf32> -> vector<2x128xf32>
    %226 = arith.addf %221, %225 : vector<2x128xf32>
    %227 = vector.extract_strided_slice %226 {offsets = [0, 0], sizes = [2, 32], strides = [1, 1]} : vector<2x128xf32> to vector<2x32xf32>
    %228 = arith.negf %227 : vector<2x32xf32>
    %229 = math.exp %228 : vector<2x32xf32>
    %cst_103 = arith.constant 1.000000e+00 : f32
    %230 = vector.broadcast %cst_103 : f32 to vector<2x32xf32>
    %231 = arith.addf %230, %229 : vector<2x32xf32>
    %232 = arith.divf %230, %231 : vector<2x32xf32>
    %233 = vector.extract_strided_slice %226 {offsets = [0, 32], sizes = [2, 32], strides = [1, 1]} : vector<2x128xf32> to vector<2x32xf32>
    %234 = arith.negf %233 : vector<2x32xf32>
    %235 = math.exp %234 : vector<2x32xf32>
    %cst_104 = arith.constant 1.000000e+00 : f32
    %236 = vector.broadcast %cst_104 : f32 to vector<2x32xf32>
    %237 = arith.addf %236, %235 : vector<2x32xf32>
    %238 = arith.divf %236, %237 : vector<2x32xf32>
    %239 = vector.extract_strided_slice %226 {offsets = [0, 64], sizes = [2, 32], strides = [1, 1]} : vector<2x128xf32> to vector<2x32xf32>
    %240 = math.tanh %239 : vector<2x32xf32>
    %241 = vector.extract_strided_slice %226 {offsets = [0, 96], sizes = [2, 32], strides = [1, 1]} : vector<2x128xf32> to vector<2x32xf32>
    %242 = arith.negf %241 : vector<2x32xf32>
    %243 = math.exp %242 : vector<2x32xf32>
    %cst_105 = arith.constant 1.000000e+00 : f32
    %244 = vector.broadcast %cst_105 : f32 to vector<2x32xf32>
    %245 = arith.addf %244, %243 : vector<2x32xf32>
    %246 = arith.divf %244, %245 : vector<2x32xf32>
    %c0_106 = arith.constant 0 : index
    %c0_107 = arith.constant 0 : index
    %247 = vector.load %arg8[%c0_106, %c0_107] : memref<2x32xf32, #tpu.memory_space<vmem>>, vector<2x32xf32>
    %248 = arith.mulf %238, %247 : vector<2x32xf32>
    %249 = arith.mulf %232, %240 : vector<2x32xf32>
    %250 = arith.addf %248, %249 : vector<2x32xf32>
    %251 = math.tanh %250 : vector<2x32xf32>
    %252 = arith.mulf %246, %251 : vector<2x32xf32>
    %c0_108 = arith.constant 0 : index
    %c0_109 = arith.constant 0 : index
    %253 = vector.load %arg8[%c0_108, %c0_109] : memref<2x32xf32, #tpu.memory_space<vmem>>, vector<2x32xf32>
    tpu.vector_store %arg8[%c0_108, %c0_109], %250 {strides = array<i32>} : memref<2x32xf32, #tpu.memory_space<vmem>>, vector<2x32xf32>,
    %c0_110 = arith.constant 0 : index
    %c0_111 = arith.constant 0 : index
    %254 = vector.load %arg7[%c0_110, %c0_111] : memref<2x32xf32, #tpu.memory_space<vmem>>, vector<2x32xf32>
    tpu.vector_store %arg7[%c0_110, %c0_111], %252 {strides = array<i32>} : memref<2x32xf32, #tpu.memory_space<vmem>>, vector<2x32xf32>,
    %c7_i32 = arith.constant 7 : i32
    %255 = arith.index_cast %c7_i32 : i32 to index
    %c0_112 = arith.constant 0 : index
    %c0_113 = arith.constant 0 : index
    %256 = vector.load %arg2[%255, %c0_112, %c0_113] : memref<8x2x128xf32, #tpu.memory_space<vmem>>, vector<1x2x128xf32>
    %257 = vector.shape_cast %256 : vector<1x2x128xf32> to vector<2x128xf32>
    %c0_114 = arith.constant 0 : index
    %c0_115 = arith.constant 0 : index
    %258 = vector.load %arg7[%c0_114, %c0_115] : memref<2x32xf32, #tpu.memory_space<vmem>>, vector<2x32xf32>
    %259 = arith.truncf %258 : vector<2x32xf32> to vector<2x32xbf16>
    %c0_116 = arith.constant 0 : index
    %c0_117 = arith.constant 0 : index
    %260 = vector.load %arg3[%c0_116, %c0_117] : memref<32x128xbf16, #tpu.memory_space<vmem>>, vector<32x128xbf16>
    %cst_118 = arith.constant dense<0.000000e+00> : vector<2x128xf32>
    %261 = tpu.matmul %259, %260, %cst_118 {dimension_numbers = #tpu.dot_dimension_numbers<[1], [0], [0], [1], [0, 0, 1, 1], [], []>} : vector<2x32xbf16>, vector<32x128xbf16>, vector<2x128xf32> -> vector<2x128xf32>
    %262 = arith.addf %257, %261 : vector<2x128xf32>
    %263 = vector.extract_strided_slice %262 {offsets = [0, 0], sizes = [2, 32], strides = [1, 1]} : vector<2x128xf32> to vector<2x32xf32>
    %264 = arith.negf %263 : vector<2x32xf32>
    %265 = math.exp %264 : vector<2x32xf32>
    %cst_119 = arith.constant 1.000000e+00 : f32
    %266 = vector.broadcast %cst_119 : f32 to vector<2x32xf32>
    %267 = arith.addf %266, %265 : vector<2x32xf32>
    %268 = arith.divf %266, %267 : vector<2x32xf32>
    %269 = vector.extract_strided_slice %262 {offsets = [0, 32], sizes = [2, 32], strides = [1, 1]} : vector<2x128xf32> to vector<2x32xf32>
    %270 = arith.negf %269 : vector<2x32xf32>
    %271 = math.exp %270 : vector<2x32xf32>
    %cst_120 = arith.constant 1.000000e+00 : f32
    %272 = vector.broadcast %cst_120 : f32 to vector<2x32xf32>
    %273 = arith.addf %272, %271 : vector<2x32xf32>
    %274 = arith.divf %272, %273 : vector<2x32xf32>
    %275 = vector.extract_strided_slice %262 {offsets = [0, 64], sizes = [2, 32], strides = [1, 1]} : vector<2x128xf32> to vector<2x32xf32>
    %276 = math.tanh %275 : vector<2x32xf32>
    %277 = vector.extract_strided_slice %262 {offsets = [0, 96], sizes = [2, 32], strides = [1, 1]} : vector<2x128xf32> to vector<2x32xf32>
    %278 = arith.negf %277 : vector<2x32xf32>
    %279 = math.exp %278 : vector<2x32xf32>
    %cst_121 = arith.constant 1.000000e+00 : f32
    %280 = vector.broadcast %cst_121 : f32 to vector<2x32xf32>
    %281 = arith.addf %280, %279 : vector<2x32xf32>
    %282 = arith.divf %280, %281 : vector<2x32xf32>
    %c0_122 = arith.constant 0 : index
    %c0_123 = arith.constant 0 : index
    %283 = vector.load %arg8[%c0_122, %c0_123] : memref<2x32xf32, #tpu.memory_space<vmem>>, vector<2x32xf32>
    %284 = arith.mulf %274, %283 : vector<2x32xf32>
    %285 = arith.mulf %268, %276 : vector<2x32xf32>
    %286 = arith.addf %284, %285 : vector<2x32xf32>
    %287 = math.tanh %286 : vector<2x32xf32>
    %288 = arith.mulf %282, %287 : vector<2x32xf32>
    %c0_124 = arith.constant 0 : index
    %c0_125 = arith.constant 0 : index
    %289 = vector.load %arg8[%c0_124, %c0_125] : memref<2x32xf32, #tpu.memory_space<vmem>>, vector<2x32xf32>
    tpu.vector_store %arg8[%c0_124, %c0_125], %286 {strides = array<i32>} : memref<2x32xf32, #tpu.memory_space<vmem>>, vector<2x32xf32>,
    %c0_126 = arith.constant 0 : index
    %c0_127 = arith.constant 0 : index
    %290 = vector.load %arg7[%c0_126, %c0_127] : memref<2x32xf32, #tpu.memory_space<vmem>>, vector<2x32xf32>
    tpu.vector_store %arg7[%c0_126, %c0_127], %288 {strides = array<i32>} : memref<2x32xf32, #tpu.memory_space<vmem>>, vector<2x32xf32>,
    %c8_i32 = arith.constant 8 : i32
    %c0_i32_128 = arith.constant 0 : i32
    %291 = arith.cmpi eq, %arg1, %c0_i32_128 : i32
    %292 = arith.extui %291 : i1 to i32
    %c0_i32_129 = arith.constant 0 : i32
    %293 = arith.cmpi ne, %292, %c0_i32_129 : i32
    scf.if %293 {
      %c0_130 = arith.constant 0 : index
      %c0_131 = arith.constant 0 : index
      %294 = vector.load %arg7[%c0_130, %c0_131] : memref<2x32xf32, #tpu.memory_space<vmem>>, vector<2x32xf32>
      %c0_132 = arith.constant 0 : index
      %c0_133 = arith.constant 0 : index
      %295 = vector.load %arg4[%c0_132, %c0_133] : memref<1x32xf32, #tpu.memory_space<vmem>>, vector<1x32xf32>
      %296 = vector.broadcast %295 : vector<1x32xf32> to vector<2x32xf32>
      %297 = arith.mulf %294, %296 : vector<2x32xf32>
      %cst_134 = arith.constant dense<0.000000e+00> : vector<2xf32>
      %298 = vector.multi_reduction <add>, %297, %cst_134 [1] : vector<2x32xf32> to vector<2xf32>
      %299 = vector.shape_cast %298 : vector<2xf32> to vector<2x1xf32>
      %c0_135 = arith.constant 0 : index
      %c0_136 = arith.constant 0 : index
      %300 = vector.load %arg5[%c0_135, %c0_136] : memref<1x1xf32, #tpu.memory_space<vmem>>, vector<1x1xf32>
      %301 = vector.broadcast %300 : vector<1x1xf32> to vector<2x1xf32>
      %302 = arith.addf %299, %301 : vector<2x1xf32>
      %303 = arith.negf %302 : vector<2x1xf32>
      %304 = math.exp %303 : vector<2x1xf32>
      %cst_137 = arith.constant 1.000000e+00 : f32
      %305 = vector.broadcast %cst_137 : f32 to vector<2x1xf32>
      %306 = arith.addf %305, %304 : vector<2x1xf32>
      %307 = arith.divf %305, %306 : vector<2x1xf32>
      %c0_138 = arith.constant 0 : index
      %c0_139 = arith.constant 0 : index
      %308 = vector.load %arg6[%c0_138, %c0_139] : memref<2x1xf32, #tpu.memory_space<vmem>>, vector<2x1xf32>
      tpu.vector_store %arg6[%c0_138, %c0_139], %307 {strides = array<i32>} : memref<2x1xf32, #tpu.memory_space<vmem>>, vector<2x1xf32>,
    } else {
    }
    return
  }
  func.func @transform_0(%arg0: i32, %arg1: i32) -> (i32, i32, i32) {
    %c0_i32 = arith.constant 0 : i32
    %c0_i32_0 = arith.constant 0 : i32
    return %arg1, %arg0, %c0_i32 : i32, i32, i32
  }
  func.func @transform_1(%arg0: i32, %arg1: i32) -> (i32, i32) {
    %c0_i32 = arith.constant 0 : i32
    %c0_i32_0 = arith.constant 0 : i32
    %c0_i32_1 = arith.constant 0 : i32
    return %c0_i32, %c0_i32_0 : i32, i32
  }
  func.func @transform_2(%arg0: i32, %arg1: i32) -> (i32, i32) {
    %c0_i32 = arith.constant 0 : i32
    %c0_i32_0 = arith.constant 0 : i32
    %c0_i32_1 = arith.constant 0 : i32
    return %c0_i32, %c0_i32_0 : i32, i32
  }
  func.func @transform_3(%arg0: i32, %arg1: i32) -> (i32, i32) {
    %c0_i32 = arith.constant 0 : i32
    %c0_i32_0 = arith.constant 0 : i32
    %c0_i32_1 = arith.constant 0 : i32
    return %c0_i32, %c0_i32_0 : i32, i32
  }
  func.func @transform_4(%arg0: i32, %arg1: i32) -> (i32, i32) {
    %c0_i32 = arith.constant 0 : i32
    %c0_i32_0 = arith.constant 0 : i32
    return %arg0, %c0_i32 : i32, i32
  }
}

module attributes {stable_mosaic.version = 11 : i64} {
  func.func @_lstm_mid_kernel(%arg0: i32, %arg1: i32, %arg2: memref<8x2x128xf32, #tpu.memory_space<vmem>>, %arg3: memref<32x128xbf16, #tpu.memory_space<vmem>>, %arg4: memref<8x2x32xbf16, #tpu.memory_space<vmem>>, %arg5: memref<2x32xf32, #tpu.memory_space<vmem>>, %arg6: memref<2x32xf32, #tpu.memory_space<vmem>>) attributes {dimension_semantics = [#tpu.dimension_semantics<parallel>, #tpu.dimension_semantics<arbitrary>], iteration_bounds = array<i64: 1, 1>, scalar_prefetch = 0 : i64, scratch_operands = 2 : i64, tpu.core_type = #tpu.core_type<tc>, window_params = [{transform_indices = @transform_0, window_bounds = array<i64: 8, 2, 128>}, {pipeline_mode = #tpu.pipeline_mode<synchronous>, transform_indices = @transform_1, window_bounds = array<i64: 32, 128>}, {transform_indices = @transform_2, window_bounds = array<i64: 8, 2, 32>}]} {
    %c0_i32 = arith.constant 0 : i32
    %0 = arith.cmpi eq, %arg1, %c0_i32 : i32
    %1 = arith.extui %0 : i1 to i32
    %c0_i32_0 = arith.constant 0 : i32
    %2 = arith.cmpi ne, %1, %c0_i32_0 : i32
    scf.if %2 {
      %cst_144 = arith.constant 0.000000e+00 : f32
      %331 = vector.broadcast %cst_144 : f32 to vector<2x32xf32>
      %c0_145 = arith.constant 0 : index
      %c0_146 = arith.constant 0 : index
      %332 = vector.load %arg5[%c0_145, %c0_146] : memref<2x32xf32, #tpu.memory_space<vmem>>, vector<2x32xf32>
      tpu.vector_store %arg5[%c0_145, %c0_146], %331 {strides = array<i32>} : memref<2x32xf32, #tpu.memory_space<vmem>>, vector<2x32xf32>,
      %cst_147 = arith.constant 0.000000e+00 : f32
      %333 = vector.broadcast %cst_147 : f32 to vector<2x32xf32>
      %c0_148 = arith.constant 0 : index
      %c0_149 = arith.constant 0 : index
      %334 = vector.load %arg6[%c0_148, %c0_149] : memref<2x32xf32, #tpu.memory_space<vmem>>, vector<2x32xf32>
      tpu.vector_store %arg6[%c0_148, %c0_149], %333 {strides = array<i32>} : memref<2x32xf32, #tpu.memory_space<vmem>>, vector<2x32xf32>,
    } else {
    }
    %c0_i32_1 = arith.constant 0 : i32
    %3 = arith.index_cast %c0_i32_1 : i32 to index
    %c0 = arith.constant 0 : index
    %c0_2 = arith.constant 0 : index
    %4 = vector.load %arg2[%3, %c0, %c0_2] : memref<8x2x128xf32, #tpu.memory_space<vmem>>, vector<1x2x128xf32>
    %5 = vector.shape_cast %4 : vector<1x2x128xf32> to vector<2x128xf32>
    %c0_3 = arith.constant 0 : index
    %c0_4 = arith.constant 0 : index
    %6 = vector.load %arg5[%c0_3, %c0_4] : memref<2x32xf32, #tpu.memory_space<vmem>>, vector<2x32xf32>
    %7 = arith.truncf %6 : vector<2x32xf32> to vector<2x32xbf16>
    %c0_5 = arith.constant 0 : index
    %c0_6 = arith.constant 0 : index
    %8 = vector.load %arg3[%c0_5, %c0_6] : memref<32x128xbf16, #tpu.memory_space<vmem>>, vector<32x128xbf16>
    %cst = arith.constant dense<0.000000e+00> : vector<2x128xf32>
    %9 = tpu.matmul %7, %8, %cst {dimension_numbers = #tpu.dot_dimension_numbers<[1], [0], [0], [1], [0, 0, 1, 1], [], []>} : vector<2x32xbf16>, vector<32x128xbf16>, vector<2x128xf32> -> vector<2x128xf32>
    %10 = arith.addf %5, %9 : vector<2x128xf32>
    %11 = vector.extract_strided_slice %10 {offsets = [0, 0], sizes = [2, 32], strides = [1, 1]} : vector<2x128xf32> to vector<2x32xf32>
    %12 = arith.negf %11 : vector<2x32xf32>
    %13 = math.exp %12 : vector<2x32xf32>
    %cst_7 = arith.constant 1.000000e+00 : f32
    %14 = vector.broadcast %cst_7 : f32 to vector<2x32xf32>
    %15 = arith.addf %14, %13 : vector<2x32xf32>
    %16 = arith.divf %14, %15 : vector<2x32xf32>
    %17 = vector.extract_strided_slice %10 {offsets = [0, 32], sizes = [2, 32], strides = [1, 1]} : vector<2x128xf32> to vector<2x32xf32>
    %18 = arith.negf %17 : vector<2x32xf32>
    %19 = math.exp %18 : vector<2x32xf32>
    %cst_8 = arith.constant 1.000000e+00 : f32
    %20 = vector.broadcast %cst_8 : f32 to vector<2x32xf32>
    %21 = arith.addf %20, %19 : vector<2x32xf32>
    %22 = arith.divf %20, %21 : vector<2x32xf32>
    %23 = vector.extract_strided_slice %10 {offsets = [0, 64], sizes = [2, 32], strides = [1, 1]} : vector<2x128xf32> to vector<2x32xf32>
    %24 = math.tanh %23 : vector<2x32xf32>
    %25 = vector.extract_strided_slice %10 {offsets = [0, 96], sizes = [2, 32], strides = [1, 1]} : vector<2x128xf32> to vector<2x32xf32>
    %26 = arith.negf %25 : vector<2x32xf32>
    %27 = math.exp %26 : vector<2x32xf32>
    %cst_9 = arith.constant 1.000000e+00 : f32
    %28 = vector.broadcast %cst_9 : f32 to vector<2x32xf32>
    %29 = arith.addf %28, %27 : vector<2x32xf32>
    %30 = arith.divf %28, %29 : vector<2x32xf32>
    %c0_10 = arith.constant 0 : index
    %c0_11 = arith.constant 0 : index
    %31 = vector.load %arg6[%c0_10, %c0_11] : memref<2x32xf32, #tpu.memory_space<vmem>>, vector<2x32xf32>
    %32 = arith.mulf %22, %31 : vector<2x32xf32>
    %33 = arith.mulf %16, %24 : vector<2x32xf32>
    %34 = arith.addf %32, %33 : vector<2x32xf32>
    %35 = math.tanh %34 : vector<2x32xf32>
    %36 = arith.mulf %30, %35 : vector<2x32xf32>
    %c0_12 = arith.constant 0 : index
    %c0_13 = arith.constant 0 : index
    %37 = vector.load %arg6[%c0_12, %c0_13] : memref<2x32xf32, #tpu.memory_space<vmem>>, vector<2x32xf32>
    tpu.vector_store %arg6[%c0_12, %c0_13], %34 {strides = array<i32>} : memref<2x32xf32, #tpu.memory_space<vmem>>, vector<2x32xf32>,
    %c0_14 = arith.constant 0 : index
    %c0_15 = arith.constant 0 : index
    %38 = vector.load %arg5[%c0_14, %c0_15] : memref<2x32xf32, #tpu.memory_space<vmem>>, vector<2x32xf32>
    tpu.vector_store %arg5[%c0_14, %c0_15], %36 {strides = array<i32>} : memref<2x32xf32, #tpu.memory_space<vmem>>, vector<2x32xf32>,
    %39 = arith.truncf %36 : vector<2x32xf32> to vector<2x32xbf16>
    %40 = arith.index_cast %c0_i32_1 : i32 to index
    %c0_16 = arith.constant 0 : index
    %c0_17 = arith.constant 0 : index
    %41 = vector.load %arg4[%40, %c0_16, %c0_17] : memref<8x2x32xbf16, #tpu.memory_space<vmem>>, vector<1x2x32xbf16>
    %42 = vector.shape_cast %41 : vector<1x2x32xbf16> to vector<2x32xbf16>
    %43 = vector.shape_cast %39 : vector<2x32xbf16> to vector<1x2x32xbf16>
    tpu.vector_store %arg4[%40, %c0_16, %c0_17], %43 {strides = array<i32>} : memref<8x2x32xbf16, #tpu.memory_space<vmem>>, vector<1x2x32xbf16>,
    %c1_i32 = arith.constant 1 : i32
    %44 = arith.index_cast %c1_i32 : i32 to index
    %c0_18 = arith.constant 0 : index
    %c0_19 = arith.constant 0 : index
    %45 = vector.load %arg2[%44, %c0_18, %c0_19] : memref<8x2x128xf32, #tpu.memory_space<vmem>>, vector<1x2x128xf32>
    %46 = vector.shape_cast %45 : vector<1x2x128xf32> to vector<2x128xf32>
    %c0_20 = arith.constant 0 : index
    %c0_21 = arith.constant 0 : index
    %47 = vector.load %arg5[%c0_20, %c0_21] : memref<2x32xf32, #tpu.memory_space<vmem>>, vector<2x32xf32>
    %48 = arith.truncf %47 : vector<2x32xf32> to vector<2x32xbf16>
    %c0_22 = arith.constant 0 : index
    %c0_23 = arith.constant 0 : index
    %49 = vector.load %arg3[%c0_22, %c0_23] : memref<32x128xbf16, #tpu.memory_space<vmem>>, vector<32x128xbf16>
    %cst_24 = arith.constant dense<0.000000e+00> : vector<2x128xf32>
    %50 = tpu.matmul %48, %49, %cst_24 {dimension_numbers = #tpu.dot_dimension_numbers<[1], [0], [0], [1], [0, 0, 1, 1], [], []>} : vector<2x32xbf16>, vector<32x128xbf16>, vector<2x128xf32> -> vector<2x128xf32>
    %51 = arith.addf %46, %50 : vector<2x128xf32>
    %52 = vector.extract_strided_slice %51 {offsets = [0, 0], sizes = [2, 32], strides = [1, 1]} : vector<2x128xf32> to vector<2x32xf32>
    %53 = arith.negf %52 : vector<2x32xf32>
    %54 = math.exp %53 : vector<2x32xf32>
    %cst_25 = arith.constant 1.000000e+00 : f32
    %55 = vector.broadcast %cst_25 : f32 to vector<2x32xf32>
    %56 = arith.addf %55, %54 : vector<2x32xf32>
    %57 = arith.divf %55, %56 : vector<2x32xf32>
    %58 = vector.extract_strided_slice %51 {offsets = [0, 32], sizes = [2, 32], strides = [1, 1]} : vector<2x128xf32> to vector<2x32xf32>
    %59 = arith.negf %58 : vector<2x32xf32>
    %60 = math.exp %59 : vector<2x32xf32>
    %cst_26 = arith.constant 1.000000e+00 : f32
    %61 = vector.broadcast %cst_26 : f32 to vector<2x32xf32>
    %62 = arith.addf %61, %60 : vector<2x32xf32>
    %63 = arith.divf %61, %62 : vector<2x32xf32>
    %64 = vector.extract_strided_slice %51 {offsets = [0, 64], sizes = [2, 32], strides = [1, 1]} : vector<2x128xf32> to vector<2x32xf32>
    %65 = math.tanh %64 : vector<2x32xf32>
    %66 = vector.extract_strided_slice %51 {offsets = [0, 96], sizes = [2, 32], strides = [1, 1]} : vector<2x128xf32> to vector<2x32xf32>
    %67 = arith.negf %66 : vector<2x32xf32>
    %68 = math.exp %67 : vector<2x32xf32>
    %cst_27 = arith.constant 1.000000e+00 : f32
    %69 = vector.broadcast %cst_27 : f32 to vector<2x32xf32>
    %70 = arith.addf %69, %68 : vector<2x32xf32>
    %71 = arith.divf %69, %70 : vector<2x32xf32>
    %c0_28 = arith.constant 0 : index
    %c0_29 = arith.constant 0 : index
    %72 = vector.load %arg6[%c0_28, %c0_29] : memref<2x32xf32, #tpu.memory_space<vmem>>, vector<2x32xf32>
    %73 = arith.mulf %63, %72 : vector<2x32xf32>
    %74 = arith.mulf %57, %65 : vector<2x32xf32>
    %75 = arith.addf %73, %74 : vector<2x32xf32>
    %76 = math.tanh %75 : vector<2x32xf32>
    %77 = arith.mulf %71, %76 : vector<2x32xf32>
    %c0_30 = arith.constant 0 : index
    %c0_31 = arith.constant 0 : index
    %78 = vector.load %arg6[%c0_30, %c0_31] : memref<2x32xf32, #tpu.memory_space<vmem>>, vector<2x32xf32>
    tpu.vector_store %arg6[%c0_30, %c0_31], %75 {strides = array<i32>} : memref<2x32xf32, #tpu.memory_space<vmem>>, vector<2x32xf32>,
    %c0_32 = arith.constant 0 : index
    %c0_33 = arith.constant 0 : index
    %79 = vector.load %arg5[%c0_32, %c0_33] : memref<2x32xf32, #tpu.memory_space<vmem>>, vector<2x32xf32>
    tpu.vector_store %arg5[%c0_32, %c0_33], %77 {strides = array<i32>} : memref<2x32xf32, #tpu.memory_space<vmem>>, vector<2x32xf32>,
    %80 = arith.truncf %77 : vector<2x32xf32> to vector<2x32xbf16>
    %81 = arith.index_cast %c1_i32 : i32 to index
    %c0_34 = arith.constant 0 : index
    %c0_35 = arith.constant 0 : index
    %82 = vector.load %arg4[%81, %c0_34, %c0_35] : memref<8x2x32xbf16, #tpu.memory_space<vmem>>, vector<1x2x32xbf16>
    %83 = vector.shape_cast %82 : vector<1x2x32xbf16> to vector<2x32xbf16>
    %84 = vector.shape_cast %80 : vector<2x32xbf16> to vector<1x2x32xbf16>
    tpu.vector_store %arg4[%81, %c0_34, %c0_35], %84 {strides = array<i32>} : memref<8x2x32xbf16, #tpu.memory_space<vmem>>, vector<1x2x32xbf16>,
    %c2_i32 = arith.constant 2 : i32
    %85 = arith.index_cast %c2_i32 : i32 to index
    %c0_36 = arith.constant 0 : index
    %c0_37 = arith.constant 0 : index
    %86 = vector.load %arg2[%85, %c0_36, %c0_37] : memref<8x2x128xf32, #tpu.memory_space<vmem>>, vector<1x2x128xf32>
    %87 = vector.shape_cast %86 : vector<1x2x128xf32> to vector<2x128xf32>
    %c0_38 = arith.constant 0 : index
    %c0_39 = arith.constant 0 : index
    %88 = vector.load %arg5[%c0_38, %c0_39] : memref<2x32xf32, #tpu.memory_space<vmem>>, vector<2x32xf32>
    %89 = arith.truncf %88 : vector<2x32xf32> to vector<2x32xbf16>
    %c0_40 = arith.constant 0 : index
    %c0_41 = arith.constant 0 : index
    %90 = vector.load %arg3[%c0_40, %c0_41] : memref<32x128xbf16, #tpu.memory_space<vmem>>, vector<32x128xbf16>
    %cst_42 = arith.constant dense<0.000000e+00> : vector<2x128xf32>
    %91 = tpu.matmul %89, %90, %cst_42 {dimension_numbers = #tpu.dot_dimension_numbers<[1], [0], [0], [1], [0, 0, 1, 1], [], []>} : vector<2x32xbf16>, vector<32x128xbf16>, vector<2x128xf32> -> vector<2x128xf32>
    %92 = arith.addf %87, %91 : vector<2x128xf32>
    %93 = vector.extract_strided_slice %92 {offsets = [0, 0], sizes = [2, 32], strides = [1, 1]} : vector<2x128xf32> to vector<2x32xf32>
    %94 = arith.negf %93 : vector<2x32xf32>
    %95 = math.exp %94 : vector<2x32xf32>
    %cst_43 = arith.constant 1.000000e+00 : f32
    %96 = vector.broadcast %cst_43 : f32 to vector<2x32xf32>
    %97 = arith.addf %96, %95 : vector<2x32xf32>
    %98 = arith.divf %96, %97 : vector<2x32xf32>
    %99 = vector.extract_strided_slice %92 {offsets = [0, 32], sizes = [2, 32], strides = [1, 1]} : vector<2x128xf32> to vector<2x32xf32>
    %100 = arith.negf %99 : vector<2x32xf32>
    %101 = math.exp %100 : vector<2x32xf32>
    %cst_44 = arith.constant 1.000000e+00 : f32
    %102 = vector.broadcast %cst_44 : f32 to vector<2x32xf32>
    %103 = arith.addf %102, %101 : vector<2x32xf32>
    %104 = arith.divf %102, %103 : vector<2x32xf32>
    %105 = vector.extract_strided_slice %92 {offsets = [0, 64], sizes = [2, 32], strides = [1, 1]} : vector<2x128xf32> to vector<2x32xf32>
    %106 = math.tanh %105 : vector<2x32xf32>
    %107 = vector.extract_strided_slice %92 {offsets = [0, 96], sizes = [2, 32], strides = [1, 1]} : vector<2x128xf32> to vector<2x32xf32>
    %108 = arith.negf %107 : vector<2x32xf32>
    %109 = math.exp %108 : vector<2x32xf32>
    %cst_45 = arith.constant 1.000000e+00 : f32
    %110 = vector.broadcast %cst_45 : f32 to vector<2x32xf32>
    %111 = arith.addf %110, %109 : vector<2x32xf32>
    %112 = arith.divf %110, %111 : vector<2x32xf32>
    %c0_46 = arith.constant 0 : index
    %c0_47 = arith.constant 0 : index
    %113 = vector.load %arg6[%c0_46, %c0_47] : memref<2x32xf32, #tpu.memory_space<vmem>>, vector<2x32xf32>
    %114 = arith.mulf %104, %113 : vector<2x32xf32>
    %115 = arith.mulf %98, %106 : vector<2x32xf32>
    %116 = arith.addf %114, %115 : vector<2x32xf32>
    %117 = math.tanh %116 : vector<2x32xf32>
    %118 = arith.mulf %112, %117 : vector<2x32xf32>
    %c0_48 = arith.constant 0 : index
    %c0_49 = arith.constant 0 : index
    %119 = vector.load %arg6[%c0_48, %c0_49] : memref<2x32xf32, #tpu.memory_space<vmem>>, vector<2x32xf32>
    tpu.vector_store %arg6[%c0_48, %c0_49], %116 {strides = array<i32>} : memref<2x32xf32, #tpu.memory_space<vmem>>, vector<2x32xf32>,
    %c0_50 = arith.constant 0 : index
    %c0_51 = arith.constant 0 : index
    %120 = vector.load %arg5[%c0_50, %c0_51] : memref<2x32xf32, #tpu.memory_space<vmem>>, vector<2x32xf32>
    tpu.vector_store %arg5[%c0_50, %c0_51], %118 {strides = array<i32>} : memref<2x32xf32, #tpu.memory_space<vmem>>, vector<2x32xf32>,
    %121 = arith.truncf %118 : vector<2x32xf32> to vector<2x32xbf16>
    %122 = arith.index_cast %c2_i32 : i32 to index
    %c0_52 = arith.constant 0 : index
    %c0_53 = arith.constant 0 : index
    %123 = vector.load %arg4[%122, %c0_52, %c0_53] : memref<8x2x32xbf16, #tpu.memory_space<vmem>>, vector<1x2x32xbf16>
    %124 = vector.shape_cast %123 : vector<1x2x32xbf16> to vector<2x32xbf16>
    %125 = vector.shape_cast %121 : vector<2x32xbf16> to vector<1x2x32xbf16>
    tpu.vector_store %arg4[%122, %c0_52, %c0_53], %125 {strides = array<i32>} : memref<8x2x32xbf16, #tpu.memory_space<vmem>>, vector<1x2x32xbf16>,
    %c3_i32 = arith.constant 3 : i32
    %126 = arith.index_cast %c3_i32 : i32 to index
    %c0_54 = arith.constant 0 : index
    %c0_55 = arith.constant 0 : index
    %127 = vector.load %arg2[%126, %c0_54, %c0_55] : memref<8x2x128xf32, #tpu.memory_space<vmem>>, vector<1x2x128xf32>
    %128 = vector.shape_cast %127 : vector<1x2x128xf32> to vector<2x128xf32>
    %c0_56 = arith.constant 0 : index
    %c0_57 = arith.constant 0 : index
    %129 = vector.load %arg5[%c0_56, %c0_57] : memref<2x32xf32, #tpu.memory_space<vmem>>, vector<2x32xf32>
    %130 = arith.truncf %129 : vector<2x32xf32> to vector<2x32xbf16>
    %c0_58 = arith.constant 0 : index
    %c0_59 = arith.constant 0 : index
    %131 = vector.load %arg3[%c0_58, %c0_59] : memref<32x128xbf16, #tpu.memory_space<vmem>>, vector<32x128xbf16>
    %cst_60 = arith.constant dense<0.000000e+00> : vector<2x128xf32>
    %132 = tpu.matmul %130, %131, %cst_60 {dimension_numbers = #tpu.dot_dimension_numbers<[1], [0], [0], [1], [0, 0, 1, 1], [], []>} : vector<2x32xbf16>, vector<32x128xbf16>, vector<2x128xf32> -> vector<2x128xf32>
    %133 = arith.addf %128, %132 : vector<2x128xf32>
    %134 = vector.extract_strided_slice %133 {offsets = [0, 0], sizes = [2, 32], strides = [1, 1]} : vector<2x128xf32> to vector<2x32xf32>
    %135 = arith.negf %134 : vector<2x32xf32>
    %136 = math.exp %135 : vector<2x32xf32>
    %cst_61 = arith.constant 1.000000e+00 : f32
    %137 = vector.broadcast %cst_61 : f32 to vector<2x32xf32>
    %138 = arith.addf %137, %136 : vector<2x32xf32>
    %139 = arith.divf %137, %138 : vector<2x32xf32>
    %140 = vector.extract_strided_slice %133 {offsets = [0, 32], sizes = [2, 32], strides = [1, 1]} : vector<2x128xf32> to vector<2x32xf32>
    %141 = arith.negf %140 : vector<2x32xf32>
    %142 = math.exp %141 : vector<2x32xf32>
    %cst_62 = arith.constant 1.000000e+00 : f32
    %143 = vector.broadcast %cst_62 : f32 to vector<2x32xf32>
    %144 = arith.addf %143, %142 : vector<2x32xf32>
    %145 = arith.divf %143, %144 : vector<2x32xf32>
    %146 = vector.extract_strided_slice %133 {offsets = [0, 64], sizes = [2, 32], strides = [1, 1]} : vector<2x128xf32> to vector<2x32xf32>
    %147 = math.tanh %146 : vector<2x32xf32>
    %148 = vector.extract_strided_slice %133 {offsets = [0, 96], sizes = [2, 32], strides = [1, 1]} : vector<2x128xf32> to vector<2x32xf32>
    %149 = arith.negf %148 : vector<2x32xf32>
    %150 = math.exp %149 : vector<2x32xf32>
    %cst_63 = arith.constant 1.000000e+00 : f32
    %151 = vector.broadcast %cst_63 : f32 to vector<2x32xf32>
    %152 = arith.addf %151, %150 : vector<2x32xf32>
    %153 = arith.divf %151, %152 : vector<2x32xf32>
    %c0_64 = arith.constant 0 : index
    %c0_65 = arith.constant 0 : index
    %154 = vector.load %arg6[%c0_64, %c0_65] : memref<2x32xf32, #tpu.memory_space<vmem>>, vector<2x32xf32>
    %155 = arith.mulf %145, %154 : vector<2x32xf32>
    %156 = arith.mulf %139, %147 : vector<2x32xf32>
    %157 = arith.addf %155, %156 : vector<2x32xf32>
    %158 = math.tanh %157 : vector<2x32xf32>
    %159 = arith.mulf %153, %158 : vector<2x32xf32>
    %c0_66 = arith.constant 0 : index
    %c0_67 = arith.constant 0 : index
    %160 = vector.load %arg6[%c0_66, %c0_67] : memref<2x32xf32, #tpu.memory_space<vmem>>, vector<2x32xf32>
    tpu.vector_store %arg6[%c0_66, %c0_67], %157 {strides = array<i32>} : memref<2x32xf32, #tpu.memory_space<vmem>>, vector<2x32xf32>,
    %c0_68 = arith.constant 0 : index
    %c0_69 = arith.constant 0 : index
    %161 = vector.load %arg5[%c0_68, %c0_69] : memref<2x32xf32, #tpu.memory_space<vmem>>, vector<2x32xf32>
    tpu.vector_store %arg5[%c0_68, %c0_69], %159 {strides = array<i32>} : memref<2x32xf32, #tpu.memory_space<vmem>>, vector<2x32xf32>,
    %162 = arith.truncf %159 : vector<2x32xf32> to vector<2x32xbf16>
    %163 = arith.index_cast %c3_i32 : i32 to index
    %c0_70 = arith.constant 0 : index
    %c0_71 = arith.constant 0 : index
    %164 = vector.load %arg4[%163, %c0_70, %c0_71] : memref<8x2x32xbf16, #tpu.memory_space<vmem>>, vector<1x2x32xbf16>
    %165 = vector.shape_cast %164 : vector<1x2x32xbf16> to vector<2x32xbf16>
    %166 = vector.shape_cast %162 : vector<2x32xbf16> to vector<1x2x32xbf16>
    tpu.vector_store %arg4[%163, %c0_70, %c0_71], %166 {strides = array<i32>} : memref<8x2x32xbf16, #tpu.memory_space<vmem>>, vector<1x2x32xbf16>,
    %c4_i32 = arith.constant 4 : i32
    %167 = arith.index_cast %c4_i32 : i32 to index
    %c0_72 = arith.constant 0 : index
    %c0_73 = arith.constant 0 : index
    %168 = vector.load %arg2[%167, %c0_72, %c0_73] : memref<8x2x128xf32, #tpu.memory_space<vmem>>, vector<1x2x128xf32>
    %169 = vector.shape_cast %168 : vector<1x2x128xf32> to vector<2x128xf32>
    %c0_74 = arith.constant 0 : index
    %c0_75 = arith.constant 0 : index
    %170 = vector.load %arg5[%c0_74, %c0_75] : memref<2x32xf32, #tpu.memory_space<vmem>>, vector<2x32xf32>
    %171 = arith.truncf %170 : vector<2x32xf32> to vector<2x32xbf16>
    %c0_76 = arith.constant 0 : index
    %c0_77 = arith.constant 0 : index
    %172 = vector.load %arg3[%c0_76, %c0_77] : memref<32x128xbf16, #tpu.memory_space<vmem>>, vector<32x128xbf16>
    %cst_78 = arith.constant dense<0.000000e+00> : vector<2x128xf32>
    %173 = tpu.matmul %171, %172, %cst_78 {dimension_numbers = #tpu.dot_dimension_numbers<[1], [0], [0], [1], [0, 0, 1, 1], [], []>} : vector<2x32xbf16>, vector<32x128xbf16>, vector<2x128xf32> -> vector<2x128xf32>
    %174 = arith.addf %169, %173 : vector<2x128xf32>
    %175 = vector.extract_strided_slice %174 {offsets = [0, 0], sizes = [2, 32], strides = [1, 1]} : vector<2x128xf32> to vector<2x32xf32>
    %176 = arith.negf %175 : vector<2x32xf32>
    %177 = math.exp %176 : vector<2x32xf32>
    %cst_79 = arith.constant 1.000000e+00 : f32
    %178 = vector.broadcast %cst_79 : f32 to vector<2x32xf32>
    %179 = arith.addf %178, %177 : vector<2x32xf32>
    %180 = arith.divf %178, %179 : vector<2x32xf32>
    %181 = vector.extract_strided_slice %174 {offsets = [0, 32], sizes = [2, 32], strides = [1, 1]} : vector<2x128xf32> to vector<2x32xf32>
    %182 = arith.negf %181 : vector<2x32xf32>
    %183 = math.exp %182 : vector<2x32xf32>
    %cst_80 = arith.constant 1.000000e+00 : f32
    %184 = vector.broadcast %cst_80 : f32 to vector<2x32xf32>
    %185 = arith.addf %184, %183 : vector<2x32xf32>
    %186 = arith.divf %184, %185 : vector<2x32xf32>
    %187 = vector.extract_strided_slice %174 {offsets = [0, 64], sizes = [2, 32], strides = [1, 1]} : vector<2x128xf32> to vector<2x32xf32>
    %188 = math.tanh %187 : vector<2x32xf32>
    %189 = vector.extract_strided_slice %174 {offsets = [0, 96], sizes = [2, 32], strides = [1, 1]} : vector<2x128xf32> to vector<2x32xf32>
    %190 = arith.negf %189 : vector<2x32xf32>
    %191 = math.exp %190 : vector<2x32xf32>
    %cst_81 = arith.constant 1.000000e+00 : f32
    %192 = vector.broadcast %cst_81 : f32 to vector<2x32xf32>
    %193 = arith.addf %192, %191 : vector<2x32xf32>
    %194 = arith.divf %192, %193 : vector<2x32xf32>
    %c0_82 = arith.constant 0 : index
    %c0_83 = arith.constant 0 : index
    %195 = vector.load %arg6[%c0_82, %c0_83] : memref<2x32xf32, #tpu.memory_space<vmem>>, vector<2x32xf32>
    %196 = arith.mulf %186, %195 : vector<2x32xf32>
    %197 = arith.mulf %180, %188 : vector<2x32xf32>
    %198 = arith.addf %196, %197 : vector<2x32xf32>
    %199 = math.tanh %198 : vector<2x32xf32>
    %200 = arith.mulf %194, %199 : vector<2x32xf32>
    %c0_84 = arith.constant 0 : index
    %c0_85 = arith.constant 0 : index
    %201 = vector.load %arg6[%c0_84, %c0_85] : memref<2x32xf32, #tpu.memory_space<vmem>>, vector<2x32xf32>
    tpu.vector_store %arg6[%c0_84, %c0_85], %198 {strides = array<i32>} : memref<2x32xf32, #tpu.memory_space<vmem>>, vector<2x32xf32>,
    %c0_86 = arith.constant 0 : index
    %c0_87 = arith.constant 0 : index
    %202 = vector.load %arg5[%c0_86, %c0_87] : memref<2x32xf32, #tpu.memory_space<vmem>>, vector<2x32xf32>
    tpu.vector_store %arg5[%c0_86, %c0_87], %200 {strides = array<i32>} : memref<2x32xf32, #tpu.memory_space<vmem>>, vector<2x32xf32>,
    %203 = arith.truncf %200 : vector<2x32xf32> to vector<2x32xbf16>
    %204 = arith.index_cast %c4_i32 : i32 to index
    %c0_88 = arith.constant 0 : index
    %c0_89 = arith.constant 0 : index
    %205 = vector.load %arg4[%204, %c0_88, %c0_89] : memref<8x2x32xbf16, #tpu.memory_space<vmem>>, vector<1x2x32xbf16>
    %206 = vector.shape_cast %205 : vector<1x2x32xbf16> to vector<2x32xbf16>
    %207 = vector.shape_cast %203 : vector<2x32xbf16> to vector<1x2x32xbf16>
    tpu.vector_store %arg4[%204, %c0_88, %c0_89], %207 {strides = array<i32>} : memref<8x2x32xbf16, #tpu.memory_space<vmem>>, vector<1x2x32xbf16>,
    %c5_i32 = arith.constant 5 : i32
    %208 = arith.index_cast %c5_i32 : i32 to index
    %c0_90 = arith.constant 0 : index
    %c0_91 = arith.constant 0 : index
    %209 = vector.load %arg2[%208, %c0_90, %c0_91] : memref<8x2x128xf32, #tpu.memory_space<vmem>>, vector<1x2x128xf32>
    %210 = vector.shape_cast %209 : vector<1x2x128xf32> to vector<2x128xf32>
    %c0_92 = arith.constant 0 : index
    %c0_93 = arith.constant 0 : index
    %211 = vector.load %arg5[%c0_92, %c0_93] : memref<2x32xf32, #tpu.memory_space<vmem>>, vector<2x32xf32>
    %212 = arith.truncf %211 : vector<2x32xf32> to vector<2x32xbf16>
    %c0_94 = arith.constant 0 : index
    %c0_95 = arith.constant 0 : index
    %213 = vector.load %arg3[%c0_94, %c0_95] : memref<32x128xbf16, #tpu.memory_space<vmem>>, vector<32x128xbf16>
    %cst_96 = arith.constant dense<0.000000e+00> : vector<2x128xf32>
    %214 = tpu.matmul %212, %213, %cst_96 {dimension_numbers = #tpu.dot_dimension_numbers<[1], [0], [0], [1], [0, 0, 1, 1], [], []>} : vector<2x32xbf16>, vector<32x128xbf16>, vector<2x128xf32> -> vector<2x128xf32>
    %215 = arith.addf %210, %214 : vector<2x128xf32>
    %216 = vector.extract_strided_slice %215 {offsets = [0, 0], sizes = [2, 32], strides = [1, 1]} : vector<2x128xf32> to vector<2x32xf32>
    %217 = arith.negf %216 : vector<2x32xf32>
    %218 = math.exp %217 : vector<2x32xf32>
    %cst_97 = arith.constant 1.000000e+00 : f32
    %219 = vector.broadcast %cst_97 : f32 to vector<2x32xf32>
    %220 = arith.addf %219, %218 : vector<2x32xf32>
    %221 = arith.divf %219, %220 : vector<2x32xf32>
    %222 = vector.extract_strided_slice %215 {offsets = [0, 32], sizes = [2, 32], strides = [1, 1]} : vector<2x128xf32> to vector<2x32xf32>
    %223 = arith.negf %222 : vector<2x32xf32>
    %224 = math.exp %223 : vector<2x32xf32>
    %cst_98 = arith.constant 1.000000e+00 : f32
    %225 = vector.broadcast %cst_98 : f32 to vector<2x32xf32>
    %226 = arith.addf %225, %224 : vector<2x32xf32>
    %227 = arith.divf %225, %226 : vector<2x32xf32>
    %228 = vector.extract_strided_slice %215 {offsets = [0, 64], sizes = [2, 32], strides = [1, 1]} : vector<2x128xf32> to vector<2x32xf32>
    %229 = math.tanh %228 : vector<2x32xf32>
    %230 = vector.extract_strided_slice %215 {offsets = [0, 96], sizes = [2, 32], strides = [1, 1]} : vector<2x128xf32> to vector<2x32xf32>
    %231 = arith.negf %230 : vector<2x32xf32>
    %232 = math.exp %231 : vector<2x32xf32>
    %cst_99 = arith.constant 1.000000e+00 : f32
    %233 = vector.broadcast %cst_99 : f32 to vector<2x32xf32>
    %234 = arith.addf %233, %232 : vector<2x32xf32>
    %235 = arith.divf %233, %234 : vector<2x32xf32>
    %c0_100 = arith.constant 0 : index
    %c0_101 = arith.constant 0 : index
    %236 = vector.load %arg6[%c0_100, %c0_101] : memref<2x32xf32, #tpu.memory_space<vmem>>, vector<2x32xf32>
    %237 = arith.mulf %227, %236 : vector<2x32xf32>
    %238 = arith.mulf %221, %229 : vector<2x32xf32>
    %239 = arith.addf %237, %238 : vector<2x32xf32>
    %240 = math.tanh %239 : vector<2x32xf32>
    %241 = arith.mulf %235, %240 : vector<2x32xf32>
    %c0_102 = arith.constant 0 : index
    %c0_103 = arith.constant 0 : index
    %242 = vector.load %arg6[%c0_102, %c0_103] : memref<2x32xf32, #tpu.memory_space<vmem>>, vector<2x32xf32>
    tpu.vector_store %arg6[%c0_102, %c0_103], %239 {strides = array<i32>} : memref<2x32xf32, #tpu.memory_space<vmem>>, vector<2x32xf32>,
    %c0_104 = arith.constant 0 : index
    %c0_105 = arith.constant 0 : index
    %243 = vector.load %arg5[%c0_104, %c0_105] : memref<2x32xf32, #tpu.memory_space<vmem>>, vector<2x32xf32>
    tpu.vector_store %arg5[%c0_104, %c0_105], %241 {strides = array<i32>} : memref<2x32xf32, #tpu.memory_space<vmem>>, vector<2x32xf32>,
    %244 = arith.truncf %241 : vector<2x32xf32> to vector<2x32xbf16>
    %245 = arith.index_cast %c5_i32 : i32 to index
    %c0_106 = arith.constant 0 : index
    %c0_107 = arith.constant 0 : index
    %246 = vector.load %arg4[%245, %c0_106, %c0_107] : memref<8x2x32xbf16, #tpu.memory_space<vmem>>, vector<1x2x32xbf16>
    %247 = vector.shape_cast %246 : vector<1x2x32xbf16> to vector<2x32xbf16>
    %248 = vector.shape_cast %244 : vector<2x32xbf16> to vector<1x2x32xbf16>
    tpu.vector_store %arg4[%245, %c0_106, %c0_107], %248 {strides = array<i32>} : memref<8x2x32xbf16, #tpu.memory_space<vmem>>, vector<1x2x32xbf16>,
    %c6_i32 = arith.constant 6 : i32
    %249 = arith.index_cast %c6_i32 : i32 to index
    %c0_108 = arith.constant 0 : index
    %c0_109 = arith.constant 0 : index
    %250 = vector.load %arg2[%249, %c0_108, %c0_109] : memref<8x2x128xf32, #tpu.memory_space<vmem>>, vector<1x2x128xf32>
    %251 = vector.shape_cast %250 : vector<1x2x128xf32> to vector<2x128xf32>
    %c0_110 = arith.constant 0 : index
    %c0_111 = arith.constant 0 : index
    %252 = vector.load %arg5[%c0_110, %c0_111] : memref<2x32xf32, #tpu.memory_space<vmem>>, vector<2x32xf32>
    %253 = arith.truncf %252 : vector<2x32xf32> to vector<2x32xbf16>
    %c0_112 = arith.constant 0 : index
    %c0_113 = arith.constant 0 : index
    %254 = vector.load %arg3[%c0_112, %c0_113] : memref<32x128xbf16, #tpu.memory_space<vmem>>, vector<32x128xbf16>
    %cst_114 = arith.constant dense<0.000000e+00> : vector<2x128xf32>
    %255 = tpu.matmul %253, %254, %cst_114 {dimension_numbers = #tpu.dot_dimension_numbers<[1], [0], [0], [1], [0, 0, 1, 1], [], []>} : vector<2x32xbf16>, vector<32x128xbf16>, vector<2x128xf32> -> vector<2x128xf32>
    %256 = arith.addf %251, %255 : vector<2x128xf32>
    %257 = vector.extract_strided_slice %256 {offsets = [0, 0], sizes = [2, 32], strides = [1, 1]} : vector<2x128xf32> to vector<2x32xf32>
    %258 = arith.negf %257 : vector<2x32xf32>
    %259 = math.exp %258 : vector<2x32xf32>
    %cst_115 = arith.constant 1.000000e+00 : f32
    %260 = vector.broadcast %cst_115 : f32 to vector<2x32xf32>
    %261 = arith.addf %260, %259 : vector<2x32xf32>
    %262 = arith.divf %260, %261 : vector<2x32xf32>
    %263 = vector.extract_strided_slice %256 {offsets = [0, 32], sizes = [2, 32], strides = [1, 1]} : vector<2x128xf32> to vector<2x32xf32>
    %264 = arith.negf %263 : vector<2x32xf32>
    %265 = math.exp %264 : vector<2x32xf32>
    %cst_116 = arith.constant 1.000000e+00 : f32
    %266 = vector.broadcast %cst_116 : f32 to vector<2x32xf32>
    %267 = arith.addf %266, %265 : vector<2x32xf32>
    %268 = arith.divf %266, %267 : vector<2x32xf32>
    %269 = vector.extract_strided_slice %256 {offsets = [0, 64], sizes = [2, 32], strides = [1, 1]} : vector<2x128xf32> to vector<2x32xf32>
    %270 = math.tanh %269 : vector<2x32xf32>
    %271 = vector.extract_strided_slice %256 {offsets = [0, 96], sizes = [2, 32], strides = [1, 1]} : vector<2x128xf32> to vector<2x32xf32>
    %272 = arith.negf %271 : vector<2x32xf32>
    %273 = math.exp %272 : vector<2x32xf32>
    %cst_117 = arith.constant 1.000000e+00 : f32
    %274 = vector.broadcast %cst_117 : f32 to vector<2x32xf32>
    %275 = arith.addf %274, %273 : vector<2x32xf32>
    %276 = arith.divf %274, %275 : vector<2x32xf32>
    %c0_118 = arith.constant 0 : index
    %c0_119 = arith.constant 0 : index
    %277 = vector.load %arg6[%c0_118, %c0_119] : memref<2x32xf32, #tpu.memory_space<vmem>>, vector<2x32xf32>
    %278 = arith.mulf %268, %277 : vector<2x32xf32>
    %279 = arith.mulf %262, %270 : vector<2x32xf32>
    %280 = arith.addf %278, %279 : vector<2x32xf32>
    %281 = math.tanh %280 : vector<2x32xf32>
    %282 = arith.mulf %276, %281 : vector<2x32xf32>
    %c0_120 = arith.constant 0 : index
    %c0_121 = arith.constant 0 : index
    %283 = vector.load %arg6[%c0_120, %c0_121] : memref<2x32xf32, #tpu.memory_space<vmem>>, vector<2x32xf32>
    tpu.vector_store %arg6[%c0_120, %c0_121], %280 {strides = array<i32>} : memref<2x32xf32, #tpu.memory_space<vmem>>, vector<2x32xf32>,
    %c0_122 = arith.constant 0 : index
    %c0_123 = arith.constant 0 : index
    %284 = vector.load %arg5[%c0_122, %c0_123] : memref<2x32xf32, #tpu.memory_space<vmem>>, vector<2x32xf32>
    tpu.vector_store %arg5[%c0_122, %c0_123], %282 {strides = array<i32>} : memref<2x32xf32, #tpu.memory_space<vmem>>, vector<2x32xf32>,
    %285 = arith.truncf %282 : vector<2x32xf32> to vector<2x32xbf16>
    %286 = arith.index_cast %c6_i32 : i32 to index
    %c0_124 = arith.constant 0 : index
    %c0_125 = arith.constant 0 : index
    %287 = vector.load %arg4[%286, %c0_124, %c0_125] : memref<8x2x32xbf16, #tpu.memory_space<vmem>>, vector<1x2x32xbf16>
    %288 = vector.shape_cast %287 : vector<1x2x32xbf16> to vector<2x32xbf16>
    %289 = vector.shape_cast %285 : vector<2x32xbf16> to vector<1x2x32xbf16>
    tpu.vector_store %arg4[%286, %c0_124, %c0_125], %289 {strides = array<i32>} : memref<8x2x32xbf16, #tpu.memory_space<vmem>>, vector<1x2x32xbf16>,
    %c7_i32 = arith.constant 7 : i32
    %290 = arith.index_cast %c7_i32 : i32 to index
    %c0_126 = arith.constant 0 : index
    %c0_127 = arith.constant 0 : index
    %291 = vector.load %arg2[%290, %c0_126, %c0_127] : memref<8x2x128xf32, #tpu.memory_space<vmem>>, vector<1x2x128xf32>
    %292 = vector.shape_cast %291 : vector<1x2x128xf32> to vector<2x128xf32>
    %c0_128 = arith.constant 0 : index
    %c0_129 = arith.constant 0 : index
    %293 = vector.load %arg5[%c0_128, %c0_129] : memref<2x32xf32, #tpu.memory_space<vmem>>, vector<2x32xf32>
    %294 = arith.truncf %293 : vector<2x32xf32> to vector<2x32xbf16>
    %c0_130 = arith.constant 0 : index
    %c0_131 = arith.constant 0 : index
    %295 = vector.load %arg3[%c0_130, %c0_131] : memref<32x128xbf16, #tpu.memory_space<vmem>>, vector<32x128xbf16>
    %cst_132 = arith.constant dense<0.000000e+00> : vector<2x128xf32>
    %296 = tpu.matmul %294, %295, %cst_132 {dimension_numbers = #tpu.dot_dimension_numbers<[1], [0], [0], [1], [0, 0, 1, 1], [], []>} : vector<2x32xbf16>, vector<32x128xbf16>, vector<2x128xf32> -> vector<2x128xf32>
    %297 = arith.addf %292, %296 : vector<2x128xf32>
    %298 = vector.extract_strided_slice %297 {offsets = [0, 0], sizes = [2, 32], strides = [1, 1]} : vector<2x128xf32> to vector<2x32xf32>
    %299 = arith.negf %298 : vector<2x32xf32>
    %300 = math.exp %299 : vector<2x32xf32>
    %cst_133 = arith.constant 1.000000e+00 : f32
    %301 = vector.broadcast %cst_133 : f32 to vector<2x32xf32>
    %302 = arith.addf %301, %300 : vector<2x32xf32>
    %303 = arith.divf %301, %302 : vector<2x32xf32>
    %304 = vector.extract_strided_slice %297 {offsets = [0, 32], sizes = [2, 32], strides = [1, 1]} : vector<2x128xf32> to vector<2x32xf32>
    %305 = arith.negf %304 : vector<2x32xf32>
    %306 = math.exp %305 : vector<2x32xf32>
    %cst_134 = arith.constant 1.000000e+00 : f32
    %307 = vector.broadcast %cst_134 : f32 to vector<2x32xf32>
    %308 = arith.addf %307, %306 : vector<2x32xf32>
    %309 = arith.divf %307, %308 : vector<2x32xf32>
    %310 = vector.extract_strided_slice %297 {offsets = [0, 64], sizes = [2, 32], strides = [1, 1]} : vector<2x128xf32> to vector<2x32xf32>
    %311 = math.tanh %310 : vector<2x32xf32>
    %312 = vector.extract_strided_slice %297 {offsets = [0, 96], sizes = [2, 32], strides = [1, 1]} : vector<2x128xf32> to vector<2x32xf32>
    %313 = arith.negf %312 : vector<2x32xf32>
    %314 = math.exp %313 : vector<2x32xf32>
    %cst_135 = arith.constant 1.000000e+00 : f32
    %315 = vector.broadcast %cst_135 : f32 to vector<2x32xf32>
    %316 = arith.addf %315, %314 : vector<2x32xf32>
    %317 = arith.divf %315, %316 : vector<2x32xf32>
    %c0_136 = arith.constant 0 : index
    %c0_137 = arith.constant 0 : index
    %318 = vector.load %arg6[%c0_136, %c0_137] : memref<2x32xf32, #tpu.memory_space<vmem>>, vector<2x32xf32>
    %319 = arith.mulf %309, %318 : vector<2x32xf32>
    %320 = arith.mulf %303, %311 : vector<2x32xf32>
    %321 = arith.addf %319, %320 : vector<2x32xf32>
    %322 = math.tanh %321 : vector<2x32xf32>
    %323 = arith.mulf %317, %322 : vector<2x32xf32>
    %c0_138 = arith.constant 0 : index
    %c0_139 = arith.constant 0 : index
    %324 = vector.load %arg6[%c0_138, %c0_139] : memref<2x32xf32, #tpu.memory_space<vmem>>, vector<2x32xf32>
    tpu.vector_store %arg6[%c0_138, %c0_139], %321 {strides = array<i32>} : memref<2x32xf32, #tpu.memory_space<vmem>>, vector<2x32xf32>,
    %c0_140 = arith.constant 0 : index
    %c0_141 = arith.constant 0 : index
    %325 = vector.load %arg5[%c0_140, %c0_141] : memref<2x32xf32, #tpu.memory_space<vmem>>, vector<2x32xf32>
    tpu.vector_store %arg5[%c0_140, %c0_141], %323 {strides = array<i32>} : memref<2x32xf32, #tpu.memory_space<vmem>>, vector<2x32xf32>,
    %326 = arith.truncf %323 : vector<2x32xf32> to vector<2x32xbf16>
    %327 = arith.index_cast %c7_i32 : i32 to index
    %c0_142 = arith.constant 0 : index
    %c0_143 = arith.constant 0 : index
    %328 = vector.load %arg4[%327, %c0_142, %c0_143] : memref<8x2x32xbf16, #tpu.memory_space<vmem>>, vector<1x2x32xbf16>
    %329 = vector.shape_cast %328 : vector<1x2x32xbf16> to vector<2x32xbf16>
    %330 = vector.shape_cast %326 : vector<2x32xbf16> to vector<1x2x32xbf16>
    tpu.vector_store %arg4[%327, %c0_142, %c0_143], %330 {strides = array<i32>} : memref<8x2x32xbf16, #tpu.memory_space<vmem>>, vector<1x2x32xbf16>,
    %c8_i32 = arith.constant 8 : i32
    return
  }
  func.func @transform_0(%arg0: i32, %arg1: i32) -> (i32, i32, i32) {
    %c0_i32 = arith.constant 0 : i32
    %c0_i32_0 = arith.constant 0 : i32
    return %arg1, %arg0, %c0_i32 : i32, i32, i32
  }
  func.func @transform_1(%arg0: i32, %arg1: i32) -> (i32, i32) {
    %c0_i32 = arith.constant 0 : i32
    %c0_i32_0 = arith.constant 0 : i32
    %c0_i32_1 = arith.constant 0 : i32
    return %c0_i32, %c0_i32_0 : i32, i32
  }
  func.func @transform_2(%arg0: i32, %arg1: i32) -> (i32, i32, i32) {
    %c0_i32 = arith.constant 0 : i32
    %c0_i32_0 = arith.constant 0 : i32
    return %arg1, %arg0, %c0_i32 : i32, i32, i32
  }
}

</mosaic_0001>

<bundles_post_ra>
// kernel: lstm_net_forward.4
= control target key start
LH: loop header
LB: loop body
LE: loop exit
PB: predicated region body
PF: predicated region fallthrough
CT: control target
= control target key end

     0   :  { %8 = vsyncpa [#allocation3], 0  ;;  %s345_s0 = inlined_call_operand.hbm [shape: bf16[16,16], index: 0, kind: input, shape index: {}]   ;;  %s346_s1 = inlined_call_operand.hbm [shape: bf16[16,128], index: 1, kind: input, shape index: {}]   ;;  %s347_s2 = inlined_call_operand.hbm [shape: f32[1,128], index: 2, kind: input, shape index: {}]   ;;  %s348_s3 = inlined_call_operand.hbm [shape: f32[16,128], index: 3, kind: output, shape index: {}]  }
   0x1   :  { %9 = vsyncpa [#allocation6], 0 }
   0x2   :  { %10 = vsyncpa [#allocation4], 0  ;;  %s260_s12 = smov [#allocation5]   ;;  %s261_s14 = smov [#allocation2]  }
   0x3   :  { %s28_s13 = sshll.u32 %s260_s12, 4  ;;  %s16_s15 = sshll.u32 %s261_s14, 4  ;;  %s29_s13 = int_to_ptr.vmem [resolvable:$true] %s28_s13  ;;  %s290_s15 = int_to_ptr.vmem [resolvable:$true] %s16_s15 }
   0x4   :  { %s166_s18 = scalar_lea.hbm %s346_s1, 128 }
   0x5   :  { %p167_p0 = scmp.ne.s32.totalorder %s346_s1, %s166_s18  ;;  %p170_p1 = scmp.lt.u32.totalorder %s166_s18, %s346_s1 }
   0x7   :  { %p172_p2 = pnand %p170_p1, %p167_p0 }
   0x9   :  { %175 = shalt.err (!%p172_p2)
}
   0xa   :  { %s176_s23 = scalar_lea.vmem %s29_s13, 128  ;;  %p181_p4 = scmp.lt.s32.totalorder %s29_s13, %s29_s13 }
   0xb   :  { %p177_p3 = scmp.ne.s32.totalorder %s29_s13, %s176_s23  ;;  %p182_p5 = scmp.lt.s32.totalorder %s176_s23, %s176_s23 }
   0xd   :  { %p183_p6 = por %p182_p5, %p181_p4 }
   0xf   :  { %p184_p7 = pnand %p183_p6, %p177_p3 }
  0x11   :  { %187 = shalt.err (!%p184_p7)
}
  0x12   :  { %s262_s24 = smov 64   ;;  %s263_s25 = smov 4  }
  0x13   :  { %34 = dma.hbm_to_vmem [thread:$0]  %s346_s1, 128, %s29_s13, [#allocation6], %s262_s24, %s262_s24, %s263_s25  }
  0x14   :  { %s188_s30 = scalar_lea.hbm %s345_s0, 128 }
  0x15   :  { %p189_p8 = scmp.ne.s32.totalorder %s345_s0, %s188_s30  ;;  %p192_p9 = scmp.lt.u32.totalorder %s188_s30, %s345_s0 }
  0x17   :  { %p194_p10 = pnand %p192_p9, %p189_p8 }
  0x19   :  { %197 = shalt.err (!%p194_p10)
}
  0x1a   :  { %s198_s8 = scalar_lea.vmem %s290_s15, 128  ;;  %p203_p12 = scmp.lt.s32.totalorder %s290_s15, %s290_s15 }
  0x1b   :  { %p199_p11 = scmp.ne.s32.totalorder %s290_s15, %s198_s8  ;;  %p204_p13 = scmp.lt.s32.totalorder %s198_s8, %s198_s8 }
  0x1d   :  { %p205_p0 = por %p204_p13, %p203_p12 }
  0x1f   :  { %p206_p1 = pnand %p205_p0, %p199_p11 }
  0x21   :  { %209 = shalt.err (!%p206_p1)
}
  0x22   :  { %22 = dma.hbm_to_vmem [thread:$0]  %s345_s0, 128, %s290_s15, [#allocation3], %s262_s24, %s262_s24, %s263_s25  }
  0x23   :  { %s264_s10 = smov [#allocation7]   ;;  %s210_s14 = scalar_lea.hbm %s347_s2, 16 }
  0x24   :  { %s41_s11 = sshll.u32 %s264_s10, 4  ;;  %p211_p2 = scmp.ne.s32.totalorder %s347_s2, %s210_s14  ;;  %s42_s11 = int_to_ptr.vmem [resolvable:$true] %s41_s11 }
  0x25   :  { %p214_p3 = scmp.lt.u32.totalorder %s210_s14, %s347_s2 }
  0x27   :  { %p216_p4 = pnand %p214_p3, %p211_p2 }
  0x29   :  { %219 = shalt.err (!%p216_p4)
}
  0x2a   :  { %s220_s20 = scalar_lea.vmem %s42_s11, 16  ;;  %s224_s0 = scalar_lea.vmem %s42_s11, 32 }
  0x2b   :  { %p221_p5 = scmp.ne.s32.totalorder %s42_s11, %s220_s20  ;;  %p225_p6 = scmp.lt.s32.totalorder %s42_s11, %s42_s11 }
  0x2c   :  { %p226_p7 = scmp.lt.s32.totalorder %s224_s0, %s220_s20 }
  0x2e   :  { %p227_p8 = por %p226_p7, %p225_p6 }
  0x30   :  { %p228_p9 = pnand %p227_p8, %p221_p5 }
  0x32   :  { %231 = shalt.err (!%p228_p9)
}
  0x33   :  { %44 = dma.hbm_to_vmem [thread:$0]  %s347_s2, 16, %s42_s11, [#allocation6]  }
  0x34   :  { %254 = dma.done.wait [#allocation3], 128  }
  0x35   :  { %255 = vsyncadd [#allocation3], 4294967168 }
  0x36   :  { %256 = dma.done.wait [#allocation6], 144  }
  0x37   :  { %257 = vsyncadd [#allocation6], 4294967152  ;;  %v265_v0 = vmov 0.0   ;;  %vm266_vm0 = vmmov 0   ;;  %v164_v1 = vld [vmem:[#allocation5] sm:$0xff]   ;;  %v165_v2 = vld [vmem:[#allocation2] sm:$0xff]  }
  0x38   :  { %148 = vmatprep.subr.bf16.mxu0 %v265_v0  ;;  %150 = vmatprep.mubr.msk.bf16.mxu0 %vm266_vm0, %v265_v0  ;;  %vm77_vm1 = vcmask 130048   ;;  %v142_v3 = vld [vmem:[#allocation7] ss:$0 sm:$0xff]  ;;  %s267_s22 = smov [#allocation8]  }
  0x39   :  { %149 = vmatpush3.bf16.msra.mxu0 %v164_v1  ;;  %s129_s23 = sshll.u32 %s267_s22, 4  ;;  %s130_s23 = int_to_ptr.vmem [resolvable:$true] %s129_s23 }
  0x3a   :  { %s232_s2 = scalar_lea.vmem %s130_s23, 256  ;;  %p237_p11 = scmp.lt.s32.totalorder %s130_s23, %s130_s23 }
  0x3b   :  { %p233_p10 = scmp.ne.s32.totalorder %s130_s23, %s232_s2  ;;  %p238_p12 = scmp.lt.s32.totalorder %s232_s2, %s232_s2 }
  0x3c   :  { %151 = vmatmul.mubr.msk.bf16.vlgmr.msra.gmra.mrb[0].mxu0 %vm77_vm1, %v165_v2 }
  0x3d   :  { %p239_p13 = por %p238_p12, %p237_p11 }
  0x3f   :  { %p240_p0 = pnand %p239_p13, %p233_p10 }
 0x10f   :  { %v115_v4 = vpop.f32.mrb[0].mxu0 }
 0x110   :  { %v116_v5 = vadd.f32 %v142_v3, %v115_v4  ;;  %v152_v6 = vpop.f32.mrb[1].mxu0 }
 0x111   :  { %v118_v7 = vpop.f32.mrb[2].mxu0 }
 0x112   :  { %122 = vst [vmem:[#allocation8] sm:$0xff] %v116_v5  ;;  %v119_v8 = vadd.f32 %v142_v3, %v118_v7  ;;  %v153_v9 = vpop.f32.mrb[3].mxu0 }
 0x114   :  { %123 = vst [vmem:[#allocation8 + $0x8] sm:$0xff] %v119_v8 }
 0x115   :  { %243 = shalt.err (!%p240_p0)
}
 0x116   :  { %s244_s26 = scalar_lea.hbm %s348_s3, 256 }
 0x117   :  { %p245_p1 = scmp.ne.s32.totalorder %s348_s3, %s244_s26  ;;  %p248_p2 = scmp.lt.u32.totalorder %s244_s26, %s348_s3 }
 0x119   :  { %p250_p3 = pnand %p248_p2, %p245_p1 }
 0x11b   :  { %253 = shalt.err (!%p250_p3)
}
 0x11c   :  { %s268_s4 = smov 128   ;;  %s269_s5 = smov 8  }
 0x11d   :  { %135 = dma.vmem_to_hbm [thread:$0]  %s130_s23, 256, %s348_s3, [#allocation4], %s268_s4, %s268_s4, %s269_s5  }
 0x11e   :  { %258 = dma.done.wait [#allocation4], 256  }
 0x11f   :  { %259 = vsyncadd [#allocation4], 4294967040 }
 0x120   :  { %139 = vsyncpa [#allocation3], 1 }
 0x121   :  { %140 = vsyncpa [#allocation6], 1 }
 0x122   :  { %141 = vsyncpa [#allocation4], 1 }

// kernel: lstm_net_forward.6
= control target key start
LH: loop header
LB: loop body
LE: loop exit
PB: predicated region body
PF: predicated region fallthrough
CT: control target
= control target key end

     0   :  { %8 = vsyncpa [#allocation3], 0  ;;  %s358_s0 = inlined_call_operand.hbm [shape: bf16[16,32], index: 0, kind: input, shape index: {}]   ;;  %s359_s1 = inlined_call_operand.hbm [shape: bf16[32,128], index: 1, kind: input, shape index: {}]   ;;  %s360_s2 = inlined_call_operand.hbm [shape: f32[1,128], index: 2, kind: input, shape index: {}]   ;;  %s361_s3 = inlined_call_operand.hbm [shape: f32[16,128], index: 3, kind: output, shape index: {}]  }
   0x1   :  { %9 = vsyncpa [#allocation6], 0 }
   0x2   :  { %10 = vsyncpa [#allocation4], 0  ;;  %s273_s12 = smov [#allocation5]   ;;  %s274_s14 = smov [#allocation2]  }
   0x3   :  { %s28_s13 = sshll.u32 %s273_s12, 4  ;;  %s16_s15 = sshll.u32 %s274_s14, 4  ;;  %s29_s13 = int_to_ptr.vmem [resolvable:$true] %s28_s13  ;;  %s303_s15 = int_to_ptr.vmem [resolvable:$true] %s16_s15 }
   0x4   :  { %s179_s18 = scalar_lea.hbm %s359_s1, 256 }
   0x5   :  { %p180_p0 = scmp.ne.s32.totalorder %s359_s1, %s179_s18  ;;  %p183_p1 = scmp.lt.u32.totalorder %s179_s18, %s359_s1 }
   0x7   :  { %p185_p2 = pnand %p183_p1, %p180_p0 }
   0x9   :  { %188 = shalt.err (!%p185_p2)
}
   0xa   :  { %s189_s23 = scalar_lea.vmem %s29_s13, 256  ;;  %p194_p4 = scmp.lt.s32.totalorder %s29_s13, %s29_s13 }
   0xb   :  { %p190_p3 = scmp.ne.s32.totalorder %s29_s13, %s189_s23  ;;  %p195_p5 = scmp.lt.s32.totalorder %s189_s23, %s189_s23 }
   0xd   :  { %p196_p6 = por %p195_p5, %p194_p4 }
   0xf   :  { %p197_p7 = pnand %p196_p6, %p190_p3 }
  0x11   :  { %200 = shalt.err (!%p197_p7)
}
  0x12   :  { %s275_s24 = smov 64   ;;  %s276_s25 = smov 4  }
  0x13   :  { %34 = dma.hbm_to_vmem [thread:$0]  %s359_s1, 256, %s29_s13, [#allocation6], %s275_s24, %s275_s24, %s276_s25  }
  0x14   :  { %s201_s30 = scalar_lea.hbm %s358_s0, 128 }
  0x15   :  { %p202_p8 = scmp.ne.s32.totalorder %s358_s0, %s201_s30  ;;  %p205_p9 = scmp.lt.u32.totalorder %s201_s30, %s358_s0 }
  0x17   :  { %p207_p10 = pnand %p205_p9, %p202_p8 }
  0x19   :  { %210 = shalt.err (!%p207_p10)
}
  0x1a   :  { %s211_s8 = scalar_lea.vmem %s303_s15, 128  ;;  %p216_p12 = scmp.lt.s32.totalorder %s303_s15, %s303_s15 }
  0x1b   :  { %p212_p11 = scmp.ne.s32.totalorder %s303_s15, %s211_s8  ;;  %p217_p13 = scmp.lt.s32.totalorder %s211_s8, %s211_s8 }
  0x1d   :  { %p218_p0 = por %p217_p13, %p216_p12 }
  0x1f   :  { %p219_p1 = pnand %p218_p0, %p212_p11 }
  0x21   :  { %222 = shalt.err (!%p219_p1)
}
  0x22   :  { %22 = dma.hbm_to_vmem [thread:$0]  %s358_s0, 128, %s303_s15, [#allocation3], %s275_s24, %s275_s24, %s276_s25  }
  0x23   :  { %s277_s10 = smov [#allocation7]   ;;  %s223_s14 = scalar_lea.hbm %s360_s2, 16 }
  0x24   :  { %s41_s11 = sshll.u32 %s277_s10, 4  ;;  %p224_p2 = scmp.ne.s32.totalorder %s360_s2, %s223_s14  ;;  %s42_s11 = int_to_ptr.vmem [resolvable:$true] %s41_s11 }
  0x25   :  { %p227_p3 = scmp.lt.u32.totalorder %s223_s14, %s360_s2 }
  0x27   :  { %p229_p4 = pnand %p227_p3, %p224_p2 }
  0x29   :  { %232 = shalt.err (!%p229_p4)
}
  0x2a   :  { %s233_s20 = scalar_lea.vmem %s42_s11, 16  ;;  %s237_s0 = scalar_lea.vmem %s42_s11, 32 }
  0x2b   :  { %p234_p5 = scmp.ne.s32.totalorder %s42_s11, %s233_s20  ;;  %p238_p6 = scmp.lt.s32.totalorder %s42_s11, %s42_s11 }
  0x2c   :  { %p239_p7 = scmp.lt.s32.totalorder %s237_s0, %s233_s20 }
  0x2e   :  { %p240_p8 = por %p239_p7, %p238_p6 }
  0x30   :  { %p241_p9 = pnand %p240_p8, %p234_p5 }
  0x32   :  { %244 = shalt.err (!%p241_p9)
}
  0x33   :  { %44 = dma.hbm_to_vmem [thread:$0]  %s360_s2, 16, %s42_s11, [#allocation6]  }
  0x34   :  { %267 = dma.done.wait [#allocation3], 128  }
  0x35   :  { %268 = vsyncadd [#allocation3], 4294967168 }
  0x36   :  { %269 = dma.done.wait [#allocation6], 272  }
  0x37   :  { %270 = vsyncadd [#allocation6], 4294967024  ;;  %v278_v0 = vmov 0.0   ;;  %vm279_vm0 = vmmov 0   ;;  %v176_v1 = vld [vmem:[#allocation5] sm:$0xff]   ;;  %v177_v2 = vld [vmem:[#allocation5 + $0x8] sm:$0xff]  }
  0x38   :  { %158 = vmatprep.subr.bf16.mxu0 %v278_v0  ;;  %162 = vmatprep.mubr.msk.bf16.mxu0 %vm279_vm0, %v278_v0  ;;  %v178_v3 = vld [vmem:[#allocation2] sm:$0xff]   ;;  %vm85_vm1 = vcmask 261120   ;;  %v150_v4 = vld [vmem:[#allocation7] ss:$0 sm:$0xff]  ;;  %s280_s22 = smov [#allocation8]  }
  0x39   :  { %159 = vmatpush3.bf16.msra.mxu0 %v176_v1  ;;  %s137_s23 = sshll.u32 %s280_s22, 4  ;;  %s138_s23 = int_to_ptr.vmem [resolvable:$true] %s137_s23 }
  0x3a   :  { %160 = vmatprep.subr.bf16.mxu0 %v278_v0  ;;  %s245_s2 = scalar_lea.vmem %s138_s23, 256  ;;  %p250_p11 = scmp.lt.s32.totalorder %s138_s23, %s138_s23 }
  0x3b   :  { %p246_p10 = scmp.ne.s32.totalorder %s138_s23, %s245_s2  ;;  %p251_p12 = scmp.lt.s32.totalorder %s245_s2, %s245_s2 }
  0x3d   :  { %161 = vmatpush3.bf16.msra.mxu0 %v177_v2  ;;  %p252_p13 = por %p251_p12, %p250_p11 }
  0x3f   :  { %p253_p0 = pnand %p252_p13, %p246_p10 }
  0x40   :  { %163 = vmatmul.mubr.msk.bf16.vlgmr.msra.gmra.mrb[0].mxu0 %vm85_vm1, %v178_v3 }
 0x113   :  { %v123_v5 = vpop.f32.mrb[0].mxu0 }
 0x114   :  { %v124_v6 = vadd.f32 %v150_v4, %v123_v5  ;;  %v164_v7 = vpop.f32.mrb[1].mxu0 }
 0x115   :  { %v126_v8 = vpop.f32.mrb[2].mxu0 }
 0x116   :  { %130 = vst [vmem:[#allocation8] sm:$0xff] %v124_v6  ;;  %v127_v9 = vadd.f32 %v150_v4, %v126_v8  ;;  %v165_v10 = vpop.f32.mrb[3].mxu0 }
 0x118   :  { %131 = vst [vmem:[#allocation8 + $0x8] sm:$0xff] %v127_v9 }
 0x119   :  { %256 = shalt.err (!%p253_p0)
}
 0x11a   :  { %s257_s26 = scalar_lea.hbm %s361_s3, 256 }
 0x11b   :  { %p258_p1 = scmp.ne.s32.totalorder %s361_s3, %s257_s26  ;;  %p261_p2 = scmp.lt.u32.totalorder %s257_s26, %s361_s3 }
 0x11d   :  { %p263_p3 = pnand %p261_p2, %p258_p1 }
 0x11f   :  { %266 = shalt.err (!%p263_p3)
}
 0x120   :  { %s281_s4 = smov 128   ;;  %s282_s5 = smov 8  }
 0x121   :  { %143 = dma.vmem_to_hbm [thread:$0]  %s138_s23, 256, %s361_s3, [#allocation4], %s281_s4, %s281_s4, %s282_s5  }
 0x122   :  { %271 = dma.done.wait [#allocation4], 256  }
 0x123   :  { %272 = vsyncadd [#allocation4], 4294967040 }
 0x124   :  { %147 = vsyncpa [#allocation3], 1 }
 0x125   :  { %148 = vsyncpa [#allocation6], 1 }
 0x126   :  { %149 = vsyncpa [#allocation4], 1 }

// kernel: lstm_net_forward.7
= control target key start
LH: loop header
LB: loop body
LE: loop exit
PB: predicated region body
PF: predicated region fallthrough
CT: control target
= control target key end

     0   :  { %s1451_s0 = inlined_call_operand.hbm [shape: f32[8,2,128], index: 0, kind: input, shape index: {}]   ;;  %s1452_s1 = inlined_call_operand.hbm [shape: bf16[32,128], index: 1, kind: input, shape index: {}]   ;;  %s1453_s2 = inlined_call_operand.hbm [shape: f32[1,32], index: 2, kind: input, shape index: {}]   ;;  %s1454_s3 = inlined_call_operand.<no memory space> [shape: f32[1,1], index: 3, kind: input, shape index: {}]   ;;  %s1455_s4 = inlined_call_operand.hbm [shape: f32[2,1], index: 4, kind: output, shape index: {}]  }
   0x1   :  { %v9_v0 = vstv %s1454_s3 }
   0x2   :  { %10 = vst [vmem:[#allocation4] sm:$0x1] %v9_v0 }
   0x3   :  { %11 = vsyncpa [#allocation6], 0 }
   0x4   :  { %12 = vsyncpa [#allocation9], 0 }
   0x5   :  { %13 = vsyncpa [#allocation7], 0  ;;  %s1251_s17 = smov [#allocation8]   ;;  %s1157_s21 = scalar_lea.hbm %s1452_s1, 256 }
   0x6   :  { %s31_s18 = sshll.u32 %s1251_s17, 4  ;;  %p1158_p0 = scmp.ne.s32.totalorder %s1452_s1, %s1157_s21  ;;  %s32_s18 = int_to_ptr.vmem [resolvable:$true] %s31_s18 }
   0x7   :  { %p1161_p1 = scmp.lt.u32.totalorder %s1157_s21, %s1452_s1 }
   0x9   :  { %p1163_p2 = pnand %p1161_p1, %p1158_p0 }
   0xb   :  { %1166 = shalt.err (!%p1163_p2)
}
   0xc   :  { %s1167_s3 = scalar_lea.vmem %s32_s18, 256  ;;  %p1172_p4 = scmp.lt.s32.totalorder %s32_s18, %s32_s18 }
   0xd   :  { %p1168_p3 = scmp.ne.s32.totalorder %s32_s18, %s1167_s3  ;;  %p1173_p5 = scmp.lt.s32.totalorder %s1167_s3, %s1167_s3 }
   0xf   :  { %p1174_p6 = por %p1173_p5, %p1172_p4 }
  0x11   :  { %p1175_p7 = pnand %p1174_p6, %p1168_p3 }
  0x13   :  { %1178 = shalt.err (!%p1175_p7)
}
  0x14   :  { %s1252_s26 = smov 64   ;;  %s1253_s27 = smov 4  }
  0x15   :  { %37 = dma.hbm_to_vmem [thread:$0]  %s1452_s1, 256, %s32_s18, [#allocation9], %s1252_s26, %s1252_s26, %s1253_s27  }
  0x16   :  { %s1254_s30 = smov [#allocation5]   ;;  %s1179_s8 = scalar_lea.hbm %s1451_s0, 256 }
  0x17   :  { %s19_s5 = sshll.u32 %s1254_s30, 4  ;;  %p1180_p8 = scmp.ne.s32.totalorder %s1451_s0, %s1179_s8  ;;  %s20_s5 = int_to_ptr.vmem [resolvable:$true] %s19_s5 }
  0x18   :  { %p1183_p9 = scmp.lt.u32.totalorder %s1179_s8, %s1451_s0 }
  0x1a   :  { %p1185_p10 = pnand %p1183_p9, %p1180_p8 }
  0x1c   :  { %1188 = shalt.err (!%p1185_p10)
}
  0x1d   :  { %s1189_s13 = scalar_lea.vmem %s20_s5, 256  ;;  %p1194_p12 = scmp.lt.s32.totalorder %s20_s5, %s20_s5 }
  0x1e   :  { %p1190_p11 = scmp.ne.s32.totalorder %s20_s5, %s1189_s13  ;;  %p1195_p13 = scmp.lt.s32.totalorder %s1189_s13, %s1189_s13 }
  0x20   :  { %p1196_p0 = por %p1195_p13, %p1194_p12 }
  0x22   :  { %p1197_p1 = pnand %p1196_p0, %p1190_p11 }
  0x24   :  { %1200 = shalt.err (!%p1197_p1)
}
  0x25   :  { %s1255_s1 = smov 32   ;;  %s1256_s14 = smov 2  }
  0x26   :  { %25 = dma.hbm_to_vmem [thread:$0]  %s1451_s0, 256, %s20_s5, [#allocation6], %s1255_s1, %s1255_s1, %s1256_s14  }
  0x27   :  { %s1257_s17 = smov [#allocation10]   ;;  %s1201_s21 = scalar_lea.hbm %s1453_s2, 16 }
  0x28   :  { %s44_s18 = sshll.u32 %s1257_s17, 4  ;;  %p1202_p2 = scmp.ne.s32.totalorder %s1453_s2, %s1201_s21  ;;  %s45_s18 = int_to_ptr.vmem [resolvable:$true] %s44_s18 }
  0x29   :  { %p1205_p3 = scmp.lt.u32.totalorder %s1201_s21, %s1453_s2 }
  0x2b   :  { %p1207_p4 = pnand %p1205_p3, %p1202_p2 }
  0x2d   :  { %1210 = shalt.err (!%p1207_p4)
}
  0x2e   :  { %s1211_s3 = scalar_lea.vmem %s45_s18, 16  ;;  %s1215_s0 = scalar_lea.vmem %s45_s18, 32 }
  0x2f   :  { %p1212_p5 = scmp.ne.s32.totalorder %s45_s18, %s1211_s3  ;;  %p1216_p6 = scmp.lt.s32.totalorder %s45_s18, %s45_s18 }
  0x30   :  { %p1217_p7 = scmp.lt.s32.totalorder %s1215_s0, %s1211_s3 }
  0x32   :  { %p1218_p8 = por %p1217_p7, %p1216_p6 }
  0x34   :  { %p1219_p9 = pnand %p1218_p8, %p1212_p5 }
  0x36   :  { %1222 = shalt.err (!%p1219_p9)
}
  0x37   :  { %47 = dma.hbm_to_vmem [thread:$0]  %s1453_s2, 16, %s45_s18, [#allocation9]  }
  0x38   :  { %1245 = dma.done.wait [#allocation6], 256  }
  0x39   :  { %1246 = vsyncadd [#allocation6], 4294967040 }
  0x3a   :  { %1247 = dma.done.wait [#allocation9], 272  }
  0x3b   :  { %1248 = vsyncadd [#allocation9], 4294967024  ;;  %vm64_vm0 = vcmask 254976   ;;  %v1258_v1 = vmov 0.0   ;;  %vm1259_vm1 = vmmov 0   ;;  %v1073_v2 = vld [vmem:[#allocation8] sm:$0xff]  }
  0x3c   :  { %998 = vmatprep.subr.bf16.mxu0 %v1258_v1  ;;  %1002 = vmatprep.mubr.msk.bf16.mxu0 %vm1259_vm1, %v1258_v1  ;;  %65 = vst.msk [vmem:[#allocation2] sm:$0x3] %vm64_vm0, %v1258_v1  ;;  %66 = vst.msk [vmem:[#allocation3] sm:$0x3] %vm64_vm0, %v1258_v1  ;;  %v1074_v3 = vld [vmem:[#allocation8 + $0x8] sm:$0xff]   ;;  %vm86_vm2 = vcmask 261120  }
  0x3d   :  { %1006 = vmatprep.subr.bf16.mxu1 %v1258_v1  ;;  %1010 = vmatprep.mubr.msk.bf16.mxu1 %vm1259_vm1, %v1258_v1  ;;  %v67_v6 = vld [vmem:[#allocation5] sm:$0x3]  ;;  %s1260_s2 = smov 96   ;;  %v1075_v25 = vld [vmem:[#allocation8] sm:$0xff]   ;;  %v1076_v26 = vld [vmem:[#allocation8 + $0x8] sm:$0xff]   ;;  %vm921_vm3 = vcmask 1024  }
  0x3e   :  { %999 = vmatpush3.bf16.msra.mxu0 %v1073_v2  ;;  %1007 = vmatpush3.bf16.msra.mxu1 %v1075_v25  ;;  %v172_v34 = vld [vmem:[#allocation5 + $0x2] sm:$0x3]  ;;  %v1077_v52 = vld [vmem:[#allocation8] sm:$0xff]   ;;  %v1078_v53 = vld [vmem:[#allocation8 + $0x8] sm:$0xff]  }
  0x3f   :  { %1000 = vmatprep.subr.bf16.mxu0 %v1258_v1  ;;  %1008 = vmatprep.subr.bf16.mxu1 %v1258_v1  ;;  %v275_v61 = vld [vmem:[#allocation5 + $0x4] sm:$0x3]  ;;  %v378_v25 = vld [vmem:[#allocation5 + $0x6] sm:$0x3] }
  0x42   :  { %1001 = vmatpush3.bf16.msra.mxu0 %v1074_v3  ;;  %1009 = vmatpush3.bf16.msra.mxu1 %v1076_v26 }
  0x43   :  { %v68_v4 = vld [vmem:[#allocation2] sm:$0x3]  ;;  %1014 = vmatprep.subr.bf16.mxu0 %v1258_v1  ;;  %v138_v13 = vld [vmem:[#allocation3] sm:$0x3]  ;;  %1022 = vmatprep.subr.bf16.mxu1 %v1258_v1 }
  0x44   :  { %v69_v5 = vpack.c.bf16 %v68_v4, %v68_v4 }
  0x46   :  { %1003 = vmatmul.mubr.msk.bf16.vlgmr.msra.gmra.mrb[0].mxu0 %vm86_vm2, %v69_v5 }
  0x47   :  { %1018 = vmatprep.mubr.msk.bf16.mxu0 %vm1259_vm1, %v1258_v1  ;;  %1015 = vmatpush3.bf16.msra.mxu0 %v1077_v52  ;;  %v481_v52 = vld [vmem:[#allocation5 + $0x8] sm:$0x3] }
  0x48   :  { %1016 = vmatprep.subr.bf16.mxu0 %v1258_v1 }
  0x4b   :  { %1017 = vmatpush3.bf16.msra.mxu0 %v1078_v53 }
  0x4c   :  { %1030 = vmatprep.subr.bf16.mxu0 %v1258_v1 }
 0x119   :  { %v124_v7 = vpop.f32.mrb[0].mxu0 }
 0x11a   :  { %v130_v8 = vadd.f32 %v124_v7, %v67_v6  ;;  %v1004_v9 = vpop.f32.mrb[1].mxu0 }
 0x11b   :  { %v127_v10 = vpop.f32.mrb[2].mxu0 }
 0x11c   :  { %v1005_v11 = vpop.f32.mrb[3].mxu0  ;;  %1089 = vtanh.f32 %v130_v8  ;;  %v942_v14 = vmul.f32 -1.442695, %v130_v8 }
 0x11e   :  { %1091 = vpow2.f32 %v942_v14 }
 0x126   :  { %v1090_v12 = vpop.eup %1089 }
 0x127   :  { %145 = vrot.lane.b32.xlu0 %v1090_v12, %s1252_s26 }
 0x128   :  { %v1092_v15 = vpop.eup %1091 }
 0x129   :  { %v134_v16 = vadd.f32 1.0, %v1092_v15 }
 0x12b   :  { %140 = vrot.lane.b32.xlu0 %v138_v13, %s1255_s1  ;;  %1093 = vrcp.f32 %v134_v16  ;;  %v1079_v16 = vld [vmem:[#allocation8] sm:$0xff]  }
 0x135   :  { %v1094_v17 = vpop.eup %1093 }
 0x199   :  { %v146_v18 = vpop.permute.xlu0 %145 }
 0x19a   :  { %v148_v19 = vmul.f32 %v1094_v17, %v146_v18 }
 0x19c   :  { %150 = vrot.lane.b32.xlu1 %v148_v19, %s1255_s1 }
 0x19d   :  { %v141_v20 = vpop.permute.xlu0 %140 }
 0x19e   :  { %v143_v21 = vmul.f32 %v1094_v17, %v141_v20 }
 0x20e   :  { %v151_v22 = vpop.permute.xlu1 %150 }
 0x20f   :  { %v153_v23 = vadd.f32 %v151_v22, %v143_v21 }
 0x211   :  { %1095 = vtanh.f32 %v153_v23 }
 0x21b   :  { %v1096_v24 = vpop.eup %1095 }
 0x21c   :  { %156 = vrot.lane.b32.xlu1 %v1096_v24, %s1252_s26 }
 0x220   :  { %161 = vrot.lane.b32.xlu1 %v153_v23, %s1260_s2 }
 0x28e   :  { %v157_v27 = vpop.permute.xlu1 %156 }
 0x28f   :  { %v159_v28 = vmul.f32 %v1094_v17, %v157_v27  ;;  %v1080_v17 = vld [vmem:[#allocation8 + $0x8] sm:$0xff]  }
 0x291   :  { %167 = vrot.lane.b32.xlu0 %v159_v28, %s1255_s1 }
 0x292   :  { %v162_v29 = vpop.permute.xlu1 %161 }
 0x293   :  { %165 = vst.msk [vmem:[#allocation3] sm:$0x3] %vm64_vm0, %v162_v29 }
 0x29a   :  { %v242_v30 = vld [vmem:[#allocation3] sm:$0x3] }
 0x29b   :  { %244 = vrot.lane.b32.xlu1 %v242_v30, %s1255_s1 }
 0x303   :  { %v168_v31 = vpop.permute.xlu0 %167 }
 0x304   :  { %170 = vst.msk [vmem:[#allocation2] sm:$0x3] %vm64_vm0, %v168_v31 }
 0x30b   :  { %v173_v32 = vld [vmem:[#allocation2] sm:$0x3] }
 0x30c   :  { %v174_v33 = vpack.c.bf16 %v173_v32, %v173_v32 }
 0x30d   :  { %v245_v47 = vpop.permute.xlu1 %244 }
 0x30e   :  { %1011 = vmatmul.mubr.msk.bf16.vlgmr.msra.gmra.mrb[0].mxu1 %vm86_vm2, %v174_v33 }
 0x30f   :  { %1026 = vmatprep.mubr.msk.bf16.mxu1 %vm1259_vm1, %v1258_v1  ;;  %1023 = vmatpush3.bf16.msra.mxu1 %v1079_v16  ;;  %v584_v16 = vld [vmem:[#allocation5 + $0xa] sm:$0x3] }
 0x310   :  { %1024 = vmatprep.subr.bf16.mxu1 %v1258_v1 }
 0x313   :  { %1025 = vmatpush3.bf16.msra.mxu1 %v1080_v17 }
 0x314   :  { %1038 = vmatprep.subr.bf16.mxu1 %v1258_v1 }
 0x3e1   :  { %v228_v35 = vpop.f32.mrb[0].mxu1 }
 0x3e2   :  { %v234_v36 = vadd.f32 %v228_v35, %v172_v34  ;;  %v1012_v37 = vpop.f32.mrb[1].mxu1 }
 0x3e3   :  { %v231_v38 = vpop.f32.mrb[2].mxu1 }
 0x3e4   :  { %1097 = vtanh.f32 %v234_v36  ;;  %v1013_v39 = vpop.f32.mrb[3].mxu1  ;;  %v946_v41 = vmul.f32 -1.442695, %v234_v36 }
 0x3e6   :  { %1099 = vpow2.f32 %v946_v41 }
 0x3ee   :  { %v1098_v40 = vpop.eup %1097 }
 0x3ef   :  { %249 = vrot.lane.b32.xlu0 %v1098_v40, %s1252_s26 }
 0x3f0   :  { %v1100_v42 = vpop.eup %1099 }
 0x3f1   :  { %v238_v43 = vadd.f32 1.0, %v1100_v42 }
 0x3f3   :  { %1101 = vrcp.f32 %v238_v43  ;;  %v1081_v43 = vld [vmem:[#allocation8] sm:$0xff]  }
 0x3fd   :  { %v1102_v44 = vpop.eup %1101 }
 0x3fe   :  { %v247_v48 = vmul.f32 %v1102_v44, %v245_v47 }
 0x461   :  { %v250_v45 = vpop.permute.xlu0 %249 }
 0x462   :  { %v252_v46 = vmul.f32 %v1102_v44, %v250_v45 }
 0x464   :  { %254 = vrot.lane.b32.xlu0 %v252_v46, %s1255_s1 }
 0x4d6   :  { %v255_v49 = vpop.permute.xlu0 %254 }
 0x4d7   :  { %v257_v50 = vadd.f32 %v255_v49, %v247_v48 }
 0x4d9   :  { %1103 = vtanh.f32 %v257_v50 }
 0x4e3   :  { %v1104_v51 = vpop.eup %1103 }
 0x4e4   :  { %260 = vrot.lane.b32.xlu1 %v1104_v51, %s1252_s26 }
 0x4e8   :  { %265 = vrot.lane.b32.xlu1 %v257_v50, %s1260_s2 }
 0x556   :  { %v261_v54 = vpop.permute.xlu1 %260 }
 0x557   :  { %v263_v55 = vmul.f32 %v1102_v44, %v261_v54  ;;  %v1082_v44 = vld [vmem:[#allocation8 + $0x8] sm:$0xff]  }
 0x559   :  { %270 = vrot.lane.b32.xlu0 %v263_v55, %s1255_s1 }
 0x55a   :  { %v266_v56 = vpop.permute.xlu1 %265 }
 0x55b   :  { %268 = vst.msk [vmem:[#allocation3] sm:$0x3] %vm64_vm0, %v266_v56 }
 0x562   :  { %v345_v57 = vld [vmem:[#allocation3] sm:$0x3] }
 0x563   :  { %347 = vrot.lane.b32.xlu1 %v345_v57, %s1255_s1 }
 0x5cb   :  { %v271_v58 = vpop.permute.xlu0 %270 }
 0x5cc   :  { %273 = vst.msk [vmem:[#allocation2] sm:$0x3] %vm64_vm0, %v271_v58 }
 0x5d3   :  { %v276_v59 = vld [vmem:[#allocation2] sm:$0x3] }
 0x5d4   :  { %v277_v60 = vpack.c.bf16 %v276_v59, %v276_v59 }
 0x5d5   :  { %v348_v11 = vpop.permute.xlu1 %347 }
 0x5d6   :  { %1019 = vmatmul.mubr.msk.bf16.vlgmr.msra.gmra.mrb[4].mxu0 %vm86_vm2, %v277_v60 }
 0x5d7   :  { %1034 = vmatprep.mubr.msk.bf16.mxu0 %vm1259_vm1, %v1258_v1  ;;  %1031 = vmatpush3.bf16.msra.mxu0 %v1081_v43  ;;  %v687_v43 = vld [vmem:[#allocation5 + $0xc] sm:$0x3] }
 0x5d8   :  { %1032 = vmatprep.subr.bf16.mxu0 %v1258_v1 }
 0x5db   :  { %1033 = vmatpush3.bf16.msra.mxu0 %v1082_v44 }
 0x5dc   :  { %1046 = vmatprep.subr.bf16.mxu0 %v1258_v1 }
 0x6a9   :  { %v331_v62 = vpop.f32.mrb[4].mxu0 }
 0x6aa   :  { %v337_v63 = vadd.f32 %v331_v62, %v275_v61  ;;  %v1020_v0 = vpop.f32.mrb[5].mxu0 }
 0x6ab   :  { %v334_v2 = vpop.f32.mrb[6].mxu0 }
 0x6ac   :  { %1105 = vtanh.f32 %v337_v63  ;;  %v1021_v3 = vpop.f32.mrb[7].mxu0  ;;  %v950_v5 = vmul.f32 -1.442695, %v337_v63 }
 0x6ae   :  { %1107 = vpow2.f32 %v950_v5 }
 0x6b6   :  { %v1106_v4 = vpop.eup %1105 }
 0x6b7   :  { %352 = vrot.lane.b32.xlu0 %v1106_v4, %s1252_s26 }
 0x6b8   :  { %v1108_v6 = vpop.eup %1107 }
 0x6b9   :  { %v341_v7 = vadd.f32 1.0, %v1108_v6 }
 0x6bb   :  { %1109 = vrcp.f32 %v341_v7  ;;  %v1083_v7 = vld [vmem:[#allocation8] sm:$0xff]  }
 0x6c5   :  { %v1110_v8 = vpop.eup %1109 }
 0x6c6   :  { %v350_v12 = vmul.f32 %v1110_v8, %v348_v11 }
 0x729   :  { %v353_v9 = vpop.permute.xlu0 %352 }
 0x72a   :  { %v355_v10 = vmul.f32 %v1110_v8, %v353_v9 }
 0x72c   :  { %357 = vrot.lane.b32.xlu0 %v355_v10, %s1255_s1 }
 0x79e   :  { %v358_v13 = vpop.permute.xlu0 %357 }
 0x79f   :  { %v360_v14 = vadd.f32 %v358_v13, %v350_v12 }
 0x7a1   :  { %1111 = vtanh.f32 %v360_v14 }
 0x7ab   :  { %v1112_v15 = vpop.eup %1111 }
 0x7ac   :  { %363 = vrot.lane.b32.xlu1 %v1112_v15, %s1252_s26 }
 0x7b0   :  { %368 = vrot.lane.b32.xlu1 %v360_v14, %s1260_s2 }
 0x81e   :  { %v364_v18 = vpop.permute.xlu1 %363 }
 0x81f   :  { %v366_v19 = vmul.f32 %v1110_v8, %v364_v18  ;;  %v1084_v8 = vld [vmem:[#allocation8 + $0x8] sm:$0xff]  }
 0x821   :  { %373 = vrot.lane.b32.xlu0 %v366_v19, %s1255_s1 }
 0x822   :  { %v369_v20 = vpop.permute.xlu1 %368 }
 0x823   :  { %371 = vst.msk [vmem:[#allocation3] sm:$0x3] %vm64_vm0, %v369_v20 }
 0x82a   :  { %v448_v21 = vld [vmem:[#allocation3] sm:$0x3] }
 0x82b   :  { %450 = vrot.lane.b32.xlu1 %v448_v21, %s1255_s1 }
 0x893   :  { %v374_v22 = vpop.permute.xlu0 %373 }
 0x894   :  { %376 = vst.msk [vmem:[#allocation2] sm:$0x3] %vm64_vm0, %v374_v22 }
 0x89b   :  { %v379_v23 = vld [vmem:[#allocation2] sm:$0x3] }
 0x89c   :  { %v380_v24 = vpack.c.bf16 %v379_v23, %v379_v23 }
 0x89d   :  { %v451_v38 = vpop.permute.xlu1 %450 }
 0x89e   :  { %1027 = vmatmul.mubr.msk.bf16.vlgmr.msra.gmra.mrb[4].mxu1 %vm86_vm2, %v380_v24 }
 0x89f   :  { %1042 = vmatprep.mubr.msk.bf16.mxu1 %vm1259_vm1, %v1258_v1  ;;  %1039 = vmatpush3.bf16.msra.mxu1 %v1083_v7  ;;  %v790_v7 = vld [vmem:[#allocation5 + $0xe] sm:$0x3] }
 0x8a0   :  { %1040 = vmatprep.subr.bf16.mxu1 %v1258_v1 }
 0x8a3   :  { %1041 = vmatpush3.bf16.msra.mxu1 %v1084_v8 }
 0x8a4   :  { %1054 = vmatprep.subr.bf16.mxu1 %v1258_v1 }
 0x971   :  { %v434_v26 = vpop.f32.mrb[4].mxu1 }
 0x972   :  { %v440_v27 = vadd.f32 %v434_v26, %v378_v25  ;;  %v1028_v28 = vpop.f32.mrb[5].mxu1 }
 0x973   :  { %v437_v29 = vpop.f32.mrb[6].mxu1 }
 0x974   :  { %1113 = vtanh.f32 %v440_v27  ;;  %v1029_v30 = vpop.f32.mrb[7].mxu1  ;;  %v954_v32 = vmul.f32 -1.442695, %v440_v27 }
 0x976   :  { %1115 = vpow2.f32 %v954_v32 }
 0x97e   :  { %v1114_v31 = vpop.eup %1113 }
 0x97f   :  { %455 = vrot.lane.b32.xlu0 %v1114_v31, %s1252_s26 }
 0x980   :  { %v1116_v33 = vpop.eup %1115 }
 0x981   :  { %v444_v34 = vadd.f32 1.0, %v1116_v33 }
 0x983   :  { %1117 = vrcp.f32 %v444_v34  ;;  %v1085_v34 = vld [vmem:[#allocation8] sm:$0xff]  }
 0x98d   :  { %v1118_v35 = vpop.eup %1117 }
 0x98e   :  { %v453_v39 = vmul.f32 %v1118_v35, %v451_v38 }
 0x9f1   :  { %v456_v36 = vpop.permute.xlu0 %455 }
 0x9f2   :  { %v458_v37 = vmul.f32 %v1118_v35, %v456_v36 }
 0x9f4   :  { %460 = vrot.lane.b32.xlu0 %v458_v37, %s1255_s1 }
 0xa66   :  { %v461_v40 = vpop.permute.xlu0 %460 }
 0xa67   :  { %v463_v41 = vadd.f32 %v461_v40, %v453_v39 }
 0xa69   :  { %1119 = vtanh.f32 %v463_v41 }
 0xa73   :  { %v1120_v42 = vpop.eup %1119 }
 0xa74   :  { %466 = vrot.lane.b32.xlu1 %v1120_v42, %s1252_s26 }
 0xa78   :  { %471 = vrot.lane.b32.xlu1 %v463_v41, %s1260_s2 }
 0xae6   :  { %v467_v45 = vpop.permute.xlu1 %466 }
 0xae7   :  { %v469_v46 = vmul.f32 %v1118_v35, %v467_v45  ;;  %v1086_v35 = vld [vmem:[#allocation8 + $0x8] sm:$0xff]  }
 0xae9   :  { %476 = vrot.lane.b32.xlu0 %v469_v46, %s1255_s1 }
 0xaea   :  { %v472_v47 = vpop.permute.xlu1 %471 }
 0xaeb   :  { %474 = vst.msk [vmem:[#allocation3] sm:$0x3] %vm64_vm0, %v472_v47 }
 0xaf2   :  { %v551_v48 = vld [vmem:[#allocation3] sm:$0x3] }
 0xaf3   :  { %553 = vrot.lane.b32.xlu1 %v551_v48, %s1255_s1 }
 0xb5b   :  { %v477_v49 = vpop.permute.xlu0 %476 }
 0xb5c   :  { %479 = vst.msk [vmem:[#allocation2] sm:$0x3] %vm64_vm0, %v477_v49 }
 0xb63   :  { %v482_v50 = vld [vmem:[#allocation2] sm:$0x3] }
 0xb64   :  { %v483_v51 = vpack.c.bf16 %v482_v50, %v482_v50 }
 0xb65   :  { %v554_v2 = vpop.permute.xlu1 %553 }
 0xb66   :  { %1035 = vmatmul.mubr.msk.bf16.vlgmr.msra.gmra.mrb[8].mxu0 %vm86_vm2, %v483_v51 }
 0xb67   :  { %1050 = vmatprep.mubr.msk.bf16.mxu0 %vm1259_vm1, %v1258_v1  ;;  %1047 = vmatpush3.bf16.msra.mxu0 %v1085_v34 }
 0xb68   :  { %1048 = vmatprep.subr.bf16.mxu0 %v1258_v1 }
 0xb6b   :  { %1049 = vmatpush3.bf16.msra.mxu0 %v1086_v35 }
 0xc39   :  { %v537_v53 = vpop.f32.mrb[8].mxu0 }
 0xc3a   :  { %v543_v54 = vadd.f32 %v537_v53, %v481_v52  ;;  %v1036_v55 = vpop.f32.mrb[9].mxu0 }
 0xc3b   :  { %v540_v56 = vpop.f32.mrb[10].mxu0 }
 0xc3c   :  { %1121 = vtanh.f32 %v543_v54  ;;  %v1037_v57 = vpop.f32.mrb[11].mxu0  ;;  %v958_v59 = vmul.f32 -1.442695, %v543_v54 }
 0xc3e   :  { %1123 = vpow2.f32 %v958_v59 }
 0xc46   :  { %v1122_v58 = vpop.eup %1121 }
 0xc47   :  { %558 = vrot.lane.b32.xlu0 %v1122_v58, %s1252_s26 }
 0xc48   :  { %v1124_v60 = vpop.eup %1123 }
 0xc49   :  { %v547_v61 = vadd.f32 1.0, %v1124_v60 }
 0xc4b   :  { %1125 = vrcp.f32 %v547_v61  ;;  %v1087_v61 = vld [vmem:[#allocation8] sm:$0xff]  }
 0xc55   :  { %v1126_v62 = vpop.eup %1125 }
 0xc56   :  { %v556_v3 = vmul.f32 %v1126_v62, %v554_v2 }
 0xcb9   :  { %v559_v63 = vpop.permute.xlu0 %558 }
 0xcba   :  { %v561_v0 = vmul.f32 %v1126_v62, %v559_v63 }
 0xcbc   :  { %563 = vrot.lane.b32.xlu0 %v561_v0, %s1255_s1 }
 0xd2e   :  { %v564_v4 = vpop.permute.xlu0 %563 }
 0xd2f   :  { %v566_v5 = vadd.f32 %v564_v4, %v556_v3 }
 0xd31   :  { %1127 = vtanh.f32 %v566_v5 }
 0xd3b   :  { %v1128_v6 = vpop.eup %1127 }
 0xd3c   :  { %569 = vrot.lane.b32.xlu1 %v1128_v6, %s1252_s26 }
 0xd40   :  { %574 = vrot.lane.b32.xlu1 %v566_v5, %s1260_s2 }
 0xdae   :  { %v570_v9 = vpop.permute.xlu1 %569 }
 0xdaf   :  { %v572_v10 = vmul.f32 %v1126_v62, %v570_v9  ;;  %v1088_v62 = vld [vmem:[#allocation8 + $0x8] sm:$0xff]  }
 0xdb1   :  { %579 = vrot.lane.b32.xlu0 %v572_v10, %s1255_s1 }
 0xdb2   :  { %v575_v11 = vpop.permute.xlu1 %574 }
 0xdb3   :  { %577 = vst.msk [vmem:[#allocation3] sm:$0x3] %vm64_vm0, %v575_v11 }
 0xdba   :  { %v654_v12 = vld [vmem:[#allocation3] sm:$0x3] }
 0xdbb   :  { %656 = vrot.lane.b32.xlu1 %v654_v12, %s1255_s1 }
 0xe23   :  { %v580_v13 = vpop.permute.xlu0 %579 }
 0xe24   :  { %582 = vst.msk [vmem:[#allocation2] sm:$0x3] %vm64_vm0, %v580_v13 }
 0xe2b   :  { %v585_v14 = vld [vmem:[#allocation2] sm:$0x3] }
 0xe2c   :  { %v586_v15 = vpack.c.bf16 %v585_v14, %v585_v14 }
 0xe2d   :  { %v657_v29 = vpop.permute.xlu1 %656 }
 0xe2e   :  { %1043 = vmatmul.mubr.msk.bf16.vlgmr.msra.gmra.mrb[8].mxu1 %vm86_vm2, %v586_v15 }
 0xe2f   :  { %1058 = vmatprep.mubr.msk.bf16.mxu1 %vm1259_vm1, %v1258_v1  ;;  %1055 = vmatpush3.bf16.msra.mxu1 %v1087_v61 }
 0xe30   :  { %1056 = vmatprep.subr.bf16.mxu1 %v1258_v1 }
 0xe33   :  { %1057 = vmatpush3.bf16.msra.mxu1 %v1088_v62 }
 0xf01   :  { %v640_v17 = vpop.f32.mrb[8].mxu1 }
 0xf02   :  { %v646_v18 = vadd.f32 %v640_v17, %v584_v16  ;;  %v1044_v19 = vpop.f32.mrb[9].mxu1 }
 0xf03   :  { %v643_v20 = vpop.f32.mrb[10].mxu1 }
 0xf04   :  { %1129 = vtanh.f32 %v646_v18  ;;  %v1045_v21 = vpop.f32.mrb[11].mxu1  ;;  %v962_v23 = vmul.f32 -1.442695, %v646_v18 }
 0xf06   :  { %1131 = vpow2.f32 %v962_v23 }
 0xf0e   :  { %v1130_v22 = vpop.eup %1129 }
 0xf0f   :  { %661 = vrot.lane.b32.xlu0 %v1130_v22, %s1252_s26 }
 0xf10   :  { %v1132_v24 = vpop.eup %1131 }
 0xf11   :  { %v650_v25 = vadd.f32 1.0, %v1132_v24 }
 0xf13   :  { %1133 = vrcp.f32 %v650_v25 }
 0xf1d   :  { %v1134_v26 = vpop.eup %1133 }
 0xf1e   :  { %v659_v30 = vmul.f32 %v1134_v26, %v657_v29 }
 0xf81   :  { %v662_v27 = vpop.permute.xlu0 %661 }
 0xf82   :  { %v664_v28 = vmul.f32 %v1134_v26, %v662_v27 }
 0xf84   :  { %666 = vrot.lane.b32.xlu0 %v664_v28, %s1255_s1  ;;  %v971_v28 = vld [vmem:[#allocation10] ss:$0 sm:$0xff] }
 0xff6   :  { %v667_v31 = vpop.permute.xlu0 %666 }
 0xff7   :  { %v669_v32 = vadd.f32 %v667_v31, %v659_v30 }
 0xff9   :  { %1135 = vtanh.f32 %v669_v32 }
0x1003   :  { %v1136_v33 = vpop.eup %1135 }
0x1004   :  { %672 = vrot.lane.b32.xlu1 %v1136_v33, %s1252_s26 }
0x1008   :  { %677 = vrot.lane.b32.xlu1 %v669_v32, %s1260_s2  ;;  %v972_v32 = vld [vmem:[#allocation4] ss:$0 sm:$0xff] }
0x1076   :  { %v673_v36 = vpop.permute.xlu1 %672 }
0x1077   :  { %v675_v37 = vmul.f32 %v1134_v26, %v673_v36 }
0x1079   :  { %682 = vrot.lane.b32.xlu0 %v675_v37, %s1255_s1 }
0x107a   :  { %v678_v38 = vpop.permute.xlu1 %677 }
0x107b   :  { %680 = vst.msk [vmem:[#allocation3] sm:$0x3] %vm64_vm0, %v678_v38 }
0x1082   :  { %v757_v39 = vld [vmem:[#allocation3] sm:$0x3] }
0x1083   :  { %759 = vrot.lane.b32.xlu1 %v757_v39, %s1255_s1 }
0x10eb   :  { %v683_v40 = vpop.permute.xlu0 %682 }
0x10ec   :  { %685 = vst.msk [vmem:[#allocation2] sm:$0x3] %vm64_vm0, %v683_v40 }
0x10f3   :  { %v688_v41 = vld [vmem:[#allocation2] sm:$0x3] }
0x10f4   :  { %v689_v42 = vpack.c.bf16 %v688_v41, %v688_v41 }
0x10f5   :  { %v760_v56 = vpop.permute.xlu1 %759 }
0x10f6   :  { %1051 = vmatmul.mubr.msk.bf16.vlgmr.msra.gmra.mrb[12].mxu0 %vm86_vm2, %v689_v42 }
0x11c9   :  { %v743_v44 = vpop.f32.mrb[12].mxu0 }
0x11ca   :  { %v749_v45 = vadd.f32 %v743_v44, %v687_v43  ;;  %v1052_v46 = vpop.f32.mrb[13].mxu0 }
0x11cb   :  { %v746_v47 = vpop.f32.mrb[14].mxu0 }
0x11cc   :  { %1137 = vtanh.f32 %v749_v45  ;;  %v1053_v48 = vpop.f32.mrb[15].mxu0  ;;  %v966_v50 = vmul.f32 -1.442695, %v749_v45 }
0x11ce   :  { %1139 = vpow2.f32 %v966_v50 }
0x11d6   :  { %v1138_v49 = vpop.eup %1137 }
0x11d7   :  { %764 = vrot.lane.b32.xlu0 %v1138_v49, %s1252_s26 }
0x11d8   :  { %v1140_v51 = vpop.eup %1139 }
0x11d9   :  { %v753_v52 = vadd.f32 1.0, %v1140_v51 }
0x11db   :  { %1141 = vrcp.f32 %v753_v52 }
0x11e5   :  { %v1142_v53 = vpop.eup %1141 }
0x11e6   :  { %v762_v57 = vmul.f32 %v1142_v53, %v760_v56 }
0x1249   :  { %v765_v54 = vpop.permute.xlu0 %764 }
0x124a   :  { %v767_v55 = vmul.f32 %v1142_v53, %v765_v54 }
0x124c   :  { %769 = vrot.lane.b32.xlu0 %v767_v55, %s1255_s1 }
0x12be   :  { %v770_v58 = vpop.permute.xlu0 %769 }
0x12bf   :  { %v772_v59 = vadd.f32 %v770_v58, %v762_v57 }
0x12c1   :  { %1143 = vtanh.f32 %v772_v59 }
0x12cb   :  { %v1144_v60 = vpop.eup %1143 }
0x12cc   :  { %775 = vrot.lane.b32.xlu1 %v1144_v60, %s1252_s26 }
0x12d0   :  { %780 = vrot.lane.b32.xlu1 %v772_v59, %s1260_s2 }
0x133e   :  { %v776_v63 = vpop.permute.xlu1 %775 }
0x133f   :  { %v778_v0 = vmul.f32 %v1142_v53, %v776_v63 }
0x1341   :  { %785 = vrot.lane.b32.xlu0 %v778_v0, %s1255_s1 }
0x1342   :  { %v781_v2 = vpop.permute.xlu1 %780 }
0x1343   :  { %783 = vst.msk [vmem:[#allocation3] sm:$0x3] %vm64_vm0, %v781_v2 }
0x134a   :  { %v860_v3 = vld [vmem:[#allocation3] sm:$0x3] }
0x134b   :  { %862 = vrot.lane.b32.xlu1 %v860_v3, %s1255_s1 }
0x13b3   :  { %v786_v4 = vpop.permute.xlu0 %785 }
0x13b4   :  { %788 = vst.msk [vmem:[#allocation2] sm:$0x3] %vm64_vm0, %v786_v4 }
0x13bb   :  { %v791_v5 = vld [vmem:[#allocation2] sm:$0x3] }
0x13bc   :  { %v792_v6 = vpack.c.bf16 %v791_v5, %v791_v5 }
0x13bd   :  { %v863_v19 = vpop.permute.xlu1 %862 }
0x13be   :  { %1059 = vmatmul.mubr.msk.bf16.vlgmr.msra.gmra.mrb[12].mxu1 %vm86_vm2, %v792_v6 }
0x1491   :  { %v846_v1 = vpop.f32.mrb[12].mxu1 }
0x1492   :  { %v852_v8 = vadd.f32 %v846_v1, %v790_v7  ;;  %v1060_v9 = vpop.f32.mrb[13].mxu1 }
0x1493   :  { %v849_v10 = vpop.f32.mrb[14].mxu1 }
0x1494   :  { %1145 = vtanh.f32 %v852_v8  ;;  %v1061_v11 = vpop.f32.mrb[15].mxu1  ;;  %v970_v13 = vmul.f32 -1.442695, %v852_v8 }
0x1496   :  { %1147 = vpow2.f32 %v970_v13 }
0x149e   :  { %v1146_v12 = vpop.eup %1145 }
0x149f   :  { %867 = vrot.lane.b32.xlu0 %v1146_v12, %s1252_s26 }
0x14a0   :  { %v1148_v14 = vpop.eup %1147 }
0x14a1   :  { %v856_v15 = vadd.f32 1.0, %v1148_v14 }
0x14a3   :  { %1149 = vrcp.f32 %v856_v15 }
0x14ad   :  { %v1150_v16 = vpop.eup %1149 }
0x14ae   :  { %v865_v20 = vmul.f32 %v1150_v16, %v863_v19 }
0x1511   :  { %v868_v17 = vpop.permute.xlu0 %867 }
0x1512   :  { %v870_v18 = vmul.f32 %v1150_v16, %v868_v17 }
0x1514   :  { %872 = vrot.lane.b32.xlu0 %v870_v18, %s1255_s1 }
0x1586   :  { %v873_v21 = vpop.permute.xlu0 %872 }
0x1587   :  { %v875_v22 = vadd.f32 %v873_v21, %v865_v20 }
0x1589   :  { %1151 = vtanh.f32 %v875_v22 }
0x1593   :  { %v1152_v23 = vpop.eup %1151 }
0x1594   :  { %878 = vrot.lane.b32.xlu1 %v1152_v23, %s1252_s26  ;;  %s1261_s26 = smov [#allocation11]  }
0x1595   :  { %s929_s29 = sshll.u32 %s1261_s26, 4  ;;  %s930_s29 = int_to_ptr.vmem [resolvable:$true] %s929_s29 }
0x1596   :  { %s1223_s30 = scalar_lea.vmem %s930_s29, 32  ;;  %p1228_p11 = scmp.lt.s32.totalorder %s930_s29, %s930_s29 }
0x1597   :  { %p1224_p10 = scmp.ne.s32.totalorder %s930_s29, %s1223_s30  ;;  %p1229_p12 = scmp.lt.s32.totalorder %s1223_s30, %s1223_s30 }
0x1599   :  { %p1230_p13 = por %p1229_p12, %p1228_p11 }
0x159b   :  { %p1231_p0 = pnand %p1230_p13, %p1224_p10 }
0x1606   :  { %v879_v24 = vpop.permute.xlu1 %878 }
0x1607   :  { %v881_v25 = vmul.f32 %v1150_v16, %v879_v24 }
0x1609   :  { %888 = vrot.lane.b32.xlu0 %v881_v25, %s1255_s1 }
0x160d   :  { %883 = vrot.lane.b32.xlu0 %v875_v22, %s1260_s2 }
0x167b   :  { %v889_v26 = vpop.permute.xlu0 %888 }
0x167c   :  { %891 = vst.msk [vmem:[#allocation2] sm:$0x3] %vm64_vm0, %v889_v26 }
0x167f   :  { %v884_v27 = vpop.permute.xlu0 %883 }
0x1680   :  { %886 = vst.msk [vmem:[#allocation3] sm:$0x3] %vm64_vm0, %v884_v27 }
0x1683   :  { %v895_v29 = vld [vmem:[#allocation2] sm:$0x3] }
0x1684   :  { %v903_v30 = vmul.f32 %v971_v28, %v895_v29 }
0x1686   :  { %v904_v31 = vsel %vm64_vm0, %v903_v30, 0.0 }
0x1687   :  { %905 = vadd.xlane.f32.xlu1 %v904_v31 }
0x1714   :  { %v906_v33 = vpop.xlane.xlu1 %905 }
0x1715   :  { %v914_v34 = vadd.f32 %v972_v32, %v906_v33 }
0x1717   :  { %v973_v35 = vmul.f32 -1.442695, %v914_v34 }
0x1719   :  { %1153 = vpow2.f32 %v973_v35 }
0x1723   :  { %v1154_v36 = vpop.eup %1153 }
0x1724   :  { %v918_v37 = vadd.f32 1.0, %v1154_v36 }
0x1726   :  { %1155 = vrcp.f32 %v918_v37 }
0x1730   :  { %v1156_v38 = vpop.eup %1155 }
0x1731   :  { %922 = vst.msk [vmem:[#allocation11] sm:$0x3] %vm921_vm3, %v1156_v38 }
0x1732   :  { %1234 = shalt.err (!%p1231_p0)
}
0x1733   :  { %s1235_s7 = scalar_lea.hbm %s1455_s4, 32 }
0x1734   :  { %p1236_p1 = scmp.ne.s32.totalorder %s1455_s4, %s1235_s7  ;;  %p1239_p2 = scmp.lt.u32.totalorder %s1235_s7, %s1455_s4 }
0x1736   :  { %p1241_p3 = pnand %p1239_p2, %p1236_p1 }
0x1738   :  { %1244 = shalt.err (!%p1241_p3)
}
0x1739   :  { %932 = dma.vmem_to_hbm [thread:$0]  %s930_s29, 32, %s1455_s4, [#allocation7]  }
0x173a   :  { %1249 = dma.done.wait [#allocation7], 32  }
0x173b   :  { %1250 = vsyncadd [#allocation7], 4294967264 }
0x173c   :  { %936 = vsyncpa [#allocation6], 1 }
0x173d   :  { %937 = vsyncpa [#allocation9], 1 }
0x173e   :  { %938 = vsyncpa [#allocation7], 1 }

// kernel: lstm_net_forward.5
= control target key start
LH: loop header
LB: loop body
LE: loop exit
PB: predicated region body
PF: predicated region fallthrough
CT: control target
= control target key end

     0   :  { %7 = vsyncpa [#allocation5], 0  ;;  %s1566_s0 = inlined_call_operand.hbm [shape: f32[8,2,128], index: 0, kind: input, shape index: {}]   ;;  %s1567_s1 = inlined_call_operand.hbm [shape: bf16[32,128], index: 1, kind: input, shape index: {}]   ;;  %s1568_s2 = inlined_call_operand.hbm [shape: bf16[8,2,32], index: 2, kind: output, shape index: {}]  }
   0x1   :  { %8 = vsyncpa [#allocation8], 0 }
   0x2   :  { %9 = vsyncpa [#allocation6], 0  ;;  %s1344_s9 = smov [#allocation4]   ;;  %s1272_s13 = scalar_lea.hbm %s1566_s0, 256 }
   0x3   :  { %s15_s10 = sshll.u32 %s1344_s9, 4  ;;  %p1273_p0 = scmp.ne.s32.totalorder %s1566_s0, %s1272_s13  ;;  %s16_s10 = int_to_ptr.vmem [resolvable:$true] %s15_s10 }
   0x4   :  { %p1276_p1 = scmp.lt.u32.totalorder %s1272_s13, %s1566_s0 }
   0x6   :  { %p1278_p2 = pnand %p1276_p1, %p1273_p0 }
   0x8   :  { %1281 = shalt.err (!%p1278_p2)
}
   0x9   :  { %s1282_s18 = scalar_lea.vmem %s16_s10, 256  ;;  %p1287_p4 = scmp.lt.s32.totalorder %s16_s10, %s16_s10 }
   0xa   :  { %p1283_p3 = scmp.ne.s32.totalorder %s16_s10, %s1282_s18  ;;  %p1288_p5 = scmp.lt.s32.totalorder %s1282_s18, %s1282_s18 }
   0xc   :  { %p1289_p6 = por %p1288_p5, %p1287_p4 }
   0xe   :  { %p1290_p7 = pnand %p1289_p6, %p1283_p3 }
  0x10   :  { %1293 = shalt.err (!%p1290_p7)
}
  0x11   :  { %s1345_s19 = smov 32   ;;  %s1346_s20 = smov 2  }
  0x12   :  { %21 = dma.hbm_to_vmem [thread:$0]  %s1566_s0, 256, %s16_s10, [#allocation5], %s1345_s19, %s1345_s19, %s1346_s20  }
  0x13   :  { %s1347_s23 = smov [#allocation7]   ;;  %s1294_s27 = scalar_lea.hbm %s1567_s1, 256 }
  0x14   :  { %s27_s24 = sshll.u32 %s1347_s23, 4  ;;  %p1295_p8 = scmp.ne.s32.totalorder %s1567_s1, %s1294_s27  ;;  %s28_s24 = int_to_ptr.vmem [resolvable:$true] %s27_s24 }
  0x15   :  { %p1298_p9 = scmp.lt.u32.totalorder %s1294_s27, %s1567_s1 }
  0x17   :  { %p1300_p10 = pnand %p1298_p9, %p1295_p8 }
  0x19   :  { %1303 = shalt.err (!%p1300_p10)
}
  0x1a   :  { %s1304_s4 = scalar_lea.vmem %s28_s24, 256  ;;  %p1309_p12 = scmp.lt.s32.totalorder %s28_s24, %s28_s24 }
  0x1b   :  { %p1305_p11 = scmp.ne.s32.totalorder %s28_s24, %s1304_s4  ;;  %p1310_p13 = scmp.lt.s32.totalorder %s1304_s4, %s1304_s4 }
  0x1d   :  { %p1311_p0 = por %p1310_p13, %p1309_p12 }
  0x1f   :  { %p1312_p1 = pnand %p1311_p0, %p1305_p11 }
  0x21   :  { %1315 = shalt.err (!%p1312_p1)
}
  0x22   :  { %s1348_s0 = smov 64   ;;  %s1349_s5 = smov 4  }
  0x23   :  { %33 = dma.hbm_to_vmem [thread:$0]  %s1567_s1, 256, %s28_s24, [#allocation8], %s1348_s0, %s1348_s0, %s1349_s5  }
  0x24   :  { %1338 = dma.done.wait [#allocation5], 256  }
  0x25   :  { %1339 = vsyncadd [#allocation5], 4294967040 }
  0x26   :  { %1340 = dma.done.wait [#allocation8], 256  }
  0x27   :  { %1341 = vsyncadd [#allocation8], 4294967040  ;;  %vm45_vm0 = vcmask 254976   ;;  %v1350_v0 = vmov 0.0   ;;  %vm1351_vm1 = vmmov 0   ;;  %v1192_v1 = vld [vmem:[#allocation7] sm:$0xff]  }
  0x28   :  { %1115 = vmatprep.subr.bf16.mxu0 %v1350_v0  ;;  %1119 = vmatprep.mubr.msk.bf16.mxu0 %vm1351_vm1, %v1350_v0  ;;  %46 = vst.msk [vmem:[#allocation2] sm:$0x3] %vm45_vm0, %v1350_v0  ;;  %47 = vst.msk [vmem:[#allocation3] sm:$0x3] %vm45_vm0, %v1350_v0  ;;  %v1193_v2 = vld [vmem:[#allocation7 + $0x8] sm:$0xff]   ;;  %vm67_vm2 = vcmask 261120  }
  0x29   :  { %1123 = vmatprep.subr.bf16.mxu1 %v1350_v0  ;;  %1127 = vmatprep.mubr.msk.bf16.mxu1 %vm1351_vm1, %v1350_v0  ;;  %v48_v5 = vld [vmem:[#allocation4] sm:$0x3]  ;;  %s1352_s1 = smov 96   ;;  %v1194_v24 = vld [vmem:[#allocation7] sm:$0xff]   ;;  %v1195_v25 = vld [vmem:[#allocation7 + $0x8] sm:$0xff]   ;;  %vm171_vm3 = vcmask 253952  }
  0x2a   :  { %1116 = vmatpush3.bf16.msra.mxu0 %v1192_v1  ;;  %1124 = vmatpush3.bf16.msra.mxu1 %v1194_v24  ;;  %v174_v33 = vld [vmem:[#allocation4 + $0x2] sm:$0x3]  ;;  %v1196_v51 = vld [vmem:[#allocation7] sm:$0xff]   ;;  %v1197_v52 = vld [vmem:[#allocation7 + $0x8] sm:$0xff]   ;;  %s1354_s8 = smov [#allocation9]  }
  0x2b   :  { %1117 = vmatprep.subr.bf16.mxu0 %v1350_v0  ;;  %1125 = vmatprep.subr.bf16.mxu1 %v1350_v0  ;;  %v298_v60 = vld [vmem:[#allocation4 + $0x4] sm:$0x3]  ;;  %v422_v24 = vld [vmem:[#allocation4 + $0x6] sm:$0x3]  ;;  %s1046_s9 = sshll.u32 %s1354_s8, 4  ;;  %s1047_s9 = int_to_ptr.vmem [resolvable:$true] %s1046_s9 }
  0x2c   :  { %s1316_s10 = scalar_lea.vmem %s1047_s9, 128  ;;  %p1321_p3 = scmp.lt.s32.totalorder %s1047_s9, %s1047_s9 }
  0x2d   :  { %p1317_p2 = scmp.ne.s32.totalorder %s1047_s9, %s1316_s10  ;;  %p1322_p4 = scmp.lt.s32.totalorder %s1316_s10, %s1316_s10 }
  0x2e   :  { %1118 = vmatpush3.bf16.msra.mxu0 %v1193_v2  ;;  %1126 = vmatpush3.bf16.msra.mxu1 %v1195_v25 }
  0x2f   :  { %v49_v3 = vld [vmem:[#allocation2] sm:$0x3]  ;;  %1131 = vmatprep.subr.bf16.mxu0 %v1350_v0  ;;  %v119_v12 = vld [vmem:[#allocation3] sm:$0x3]  ;;  %1139 = vmatprep.subr.bf16.mxu1 %v1350_v0  ;;  %p1323_p5 = por %p1322_p4, %p1321_p3 }
  0x30   :  { %v50_v4 = vpack.c.bf16 %v49_v3, %v49_v3 }
  0x31   :  { %p1324_p6 = pnand %p1323_p5, %p1317_p2 }
  0x32   :  { %1120 = vmatmul.mubr.msk.bf16.vlgmr.msra.gmra.mrb[0].mxu0 %vm67_vm2, %v50_v4 }
  0x33   :  { %1135 = vmatprep.mubr.msk.bf16.mxu0 %vm1351_vm1, %v1350_v0  ;;  %1132 = vmatpush3.bf16.msra.mxu0 %v1196_v51 }
  0x34   :  { %1133 = vmatprep.subr.bf16.mxu0 %v1350_v0 }
  0x37   :  { %1134 = vmatpush3.bf16.msra.mxu0 %v1197_v52  ;;  %v546_v52 = vld [vmem:[#allocation4 + $0x8] sm:$0x3] }
  0x38   :  { %1147 = vmatprep.subr.bf16.mxu0 %v1350_v0 }
 0x105   :  { %v105_v6 = vpop.f32.mrb[0].mxu0 }
 0x106   :  { %v111_v7 = vadd.f32 %v105_v6, %v48_v5  ;;  %v1121_v8 = vpop.f32.mrb[1].mxu0 }
 0x107   :  { %v108_v9 = vpop.f32.mrb[2].mxu0 }
 0x108   :  { %v1122_v10 = vpop.f32.mrb[3].mxu0  ;;  %1208 = vtanh.f32 %v111_v7  ;;  %v1062_v13 = vmul.f32 -1.442695, %v111_v7 }
 0x10a   :  { %1210 = vpow2.f32 %v1062_v13 }
 0x112   :  { %v1209_v11 = vpop.eup %1208 }
 0x113   :  { %126 = vrot.lane.b32.xlu0 %v1209_v11, %s1348_s0 }
 0x114   :  { %v1211_v14 = vpop.eup %1210 }
 0x115   :  { %v115_v15 = vadd.f32 1.0, %v1211_v14 }
 0x117   :  { %121 = vrot.lane.b32.xlu0 %v119_v12, %s1345_s19  ;;  %1212 = vrcp.f32 %v115_v15  ;;  %v1198_v15 = vld [vmem:[#allocation7] sm:$0xff]  }
 0x121   :  { %v1213_v16 = vpop.eup %1212 }
 0x185   :  { %v127_v17 = vpop.permute.xlu0 %126 }
 0x186   :  { %v129_v18 = vmul.f32 %v1213_v16, %v127_v17 }
 0x188   :  { %131 = vrot.lane.b32.xlu1 %v129_v18, %s1345_s19 }
 0x189   :  { %v122_v19 = vpop.permute.xlu0 %121 }
 0x18a   :  { %v124_v20 = vmul.f32 %v1213_v16, %v122_v19 }
 0x1fa   :  { %v132_v21 = vpop.permute.xlu1 %131 }
 0x1fb   :  { %v134_v22 = vadd.f32 %v132_v21, %v124_v20 }
 0x1fd   :  { %1214 = vtanh.f32 %v134_v22 }
 0x207   :  { %v1215_v23 = vpop.eup %1214 }
 0x208   :  { %137 = vrot.lane.b32.xlu1 %v1215_v23, %s1348_s0 }
 0x20c   :  { %142 = vrot.lane.b32.xlu1 %v134_v22, %s1352_s1 }
 0x27a   :  { %v138_v26 = vpop.permute.xlu1 %137 }
 0x27b   :  { %v1422_v27 = vmul.f32 %v1213_v16, %v138_v26  ;;  %v1199_v16 = vld [vmem:[#allocation7 + $0x8] sm:$0xff]  }
 0x27d   :  { %148 = vrot.lane.b32.xlu0 %v1422_v27, %s1345_s19 }
 0x27e   :  { %v143_v28 = vpop.permute.xlu1 %142 }
 0x27f   :  { %146 = vst.msk [vmem:[#allocation3] sm:$0x3] %vm45_vm0, %v143_v28 }
 0x286   :  { %v244_v29 = vld [vmem:[#allocation3] sm:$0x3] }
 0x287   :  { %246 = vrot.lane.b32.xlu1 %v244_v29, %s1345_s19 }
 0x2ef   :  { %v149_v30 = vpop.permute.xlu0 %148 }
 0x2f0   :  { %151 = vst.msk [vmem:[#allocation2] sm:$0x3] %vm45_vm0, %v149_v30 }
 0x2f7   :  { %v175_v31 = vld [vmem:[#allocation2] sm:$0x3] }
 0x2f8   :  { %v176_v32 = vpack.c.bf16 %v175_v31, %v175_v31 }
 0x2f9   :  { %v247_v46 = vpop.permute.xlu1 %246 }
 0x2fa   :  { %1128 = vmatmul.mubr.msk.bf16.vlgmr.msra.gmra.mrb[0].mxu1 %vm67_vm2, %v176_v32 }
 0x2fb   :  { %1143 = vmatprep.mubr.msk.bf16.mxu1 %vm1351_vm1, %v1350_v0  ;;  %1140 = vmatpush3.bf16.msra.mxu1 %v1198_v15 }
 0x2fc   :  { %1141 = vmatprep.subr.bf16.mxu1 %v1350_v0 }
 0x2ff   :  { %1142 = vmatpush3.bf16.msra.mxu1 %v1199_v16 }
 0x300   :  { %1155 = vmatprep.subr.bf16.mxu1 %v1350_v0 }
 0x3cd   :  { %v230_v34 = vpop.f32.mrb[0].mxu1 }
 0x3ce   :  { %v236_v35 = vadd.f32 %v230_v34, %v174_v33  ;;  %v1129_v36 = vpop.f32.mrb[1].mxu1 }
 0x3cf   :  { %v233_v37 = vpop.f32.mrb[2].mxu1 }
 0x3d0   :  { %1216 = vtanh.f32 %v236_v35  ;;  %v1130_v38 = vpop.f32.mrb[3].mxu1  ;;  %v1066_v40 = vmul.f32 -1.442695, %v236_v35 }
 0x3d2   :  { %1218 = vpow2.f32 %v1066_v40 }
 0x3da   :  { %v1217_v39 = vpop.eup %1216 }
 0x3db   :  { %251 = vrot.lane.b32.xlu0 %v1217_v39, %s1348_s0 }
 0x3dc   :  { %v1219_v41 = vpop.eup %1218 }
 0x3dd   :  { %v240_v42 = vadd.f32 1.0, %v1219_v41 }
 0x3df   :  { %1220 = vrcp.f32 %v240_v42 }
 0x3e9   :  { %v1221_v43 = vpop.eup %1220 }
 0x3ea   :  { %v249_v47 = vmul.f32 %v1221_v43, %v247_v46 }
 0x44d   :  { %v252_v44 = vpop.permute.xlu0 %251 }
 0x44e   :  { %v254_v45 = vmul.f32 %v1221_v43, %v252_v44  ;;  %v1201_v44 = vld [vmem:[#allocation7 + $0x8] sm:$0xff]  }
 0x450   :  { %256 = vrot.lane.b32.xlu0 %v254_v45, %s1345_s19 }
 0x4c2   :  { %v257_v48 = vpop.permute.xlu0 %256 }
 0x4c3   :  { %v259_v49 = vadd.f32 %v257_v48, %v249_v47 }
 0x4c5   :  { %1222 = vtanh.f32 %v259_v49 }
 0x4cf   :  { %v1223_v50 = vpop.eup %1222 }
 0x4d0   :  { %262 = vrot.lane.b32.xlu1 %v1223_v50, %s1348_s0 }
 0x4d4   :  { %267 = vrot.lane.b32.xlu1 %v259_v49, %s1352_s1 }
 0x542   :  { %v263_v53 = vpop.permute.xlu1 %262 }
 0x543   :  { %v1438_v54 = vmul.f32 %v1221_v43, %v263_v53  ;;  %v1200_v43 = vld [vmem:[#allocation7] sm:$0xff]  }
 0x545   :  { %272 = vrot.lane.b32.xlu0 %v1438_v54, %s1345_s19 }
 0x546   :  { %v268_v55 = vpop.permute.xlu1 %267 }
 0x547   :  { %270 = vst.msk [vmem:[#allocation3] sm:$0x3] %vm45_vm0, %v268_v55 }
 0x54e   :  { %v368_v56 = vld [vmem:[#allocation3] sm:$0x3] }
 0x54f   :  { %370 = vrot.lane.b32.xlu1 %v368_v56, %s1345_s19 }
 0x5b7   :  { %v273_v57 = vpop.permute.xlu0 %272 }
 0x5b8   :  { %275 = vst.msk [vmem:[#allocation2] sm:$0x3] %vm45_vm0, %v273_v57 }
 0x5bf   :  { %v299_v58 = vld [vmem:[#allocation2] sm:$0x3] }
 0x5c0   :  { %v300_v59 = vpack.c.bf16 %v299_v58, %v299_v58 }
 0x5c1   :  { %v371_v10 = vpop.permute.xlu1 %370 }
 0x5c2   :  { %1136 = vmatmul.mubr.msk.bf16.vlgmr.msra.gmra.mrb[4].mxu0 %vm67_vm2, %v300_v59 }
 0x5c3   :  { %1151 = vmatprep.mubr.msk.bf16.mxu0 %vm1351_vm1, %v1350_v0  ;;  %1148 = vmatpush3.bf16.msra.mxu0 %v1200_v43 }
 0x5c4   :  { %1149 = vmatprep.subr.bf16.mxu0 %v1350_v0 }
 0x5c7   :  { %1150 = vmatpush3.bf16.msra.mxu0 %v1201_v44 }
 0x5c8   :  { %1163 = vmatprep.subr.bf16.mxu0 %v1350_v0 }
 0x695   :  { %v354_v61 = vpop.f32.mrb[4].mxu0 }
 0x696   :  { %v360_v62 = vadd.f32 %v354_v61, %v298_v60  ;;  %v1137_v63 = vpop.f32.mrb[5].mxu0 }
 0x697   :  { %v357_v1 = vpop.f32.mrb[6].mxu0 }
 0x698   :  { %1224 = vtanh.f32 %v360_v62  ;;  %v1138_v2 = vpop.f32.mrb[7].mxu0  ;;  %v1070_v4 = vmul.f32 -1.442695, %v360_v62 }
 0x69a   :  { %1226 = vpow2.f32 %v1070_v4 }
 0x6a2   :  { %v1225_v3 = vpop.eup %1224 }
 0x6a3   :  { %375 = vrot.lane.b32.xlu0 %v1225_v3, %s1348_s0 }
 0x6a4   :  { %v1227_v5 = vpop.eup %1226 }
 0x6a5   :  { %v364_v6 = vadd.f32 1.0, %v1227_v5 }
 0x6a7   :  { %1228 = vrcp.f32 %v364_v6 }
 0x6b1   :  { %v1229_v7 = vpop.eup %1228 }
 0x6b2   :  { %v373_v11 = vmul.f32 %v1229_v7, %v371_v10 }
 0x715   :  { %v376_v8 = vpop.permute.xlu0 %375 }
 0x716   :  { %v378_v9 = vmul.f32 %v1229_v7, %v376_v8  ;;  %v1202_v8 = vld [vmem:[#allocation7] sm:$0xff]  }
 0x718   :  { %380 = vrot.lane.b32.xlu0 %v378_v9, %s1345_s19  ;;  %v1203_v9 = vld [vmem:[#allocation7 + $0x8] sm:$0xff]  }
 0x78a   :  { %v381_v12 = vpop.permute.xlu0 %380 }
 0x78b   :  { %v383_v13 = vadd.f32 %v381_v12, %v373_v11 }
 0x78d   :  { %1230 = vtanh.f32 %v383_v13 }
 0x797   :  { %v1231_v14 = vpop.eup %1230 }
 0x798   :  { %386 = vrot.lane.b32.xlu1 %v1231_v14, %s1348_s0 }
 0x79c   :  { %391 = vrot.lane.b32.xlu1 %v383_v13, %s1352_s1 }
 0x80a   :  { %v387_v17 = vpop.permute.xlu1 %386 }
 0x80b   :  { %v1454_v18 = vmul.f32 %v1229_v7, %v387_v17  ;;  %v670_v17 = vld [vmem:[#allocation4 + $0xa] sm:$0x3] }
 0x80d   :  { %396 = vrot.lane.b32.xlu0 %v1454_v18, %s1345_s19 }
 0x80e   :  { %v392_v19 = vpop.permute.xlu1 %391 }
 0x80f   :  { %394 = vst.msk [vmem:[#allocation3] sm:$0x3] %vm45_vm0, %v392_v19 }
 0x816   :  { %v492_v20 = vld [vmem:[#allocation3] sm:$0x3] }
 0x817   :  { %494 = vrot.lane.b32.xlu1 %v492_v20, %s1345_s19 }
 0x87f   :  { %v397_v21 = vpop.permute.xlu0 %396 }
 0x880   :  { %399 = vst.msk [vmem:[#allocation2] sm:$0x3] %vm45_vm0, %v397_v21 }
 0x887   :  { %v423_v22 = vld [vmem:[#allocation2] sm:$0x3] }
 0x888   :  { %v424_v23 = vpack.c.bf16 %v423_v22, %v423_v22 }
 0x889   :  { %v495_v38 = vpop.permute.xlu1 %494 }
 0x88a   :  { %1144 = vmatmul.mubr.msk.bf16.vlgmr.msra.gmra.mrb[4].mxu1 %vm67_vm2, %v424_v23 }
 0x88b   :  { %1159 = vmatprep.mubr.msk.bf16.mxu1 %vm1351_vm1, %v1350_v0  ;;  %1156 = vmatpush3.bf16.msra.mxu1 %v1202_v8 }
 0x88c   :  { %1157 = vmatprep.subr.bf16.mxu1 %v1350_v0 }
 0x88f   :  { %1158 = vmatpush3.bf16.msra.mxu1 %v1203_v9 }
 0x890   :  { %1171 = vmatprep.subr.bf16.mxu1 %v1350_v0 }
 0x95d   :  { %v478_v25 = vpop.f32.mrb[4].mxu1 }
 0x95e   :  { %v484_v26 = vadd.f32 %v478_v25, %v422_v24  ;;  %v1145_v28 = vpop.f32.mrb[5].mxu1 }
 0x95f   :  { %v481_v29 = vpop.f32.mrb[6].mxu1 }
 0x960   :  { %1232 = vtanh.f32 %v484_v26  ;;  %v1146_v30 = vpop.f32.mrb[7].mxu1  ;;  %v1074_v32 = vmul.f32 -1.442695, %v484_v26 }
 0x962   :  { %1234 = vpow2.f32 %v1074_v32 }
 0x96a   :  { %v1233_v31 = vpop.eup %1232 }
 0x96b   :  { %499 = vrot.lane.b32.xlu0 %v1233_v31, %s1348_s0 }
 0x96c   :  { %v1235_v33 = vpop.eup %1234 }
 0x96d   :  { %v488_v34 = vadd.f32 1.0, %v1235_v33 }
 0x96f   :  { %1236 = vrcp.f32 %v488_v34 }
 0x979   :  { %v1237_v35 = vpop.eup %1236 }
 0x97a   :  { %v497_v39 = vmul.f32 %v1237_v35, %v495_v38  ;;  %v1205_v38 = vld [vmem:[#allocation7 + $0x8] sm:$0xff]  }
 0x9dd   :  { %v500_v36 = vpop.permute.xlu0 %499 }
 0x9de   :  { %v502_v37 = vmul.f32 %v1237_v35, %v500_v36 }
 0x9e0   :  { %504 = vrot.lane.b32.xlu0 %v502_v37, %s1345_s19  ;;  %v1204_v37 = vld [vmem:[#allocation7] sm:$0xff]  }
 0xa52   :  { %v505_v40 = vpop.permute.xlu0 %504 }
 0xa53   :  { %v507_v41 = vadd.f32 %v505_v40, %v497_v39 }
 0xa55   :  { %1238 = vtanh.f32 %v507_v41 }
 0xa5f   :  { %v1239_v42 = vpop.eup %1238 }
 0xa60   :  { %510 = vrot.lane.b32.xlu1 %v1239_v42, %s1348_s0 }
 0xa64   :  { %515 = vrot.lane.b32.xlu1 %v507_v41, %s1352_s1 }
 0xad2   :  { %v511_v45 = vpop.permute.xlu1 %510 }
 0xad3   :  { %v1470_v46 = vmul.f32 %v1237_v35, %v511_v45 }
 0xad5   :  { %520 = vrot.lane.b32.xlu0 %v1470_v46, %s1345_s19 }
 0xad6   :  { %v516_v47 = vpop.permute.xlu1 %515 }
 0xad7   :  { %518 = vst.msk [vmem:[#allocation3] sm:$0x3] %vm45_vm0, %v516_v47  ;;  %v794_v47 = vld [vmem:[#allocation4 + $0xc] sm:$0x3] }
 0xade   :  { %v616_v48 = vld [vmem:[#allocation3] sm:$0x3] }
 0xadf   :  { %618 = vrot.lane.b32.xlu1 %v616_v48, %s1345_s19 }
 0xb47   :  { %v521_v49 = vpop.permute.xlu0 %520 }
 0xb48   :  { %523 = vst.msk [vmem:[#allocation2] sm:$0x3] %vm45_vm0, %v521_v49 }
 0xb4f   :  { %v547_v50 = vld [vmem:[#allocation2] sm:$0x3] }
 0xb50   :  { %v548_v51 = vpack.c.bf16 %v547_v50, %v547_v50 }
 0xb51   :  { %v619_v3 = vpop.permute.xlu1 %618 }
 0xb52   :  { %1152 = vmatmul.mubr.msk.bf16.vlgmr.msra.gmra.mrb[8].mxu0 %vm67_vm2, %v548_v51 }
 0xb53   :  { %1167 = vmatprep.mubr.msk.bf16.mxu0 %vm1351_vm1, %v1350_v0  ;;  %1164 = vmatpush3.bf16.msra.mxu0 %v1204_v37 }
 0xb54   :  { %1165 = vmatprep.subr.bf16.mxu0 %v1350_v0 }
 0xb57   :  { %1166 = vmatpush3.bf16.msra.mxu0 %v1205_v38 }
 0xc25   :  { %v602_v53 = vpop.f32.mrb[8].mxu0 }
 0xc26   :  { %v608_v55 = vadd.f32 %v602_v53, %v546_v52  ;;  %v1153_v56 = vpop.f32.mrb[9].mxu0 }
 0xc27   :  { %v605_v57 = vpop.f32.mrb[10].mxu0 }
 0xc28   :  { %1240 = vtanh.f32 %v608_v55  ;;  %v1154_v58 = vpop.f32.mrb[11].mxu0  ;;  %v1078_v60 = vmul.f32 -1.442695, %v608_v55 }
 0xc2a   :  { %1242 = vpow2.f32 %v1078_v60 }
 0xc32   :  { %v1241_v59 = vpop.eup %1240 }
 0xc33   :  { %623 = vrot.lane.b32.xlu0 %v1241_v59, %s1348_s0 }
 0xc34   :  { %v1243_v61 = vpop.eup %1242 }
 0xc35   :  { %v612_v62 = vadd.f32 1.0, %v1243_v61 }
 0xc37   :  { %1244 = vrcp.f32 %v612_v62 }
 0xc41   :  { %v1245_v63 = vpop.eup %1244 }
 0xc42   :  { %v621_v4 = vmul.f32 %v1245_v63, %v619_v3  ;;  %v1206_v3 = vld [vmem:[#allocation7] sm:$0xff]  }
 0xca5   :  { %v624_v1 = vpop.permute.xlu0 %623 }
 0xca6   :  { %v626_v2 = vmul.f32 %v1245_v63, %v624_v1 }
 0xca8   :  { %628 = vrot.lane.b32.xlu0 %v626_v2, %s1345_s19 }
 0xd1a   :  { %v629_v5 = vpop.permute.xlu0 %628 }
 0xd1b   :  { %v631_v6 = vadd.f32 %v629_v5, %v621_v4  ;;  %v1207_v4 = vld [vmem:[#allocation7 + $0x8] sm:$0xff]  }
 0xd1d   :  { %1246 = vtanh.f32 %v631_v6 }
 0xd27   :  { %v1247_v7 = vpop.eup %1246 }
 0xd28   :  { %634 = vrot.lane.b32.xlu1 %v1247_v7, %s1348_s0 }
 0xd2c   :  { %639 = vrot.lane.b32.xlu1 %v631_v6, %s1352_s1 }
 0xd9a   :  { %v635_v10 = vpop.permute.xlu1 %634 }
 0xd9b   :  { %v1486_v11 = vmul.f32 %v1245_v63, %v635_v10 }
 0xd9d   :  { %644 = vrot.lane.b32.xlu0 %v1486_v11, %s1345_s19 }
 0xd9e   :  { %v640_v12 = vpop.permute.xlu1 %639 }
 0xd9f   :  { %642 = vst.msk [vmem:[#allocation3] sm:$0x3] %vm45_vm0, %v640_v12 }
 0xda6   :  { %v740_v13 = vld [vmem:[#allocation3] sm:$0x3] }
 0xda7   :  { %742 = vrot.lane.b32.xlu1 %v740_v13, %s1345_s19  ;;  %v918_v13 = vld [vmem:[#allocation4 + $0xe] sm:$0x3] }
 0xe0f   :  { %v645_v14 = vpop.permute.xlu0 %644 }
 0xe10   :  { %647 = vst.msk [vmem:[#allocation2] sm:$0x3] %vm45_vm0, %v645_v14 }
 0xe17   :  { %v671_v15 = vld [vmem:[#allocation2] sm:$0x3] }
 0xe18   :  { %v672_v16 = vpack.c.bf16 %v671_v15, %v671_v15 }
 0xe19   :  { %v743_v32 = vpop.permute.xlu1 %742 }
 0xe1a   :  { %1160 = vmatmul.mubr.msk.bf16.vlgmr.msra.gmra.mrb[8].mxu1 %vm67_vm2, %v672_v16 }
 0xe1b   :  { %1175 = vmatprep.mubr.msk.bf16.mxu1 %vm1351_vm1, %v1350_v0  ;;  %1172 = vmatpush3.bf16.msra.mxu1 %v1206_v3 }
 0xe1c   :  { %1173 = vmatprep.subr.bf16.mxu1 %v1350_v0 }
 0xe1f   :  { %1174 = vmatpush3.bf16.msra.mxu1 %v1207_v4 }
 0xeed   :  { %v726_v19 = vpop.f32.mrb[8].mxu1 }
 0xeee   :  { %v732_v20 = vadd.f32 %v726_v19, %v670_v17  ;;  %v1161_v21 = vpop.f32.mrb[9].mxu1 }
 0xeef   :  { %v729_v22 = vpop.f32.mrb[10].mxu1 }
 0xef0   :  { %1248 = vtanh.f32 %v732_v20  ;;  %v1162_v23 = vpop.f32.mrb[11].mxu1  ;;  %v1082_v25 = vmul.f32 -1.442695, %v732_v20 }
 0xef1   :  { %v1353_v23 = vmov 1966171168  }
 0xef2   :  { %1250 = vpow2.f32 %v1082_v25  ;;  %v157_v25 = vlaneseq }
 0xefa   :  { %v1249_v24 = vpop.eup %1248 }
 0xefb   :  { %747 = vrot.lane.b32.xlu0 %v1249_v24, %s1348_s0  ;;  %v155_v24 = vunpack.c.l.s4 %v1353_v23 }
 0xefc   :  { %v1251_v26 = vpop.eup %1250 }
 0xefd   :  { %v736_v28 = vadd.f32 1.0, %v1251_v26  ;;  %v156_v26 = vunpack.c.0.s8 %v155_v24 }
 0xeff   :  { %1252 = vrcp.f32 %v736_v28  ;;  %v158_v28 = vshrl.u32 %v157_v25, 7 }
 0xf09   :  { %v1253_v29 = vpop.eup %1252 }
 0xf0a   :  { %v745_v33 = vmul.f32 %v1253_v29, %v743_v32 }
 0xf6d   :  { %v748_v30 = vpop.permute.xlu0 %747 }
 0xf6e   :  { %v750_v31 = vmul.f32 %v1253_v29, %v748_v30  ;;  %v159_v30 = vsub.s32 %v156_v26, %v158_v28 }
 0xf70   :  { %752 = vrot.lane.b32.xlu0 %v750_v31, %s1345_s19 }
 0xfe2   :  { %v753_v34 = vpop.permute.xlu0 %752 }
 0xfe3   :  { %v755_v35 = vadd.f32 %v753_v34, %v745_v33  ;;  %v400_v33 = vpack.c.bf16 %v1454_v18, %v1454_v18 }
 0xfe5   :  { %1254 = vtanh.f32 %v755_v35  ;;  %v408_v38 = vrot.slane %v400_v33, %v159_v30 }
 0xfef   :  { %v1255_v36 = vpop.eup %1254 }
 0xff0   :  { %758 = vrot.lane.b32.xlu1 %v1255_v36, %s1348_s0  ;;  %v648_v36 = vpack.c.bf16 %v1486_v11, %v1486_v11 }
 0xff4   :  { %763 = vrot.lane.b32.xlu1 %v755_v35, %s1352_s1 }
0x1062   :  { %v759_v39 = vpop.permute.xlu1 %758 }
0x1063   :  { %v1501_v40 = vmul.f32 %v1253_v29, %v759_v39  ;;  %v152_v29 = vpack.c.bf16 %v1422_v27, %v1422_v27  ;;  %v656_v27 = vrot.slane %v648_v36, %v159_v30 }
0x1065   :  { %768 = vrot.lane.b32.xlu0 %v1501_v40, %s1345_s19  ;;  %v160_v35 = vrot.slane %v152_v29, %v159_v30 }
0x1066   :  { %v764_v41 = vpop.permute.xlu1 %763 }
0x1067   :  { %766 = vst.msk [vmem:[#allocation3] sm:$0x3] %vm45_vm0, %v764_v41  ;;  %v167_v37 = vrot.slane %v160_v35, %v159_v30  ;;  %v415_v41 = vrot.slane %v408_v38, %v159_v30 }
0x106e   :  { %v864_v42 = vld [vmem:[#allocation3] sm:$0x3] }
0x106f   :  { %866 = vrot.lane.b32.xlu1 %v864_v42, %s1345_s19  ;;  %v663_v42 = vrot.slane %v656_v27, %v159_v30 }
0x10d7   :  { %v769_v43 = vpop.permute.xlu0 %768 }
0x10d8   :  { %771 = vst.msk [vmem:[#allocation2] sm:$0x3] %vm45_vm0, %v769_v43 }
0x10df   :  { %v795_v44 = vld [vmem:[#allocation2] sm:$0x3] }
0x10e0   :  { %v796_v45 = vpack.c.bf16 %v795_v44, %v795_v44 }
0x10e1   :  { %v867_v61 = vpop.permute.xlu1 %866 }
0x10e2   :  { %1168 = vmatmul.mubr.msk.bf16.vlgmr.msra.gmra.mrb[12].mxu0 %vm67_vm2, %v796_v45 }
0x11b5   :  { %v850_v48 = vpop.f32.mrb[12].mxu0 }
0x11b6   :  { %v856_v49 = vadd.f32 %v850_v48, %v794_v47  ;;  %v1169_v50 = vpop.f32.mrb[13].mxu0 }
0x11b7   :  { %v853_v51 = vpop.f32.mrb[14].mxu0 }
0x11b8   :  { %1256 = vtanh.f32 %v856_v49  ;;  %v1170_v52 = vpop.f32.mrb[15].mxu0  ;;  %v1086_v55 = vmul.f32 -1.442695, %v856_v49  ;;  %v276_v49 = vpack.c.bf16 %v1438_v54, %v1438_v54  ;;  %v524_v51 = vpack.c.bf16 %v1470_v46, %v1470_v46 }
0x11ba   :  { %1258 = vpow2.f32 %v1086_v55 }
0x11c2   :  { %v1257_v53 = vpop.eup %1256 }
0x11c3   :  { %871 = vrot.lane.b32.xlu0 %v1257_v53, %s1348_s0  ;;  %v284_v53 = vrot.slane %v276_v49, %v159_v30 }
0x11c4   :  { %v1259_v56 = vpop.eup %1258 }
0x11c5   :  { %v860_v57 = vadd.f32 1.0, %v1259_v56  ;;  %v772_v56 = vpack.c.bf16 %v1501_v40, %v1501_v40 }
0x11c7   :  { %1260 = vrcp.f32 %v860_v57 }
0x11d1   :  { %v1261_v58 = vpop.eup %1260 }
0x11d2   :  { %v869_v62 = vmul.f32 %v1261_v58, %v867_v61 }
0x1235   :  { %v872_v59 = vpop.permute.xlu0 %871 }
0x1236   :  { %v874_v60 = vmul.f32 %v1261_v58, %v872_v59  ;;  %v532_v59 = vrot.slane %v524_v51, %v159_v30 }
0x1238   :  { %876 = vrot.lane.b32.xlu0 %v874_v60, %s1345_s19  ;;  %v539_v54 = vrot.slane %v532_v59, %v159_v30  ;;  %v780_v60 = vrot.slane %v772_v56, %v159_v30 }
0x123a   :  { %v787_v46 = vrot.slane %v780_v60, %v159_v30 }
0x12aa   :  { %v877_v63 = vpop.permute.xlu0 %876 }
0x12ab   :  { %v879_v1 = vadd.f32 %v877_v63, %v869_v62 }
0x12ad   :  { %1262 = vtanh.f32 %v879_v1 }
0x12b7   :  { %v1263_v2 = vpop.eup %1262 }
0x12b8   :  { %882 = vrot.lane.b32.xlu1 %v1263_v2, %s1348_s0 }
0x12bc   :  { %887 = vrot.lane.b32.xlu1 %v879_v1, %s1352_s1 }
0x132a   :  { %v883_v5 = vpop.permute.xlu1 %882 }
0x132b   :  { %v885_v6 = vmul.f32 %v1261_v58, %v883_v5  ;;  %v291_v58 = vrot.slane %v284_v53, %v159_v30 }
0x132d   :  { %892 = vrot.lane.b32.xlu0 %v885_v6, %s1345_s19  ;;  %v896_v39 = vpack.c.bf16 %v885_v6, %v885_v6 }
0x132e   :  { %v888_v7 = vpop.permute.xlu1 %887 }
0x132f   :  { %890 = vst.msk [vmem:[#allocation3] sm:$0x3] %vm45_vm0, %v888_v7  ;;  %v904_v43 = vrot.slane %v896_v39, %v159_v30 }
0x1331   :  { %v911_v18 = vrot.slane %v904_v43, %v159_v30 }
0x1336   :  { %v988_v8 = vld [vmem:[#allocation3] sm:$0x3] }
0x1337   :  { %990 = vrot.lane.b32.xlu1 %v988_v8, %s1345_s19 }
0x139f   :  { %v893_v9 = vpop.permute.xlu0 %892 }
0x13a0   :  { %895 = vst.msk [vmem:[#allocation2] sm:$0x3] %vm45_vm0, %v893_v9 }
0x13a7   :  { %v919_v10 = vld [vmem:[#allocation2] sm:$0x3] }
0x13a8   :  { %v920_v12 = vpack.c.bf16 %v919_v10, %v919_v10 }
0x13a9   :  { %v991_v44 = vpop.permute.xlu1 %990 }
0x13aa   :  { %1176 = vmatmul.mubr.msk.bf16.vlgmr.msra.gmra.mrb[12].mxu1 %vm67_vm2, %v920_v12 }
0x147d   :  { %v974_v0 = vpop.f32.mrb[12].mxu1 }
0x147e   :  { %v980_v14 = vadd.f32 %v974_v0, %v918_v13  ;;  %v1177_v15 = vpop.f32.mrb[13].mxu1 }
0x147f   :  { %v977_v16 = vpop.f32.mrb[14].mxu1 }
0x1480   :  { %1264 = vtanh.f32 %v980_v14  ;;  %v1178_v17 = vpop.f32.mrb[15].mxu1  ;;  %v1090_v20 = vmul.f32 -1.442695, %v980_v14 }
0x1482   :  { %1266 = vpow2.f32 %v1090_v20 }
0x148a   :  { %v1265_v19 = vpop.eup %1264 }
0x148b   :  { %995 = vrot.lane.b32.xlu0 %v1265_v19, %s1348_s0 }
0x148c   :  { %v1267_v21 = vpop.eup %1266 }
0x148d   :  { %v984_v22 = vadd.f32 1.0, %v1267_v21 }
0x148f   :  { %1268 = vrcp.f32 %v984_v22 }
0x1499   :  { %v1269_v31 = vpop.eup %1268 }
0x149a   :  { %v993_v45 = vmul.f32 %v1269_v31, %v991_v44 }
0x14fd   :  { %v996_v32 = vpop.permute.xlu0 %995 }
0x14fe   :  { %v998_v34 = vmul.f32 %v1269_v31, %v996_v32 }
0x1500   :  { %1000 = vrot.lane.b32.xlu0 %v998_v34, %s1345_s19 }
0x1504   :  { %168 = vrot.lane.b32.xlu0 %v167_v37, %s1345_s19 }
0x1508   :  { %416 = vrot.lane.b32.xlu0 %v415_v41, %s1345_s19 }
0x150c   :  { %664 = vrot.lane.b32.xlu0 %v663_v42, %s1345_s19 }
0x1510   :  { %912 = vrot.lane.b32.xlu0 %v911_v18, %s1345_s19 }
0x1572   :  { %v1001_v47 = vpop.permute.xlu0 %1000 }
0x1573   :  { %v1003_v11 = vadd.f32 %v1001_v47, %v993_v45 }
0x1575   :  { %1270 = vtanh.f32 %v1003_v11  ;;  %1011 = vrot.lane.b32.xlu0 %v1003_v11, %s1352_s1 }
0x1576   :  { %v169_v48 = vpop.permute.xlu0 %168 }
0x1577   :  { %172 = vst.msk [vmem:[#allocation9] sm:$0x1] %vm171_vm3, %v169_v48 }
0x157a   :  { %v417_v50 = vpop.permute.xlu0 %416 }
0x157b   :  { %420 = vst.msk [vmem:[#allocation9 + $0x2] sm:$0x1] %vm171_vm3, %v417_v50 }
0x157e   :  { %v665_v52 = vpop.permute.xlu0 %664 }
0x157f   :  { %v1271_v55 = vpop.eup %1270  ;;  %668 = vst.msk [vmem:[#allocation9 + $0x4] sm:$0x1] %vm171_vm3, %v665_v52 }
0x1580   :  { %1006 = vrot.lane.b32.xlu1 %v1271_v55, %s1348_s0 }
0x1582   :  { %v913_v57 = vpop.permute.xlu0 %912 }
0x1583   :  { %916 = vst.msk [vmem:[#allocation9 + $0x6] sm:$0x1] %vm171_vm3, %v913_v57 }
0x1584   :  { %292 = vrot.lane.b32.xlu1 %v291_v58, %s1345_s19 }
0x1588   :  { %540 = vrot.lane.b32.xlu1 %v539_v54, %s1345_s19 }
0x158c   :  { %788 = vrot.lane.b32.xlu1 %v787_v46, %s1345_s19 }
0x15e7   :  { %v1012_v61 = vpop.permute.xlu0 %1011 }
0x15e8   :  { %1014 = vst.msk [vmem:[#allocation3] sm:$0x3] %vm45_vm0, %v1012_v61 }
0x15f2   :  { %v1007_v62 = vpop.permute.xlu1 %1006 }
0x15f3   :  { %v1009_v63 = vmul.f32 %v1269_v31, %v1007_v62 }
0x15f5   :  { %v1020_v40 = vpack.c.bf16 %v1009_v63, %v1009_v63 }
0x15f6   :  { %v293_v1 = vpop.permute.xlu1 %292 }
0x15f7   :  { %296 = vst.msk [vmem:[#allocation9 + $0x1] sm:$0x1] %vm171_vm3, %v293_v1  ;;  %v1028_v2 = vrot.slane %v1020_v40, %v159_v30 }
0x15f9   :  { %v1035_v3 = vrot.slane %v1028_v2, %v159_v30 }
0x15fa   :  { %v541_v4 = vpop.permute.xlu1 %540 }
0x15fb   :  { %544 = vst.msk [vmem:[#allocation9 + $0x3] sm:$0x1] %vm171_vm3, %v541_v4  ;;  %1036 = vrot.lane.b32.xlu1 %v1035_v3, %s1345_s19 }
0x15fe   :  { %v789_v5 = vpop.permute.xlu1 %788 }
0x15ff   :  { %792 = vst.msk [vmem:[#allocation9 + $0x5] sm:$0x1] %vm171_vm3, %v789_v5  ;;  %1016 = vrot.lane.b32.xlu1 %v1009_v63, %s1345_s19 }
0x166d   :  { %v1037_v6 = vpop.permute.xlu1 %1036 }
0x166e   :  { %1040 = vst.msk [vmem:[#allocation9 + $0x7] sm:$0x1] %vm171_vm3, %v1037_v6 }
0x166f   :  { %1327 = shalt.err (!%p1324_p6)
}
0x1670   :  { %s1328_s13 = scalar_lea.hbm %s1568_s2, 128 }
0x1671   :  { %p1329_p7 = scmp.ne.s32.totalorder %s1568_s2, %s1328_s13  ;;  %p1332_p8 = scmp.lt.u32.totalorder %s1328_s13, %s1568_s2 }
0x1673   :  { %p1334_p9 = pnand %p1332_p8, %p1329_p7 }
0x1675   :  { %1337 = shalt.err (!%p1334_p9)
}
0x1676   :  { %s1355_s18 = smov 16   ;;  %s1356_s19 = smov 1   ;;  %v1017_v7 = vpop.permute.xlu1 %1016 }
0x1677   :  { %1052 = dma.vmem_to_hbm [thread:$0]  %s1047_s9, 128, %s1568_s2, [#allocation6], %s1355_s18, %s1355_s18, %s1356_s19   ;;  %1019 = vst.msk [vmem:[#allocation2] sm:$0x3] %vm45_vm0, %v1017_v7 }
0x1678   :  { %1342 = dma.done.wait [#allocation6], 128  }
0x1679   :  { %1343 = vsyncadd [#allocation6], 4294967168 }
0x167a   :  { %1056 = vsyncpa [#allocation5], 1 }
0x167b   :  { %1057 = vsyncpa [#allocation8], 1 }
0x167c   :  { %1058 = vsyncpa [#allocation6], 1 }

</bundles_post_ra>
